<compile_context>
chip_gen: v7x
topology: tpu7x:2x2x1
jax: 0.10.0
libtpu: 0.0.40
codegen_flags: <defaults>
</compile_context>

<pallas_src>
import functools

import jax
import jax.numpy as jnp
from jax import lax
from jax.experimental import pallas as pl
from jax.experimental.pallas import tpu as pltpu


_VMEM = pl.BlockSpec(memory_space=pltpu.MemorySpace.VMEM)


def _round_up(x, m):
    return (x + m - 1) // m * m


# ----------------------------------------------------------------------------
# Fused multi-layer LSTM kernel (single pallas_call for the whole stack).
# ----------------------------------------------------------------------------
def _lstm_stack_kernel(x_ref,       # [T, Bp, D0p] bf16  time-major embedded input
                       wih0_ref,    # [D0p, G]     bf16  layer-0 input weights (G = 4*Hp)
                       b0_ref,      # [1, G]       f32   layer-0 bias (b_ih + b_hh)
                       wihr_ref,    # [Lr, Hp, G]  bf16  input weights, layers 1..L-1
                       br_ref,      # [Lr, 1, G]   f32   biases,        layers 1..L-1
                       whh_ref,     # [L, Hp, G]   bf16  recurrent weights
                       mask_ref,    # [T, Bp, Hp]  f32   1.0 where t < length[b]
                       out_ref,     # [T, Bp, Hp]  f32   last-layer output (zeros past length)
                       hT_ref,      # [L, Bp, Hp]  f32   h_n
                       cT_ref,      # [L, Bp, Hp]  f32   c_n
                       gates_sc,    # scratch [T, Bp, G]  f32  per-layer input projection
                       act_sc):     # scratch [T, Bp, Hp] f32  inter-layer activations
    T, Bp, D0p = x_ref.shape
    L, Hp, G = whh_ref.shape

    for l in range(L):  # static layer loop (traced once per layer)
        # ---- input projection: one big MXU matmul, outside the recurrence ----
        if l == 0:
            xin = x_ref[...].reshape(T * Bp, D0p)                       # bf16
            proj = jnp.dot(xin, wih0_ref[...],
                           preferred_element_type=jnp.float32) + b0_ref[...]
        else:
            xin = act_sc[...].reshape(T * Bp, Hp).astype(jnp.bfloat16)
            proj = jnp.dot(xin, wihr_ref[l - 1],
                           preferred_element_type=jnp.float32) + br_ref[l - 1]
        gates_sc[...] = proj.reshape(T, Bp, G)

        whh_l = whh_ref[l]                                              # [Hp, G] bf16
        dst = out_ref if l == L - 1 else act_sc

        def step(t, carry, _whh=whh_l, _dst=dst):
            h, c = carry                                                # [Bp, Hp] f32
            g_pre = gates_sc[t] + jnp.dot(h.astype(jnp.bfloat16), _whh,
                                          preferred_element_type=jnp.float32)
            i_g = jax.nn.sigmoid(g_pre[:, 0 * Hp:1 * Hp])
            f_g = jax.nn.sigmoid(g_pre[:, 1 * Hp:2 * Hp])
            g_g = jnp.tanh(g_pre[:, 2 * Hp:3 * Hp])
            o_g = jax.nn.sigmoid(g_pre[:, 3 * Hp:4 * Hp])
            c_new = f_g * c + i_g * g_g
            h_new = o_g * jnp.tanh(c_new)
            m = mask_ref[t]                                             # [Bp, Hp] f32
            h_u = h + m * (h_new - h)                                   # where(valid, h_new, h)
            c_u = c + m * (c_new - c)
            _dst[t] = m * h_new                                         # zero past length
            return (h_u, c_u)

        zeros = jnp.zeros((Bp, Hp), jnp.float32)
        h_fin, c_fin = lax.fori_loop(0, T, step, (zeros, zeros), unroll=True)
        hT_ref[l] = h_fin
        cT_ref[l] = c_fin


def lstm_stack(x_tm, wih0, b0, wih_rest, b_rest, whh, mask):
    T, Bp, _ = x_tm.shape
    L, Hp, G = whh.shape
    return pl.pallas_call(
        _lstm_stack_kernel,
        out_shape=(jax.ShapeDtypeStruct((T, Bp, Hp), jnp.float32),
                   jax.ShapeDtypeStruct((L, Bp, Hp), jnp.float32),
                   jax.ShapeDtypeStruct((L, Bp, Hp), jnp.float32)),
        in_specs=[_VMEM] * 7,
        out_specs=(_VMEM, _VMEM, _VMEM),
        scratch_shapes=[pltpu.VMEM((T, Bp, G), jnp.float32),
                        pltpu.VMEM((T, Bp, Hp), jnp.float32)],
    )(x_tm, wih0, b0, wih_rest, b_rest, whh, mask)


# ----------------------------------------------------------------------------
# Final linear: row-tiled gridded kernel, bf16 matmul with f32 accumulation.
# ----------------------------------------------------------------------------
def _linear_kernel(x_ref, w_ref, b_ref, o_ref):
    o_ref[...] = (jnp.dot(x_ref[...], w_ref[...],
                          preferred_element_type=jnp.float32)
                  + b_ref[...])


def linear(x2d, w_t, b_row, tm=256):
    N, H = x2d.shape
    V = w_t.shape[-1]
    tm = min(tm, _round_up(N, 8))
    n_pad = _round_up(N, tm)
    if n_pad != N:
        x2d = jnp.pad(x2d, ((0, n_pad - N), (0, 0)))
    out = pl.pallas_call(
        _linear_kernel,
        out_shape=jax.ShapeDtypeStruct((n_pad, V), jnp.float32),
        grid=(n_pad // tm,),
        in_specs=[pl.BlockSpec((tm, H), lambda i: (i, 0)),
                  pl.BlockSpec((H, V), lambda i: (0, 0)),
                  pl.BlockSpec((1, V), lambda i: (0, 0))],
        out_specs=pl.BlockSpec((tm, V), lambda i: (i, 0)),
        compiler_params=pltpu.CompilerParams(dimension_semantics=("parallel",)),
    )(x2d, w_t, b_row)
    return out[:N]


# ----------------------------------------------------------------------------
# CharRNN forward
# ----------------------------------------------------------------------------
def char_rnn_forward(params, x_tokens, lengths):
    """x_tokens: [B, T] int32 (lengths sorted descending, as pack_padded requires)."""
    B, T = x_tokens.shape
    Bp, Hp = params["Bp"], params["Hp"]
    vocab, hidden = params["vocab"], params["hidden"]

    # Embedding lookup (gather) — glue in plain JAX; table is lane-padded,
    # padding_idx row is zeros.
    emb = params["embedding"][x_tokens]                           # [B, T, D0p] f32
    emb = jnp.pad(emb, ((0, Bp - B), (0, 0), (0, 0)))             # pad batch rows
    x_tm = jnp.transpose(emb, (1, 0, 2)).astype(jnp.bfloat16)     # [T, Bp, D0p]

    len_p = jnp.pad(lengths.astype(jnp.int32), (0, Bp - B))       # padded rows -> len 0
    mask = (jnp.arange(T, dtype=jnp.int32)[:, None] < len_p[None, :]).astype(jnp.float32)
    mask = jnp.broadcast_to(mask[:, :, None], (T, Bp, Hp))        # [T, Bp, Hp]

    out_tm, h_n, c_n = lstm_stack(x_tm, params["wih0"], params["b0"],
                                  params["wih_rest"], params["b_rest"],
                                  params["whh"], mask)
    # TODO(synk): training-mode inter-layer dropout omitted (inference path).

    # Final linear over padded outputs (pads are zero -> padded logits = bias,
    # matching pad_packed_sequence followed by nn.Linear).
    logits2d = linear(out_tm.reshape(T * Bp, Hp).astype(jnp.bfloat16),
                      params["linear_w_t"], params["linear_b"])
    logits = jnp.transpose(logits2d.reshape(T, Bp, -1), (1, 0, 2))[:B, :, :vocab]

    hiddens = (h_n[:, :B, :hidden], c_n[:, :B, :hidden])          # [L, B, H] each
    return logits, lengths, hiddens


# ----------------------------------------------------------------------------
# Deterministic parameter construction (shapes from the module's __init__),
# pre-padded to TPU-friendly (8, 128)-aligned layouts.
# ----------------------------------------------------------------------------
def make_params(key, vocab_size, hidden, num_layers, pad_idx, batch):
    Bp = max(8, _round_up(batch, 8))
    Hp = _round_up(hidden, 128)
    D0p = _round_up(vocab_size, 128)    # embedding dim == vocab_size in CharRNN
    Vp = _round_up(vocab_size, 128)
    G = 4 * Hp

    n_keys = 3 + 4 * num_layers         # emb + 4 per layer + (lin_w, lin_b)
    ki = iter(jax.random.split(key, n_keys))

    emb = jax.random.normal(next(ki), (vocab_size, vocab_size), jnp.float32) * 0.1
    emb = emb.at[pad_idx].set(0.0)                          # padding_idx row = 0
    emb = jnp.pad(emb, ((0, 0), (0, D0p - vocab_size)))     # lane-pad embed dim

    s = 1.0 / float(hidden) ** 0.5

    def pad_gate_cols(w):
        # [..., 4*hidden] -> [..., 4*Hp]; each gate block lands at k*Hp.
        parts = []
        for k in range(4):
            blk = w[..., k * hidden:(k + 1) * hidden]
            pad_width = [(0, 0)] * (w.ndim - 1) + [(0, Hp - hidden)]
            parts.append(jnp.pad(blk, pad_width))
        return jnp.concatenate(parts, axis=-1)

    wih_list, whh_list, b_list = [], [], []
    for l in range(num_layers):
        d_in = vocab_size if l == 0 else hidden
        d_in_pad = D0p if l == 0 else Hp
        w_ih = jax.random.uniform(next(ki), (d_in, 4 * hidden), jnp.float32, -s, s)
        w_hh = jax.random.uniform(next(ki), (hidden, 4 * hidden), jnp.float32, -s, s)
        b_ih = jax.random.uniform(next(ki), (1, 4 * hidden), jnp.float32, -s, s)
        b_hh = jax.random.uniform(next(ki), (1, 4 * hidden), jnp.float32, -s, s)
        w_ih = jnp.pad(pad_gate_cols(w_ih), ((0, d_in_pad - d_in), (0, 0)))
        w_hh = jnp.pad(pad_gate_cols(w_hh), ((0, Hp - hidden), (0, 0)))
        wih_list.append(w_ih.astype(jnp.bfloat16))
        whh_list.append(w_hh.astype(jnp.bfloat16))
        b_list.append(pad_gate_cols(b_ih + b_hh))           # [1, G] f32

    wih0, b0 = wih_list[0], b_list[0]
    if num_layers > 1:
        wih_rest = jnp.stack(wih_list[1:], axis=0)           # [L-1, Hp, G] bf16
        b_rest = jnp.stack(b_list[1:], axis=0)                # [L-1, 1, G]  f32
    else:
        wih_rest = jnp.zeros((1, Hp, G), jnp.bfloat16)        # unused dummy
        b_rest = jnp.zeros((1, 1, G), jnp.float32)
    whh = jnp.stack(whh_list, axis=0)                         # [L, Hp, G] bf16

    lin_w = jax.random.uniform(next(ki), (vocab_size, hidden), jnp.float32, -s, s)
    lin_b = jax.random.uniform(next(ki), (vocab_size,), jnp.float32, -s, s)
    lin_w_t = jnp.pad(lin_w.T, ((0, Hp - hidden), (0, Vp - vocab_size))).astype(jnp.bfloat16)
    lin_b = jnp.pad(lin_b, (0, Vp - vocab_size))[None, :]     # [1, Vp] f32

    return dict(embedding=emb, wih0=wih0, b0=b0, wih_rest=wih_rest, b_rest=b_rest,
                whh=whh, linear_w_t=lin_w_t, linear_b=lin_b,
                vocab=vocab_size, hidden=hidden, num_layers=num_layers,
                Bp=Bp, Hp=Hp)


if __name__ == "__main__":
    # small config: vocab=16, hidden=32, num_layers=2, batch=2, seq=8
    VOCAB, HIDDEN, NUM_LAYERS = 16, 32, 2
    B, T = 2, 8
    PAD_IDX = 0

    key = jax.random.PRNGKey(0)
    kp, kx = jax.random.split(key)

    params = make_params(kp, VOCAB, HIDDEN, NUM_LAYERS, PAD_IDX, B)

    lengths = jnp.array([8, 5], dtype=jnp.int32)              # sorted descending
    tokens = jax.random.randint(kx, (B, T), 1, VOCAB, dtype=jnp.int32)
    t_idx = jnp.arange(T)[None, :]
    tokens = jnp.where(t_idx < lengths[:, None], tokens, PAD_IDX)

    fwd = jax.jit(functools.partial(char_rnn_forward, params))
    logits, out_lengths, (h_n, c_n) = fwd(tokens, lengths)
    jax.block_until_ready((logits, h_n, c_n))

    assert logits.shape == (B, T, VOCAB)
    assert h_n.shape == (NUM_LAYERS, B, HIDDEN)
    assert c_n.shape == (NUM_LAYERS, B, HIDDEN)
    assert bool(jnp.all(jnp.isfinite(logits)))
    print("KERNEL_OK")
</pallas_src>

<mosaic_0001>
module attributes {stable_mosaic.version = 11 : i64} {
  func.func @_linear_kernel(%arg0: i32, %arg1: memref<64x128xbf16, #tpu.memory_space<vmem>>, %arg2: memref<128x128xbf16, #tpu.memory_space<vmem>>, %arg3: memref<1x128xf32, #tpu.memory_space<vmem>>, %arg4: memref<64x128xf32, #tpu.memory_space<vmem>>) attributes {dimension_semantics = [#tpu.dimension_semantics<parallel>], iteration_bounds = array<i64: 1>, scalar_prefetch = 0 : i64, scratch_operands = 0 : i64, tpu.core_type = #tpu.core_type<tc>, window_params = [{transform_indices = @transform_0, window_bounds = array<i64: 64, 128>}, {pipeline_mode = #tpu.pipeline_mode<synchronous>, transform_indices = @transform_1, window_bounds = array<i64: 128, 128>}, {pipeline_mode = #tpu.pipeline_mode<synchronous>, transform_indices = @transform_2, window_bounds = array<i64: 1, 128>}, {transform_indices = @transform_3, window_bounds = array<i64: 64, 128>}]} {
    %c0 = arith.constant 0 : index
    %c0_0 = arith.constant 0 : index
    %0 = vector.load %arg1[%c0, %c0_0] : memref<64x128xbf16, #tpu.memory_space<vmem>>, vector<64x128xbf16>
    %c0_1 = arith.constant 0 : index
    %c0_2 = arith.constant 0 : index
    %1 = vector.load %arg2[%c0_1, %c0_2] : memref<128x128xbf16, #tpu.memory_space<vmem>>, vector<128x128xbf16>
    %cst = arith.constant dense<0.000000e+00> : vector<64x128xf32>
    %2 = tpu.matmul %0, %1, %cst {dimension_numbers = #tpu.dot_dimension_numbers<[1], [0], [0], [1], [0, 0, 1, 1], [], []>} : vector<64x128xbf16>, vector<128x128xbf16>, vector<64x128xf32> -> vector<64x128xf32>
    %c0_3 = arith.constant 0 : index
    %c0_4 = arith.constant 0 : index
    %3 = vector.load %arg3[%c0_3, %c0_4] : memref<1x128xf32, #tpu.memory_space<vmem>>, vector<1x128xf32>
    %4 = vector.broadcast %3 : vector<1x128xf32> to vector<64x128xf32>
    %5 = arith.addf %2, %4 : vector<64x128xf32>
    %c0_5 = arith.constant 0 : index
    %c0_6 = arith.constant 0 : index
    %6 = vector.load %arg4[%c0_5, %c0_6] : memref<64x128xf32, #tpu.memory_space<vmem>>, vector<64x128xf32>
    tpu.vector_store %arg4[%c0_5, %c0_6], %5 {strides = array<i32>} : memref<64x128xf32, #tpu.memory_space<vmem>>, vector<64x128xf32>,
    return
  }
  func.func @transform_0(%arg0: i32) -> (i32, i32) {
    %c0_i32 = arith.constant 0 : i32
    %c0_i32_0 = arith.constant 0 : i32
    return %arg0, %c0_i32 : i32, i32
  }
  func.func @transform_1(%arg0: i32) -> (i32, i32) {
    %c0_i32 = arith.constant 0 : i32
    %c0_i32_0 = arith.constant 0 : i32
    %c0_i32_1 = arith.constant 0 : i32
    return %c0_i32, %c0_i32_0 : i32, i32
  }
  func.func @transform_2(%arg0: i32) -> (i32, i32) {
    %c0_i32 = arith.constant 0 : i32
    %c0_i32_0 = arith.constant 0 : i32
    %c0_i32_1 = arith.constant 0 : i32
    return %c0_i32, %c0_i32_0 : i32, i32
  }
  func.func @transform_3(%arg0: i32) -> (i32, i32) {
    %c0_i32 = arith.constant 0 : i32
    %c0_i32_0 = arith.constant 0 : i32
    return %arg0, %c0_i32 : i32, i32
  }
}

module attributes {stable_mosaic.version = 11 : i64} {
  func.func @_lstm_stack_kernel(%arg0: memref<8x8x128xbf16, #tpu.memory_space<vmem>>, %arg1: memref<128x512xbf16, #tpu.memory_space<vmem>>, %arg2: memref<1x512xf32, #tpu.memory_space<vmem>>, %arg3: memref<1x128x512xbf16, #tpu.memory_space<vmem>>, %arg4: memref<1x1x512xf32, #tpu.memory_space<vmem>>, %arg5: memref<2x128x512xbf16, #tpu.memory_space<vmem>>, %arg6: memref<8x8x128xf32, #tpu.memory_space<vmem>>, %arg7: memref<8x8x128xf32, #tpu.memory_space<vmem>>, %arg8: memref<2x8x128xf32, #tpu.memory_space<vmem>>, %arg9: memref<2x8x128xf32, #tpu.memory_space<vmem>>, %arg10: memref<8x8x512xf32, #tpu.memory_space<vmem>>, %arg11: memref<8x8x128xf32, #tpu.memory_space<vmem>>) attributes {dimension_semantics = [], scalar_prefetch = 0 : i64, scratch_operands = 2 : i64, tpu.core_type = #tpu.core_type<tc>} {
    %c0 = arith.constant 0 : index
    %c0_0 = arith.constant 0 : index
    %c0_1 = arith.constant 0 : index
    %0 = vector.load %arg0[%c0, %c0_0, %c0_1] : memref<8x8x128xbf16, #tpu.memory_space<vmem>>, vector<8x8x128xbf16>
    %1 = vector.shape_cast %0 : vector<8x8x128xbf16> to vector<64x128xbf16>
    %c0_2 = arith.constant 0 : index
    %c0_3 = arith.constant 0 : index
    %2 = vector.load %arg1[%c0_2, %c0_3] : memref<128x512xbf16, #tpu.memory_space<vmem>>, vector<128x512xbf16>
    %cst = arith.constant dense<0.000000e+00> : vector<64x512xf32>
    %3 = tpu.matmul %1, %2, %cst {dimension_numbers = #tpu.dot_dimension_numbers<[1], [0], [0], [1], [0, 0, 1, 1], [], []>} : vector<64x128xbf16>, vector<128x512xbf16>, vector<64x512xf32> -> vector<64x512xf32>
    %c0_4 = arith.constant 0 : index
    %c0_5 = arith.constant 0 : index
    %4 = vector.load %arg2[%c0_4, %c0_5] : memref<1x512xf32, #tpu.memory_space<vmem>>, vector<1x512xf32>
    %5 = vector.broadcast %4 : vector<1x512xf32> to vector<64x512xf32>
    %6 = arith.addf %3, %5 : vector<64x512xf32>
    %7 = vector.shape_cast %6 : vector<64x512xf32> to vector<8x8x512xf32>
    %c0_6 = arith.constant 0 : index
    %c0_7 = arith.constant 0 : index
    %c0_8 = arith.constant 0 : index
    %8 = vector.load %arg10[%c0_6, %c0_7, %c0_8] : memref<8x8x512xf32, #tpu.memory_space<vmem>>, vector<8x8x512xf32>
    tpu.vector_store %arg10[%c0_6, %c0_7, %c0_8], %7 {strides = array<i32>} : memref<8x8x512xf32, #tpu.memory_space<vmem>>, vector<8x8x512xf32>,
    %c0_9 = arith.constant 0 : index
    %c0_10 = arith.constant 0 : index
    %c0_11 = arith.constant 0 : index
    %9 = vector.load %arg5[%c0_9, %c0_10, %c0_11] : memref<2x128x512xbf16, #tpu.memory_space<vmem>>, vector<1x128x512xbf16>
    %10 = vector.shape_cast %9 : vector<1x128x512xbf16> to vector<128x512xbf16>
    %cst_12 = arith.constant 0.000000e+00 : f32
    %11 = vector.broadcast %cst_12 : f32 to vector<8x128xf32>
    %c0_i32 = arith.constant 0 : i32
    %12 = arith.index_cast %c0_i32 : i32 to index
    %c0_13 = arith.constant 0 : index
    %c0_14 = arith.constant 0 : index
    %13 = vector.load %arg10[%12, %c0_13, %c0_14] : memref<8x8x512xf32, #tpu.memory_space<vmem>>, vector<1x8x512xf32>
    %14 = vector.shape_cast %13 : vector<1x8x512xf32> to vector<8x512xf32>
    %15 = arith.truncf %11 : vector<8x128xf32> to vector<8x128xbf16>
    %cst_15 = arith.constant dense<0.000000e+00> : vector<8x512xf32>
    %16 = tpu.matmul %15, %10, %cst_15 {dimension_numbers = #tpu.dot_dimension_numbers<[1], [0], [0], [1], [0, 0, 1, 1], [], []>} : vector<8x128xbf16>, vector<128x512xbf16>, vector<8x512xf32> -> vector<8x512xf32>
    %17 = arith.addf %14, %16 : vector<8x512xf32>
    %18 = vector.extract_strided_slice %17 {offsets = [0, 0], sizes = [8, 128], strides = [1, 1]} : vector<8x512xf32> to vector<8x128xf32>
    %19 = arith.negf %18 : vector<8x128xf32>
    %20 = math.exp %19 : vector<8x128xf32>
    %cst_16 = arith.constant 1.000000e+00 : f32
    %21 = vector.broadcast %cst_16 : f32 to vector<8x128xf32>
    %22 = arith.addf %21, %20 : vector<8x128xf32>
    %23 = arith.divf %21, %22 : vector<8x128xf32>
    %24 = vector.extract_strided_slice %17 {offsets = [0, 128], sizes = [8, 128], strides = [1, 1]} : vector<8x512xf32> to vector<8x128xf32>
    %25 = arith.negf %24 : vector<8x128xf32>
    %26 = math.exp %25 : vector<8x128xf32>
    %cst_17 = arith.constant 1.000000e+00 : f32
    %27 = vector.broadcast %cst_17 : f32 to vector<8x128xf32>
    %28 = arith.addf %27, %26 : vector<8x128xf32>
    %29 = arith.divf %27, %28 : vector<8x128xf32>
    %30 = vector.extract_strided_slice %17 {offsets = [0, 256], sizes = [8, 128], strides = [1, 1]} : vector<8x512xf32> to vector<8x128xf32>
    %31 = math.tanh %30 : vector<8x128xf32>
    %32 = vector.extract_strided_slice %17 {offsets = [0, 384], sizes = [8, 128], strides = [1, 1]} : vector<8x512xf32> to vector<8x128xf32>
    %33 = arith.negf %32 : vector<8x128xf32>
    %34 = math.exp %33 : vector<8x128xf32>
    %cst_18 = arith.constant 1.000000e+00 : f32
    %35 = vector.broadcast %cst_18 : f32 to vector<8x128xf32>
    %36 = arith.addf %35, %34 : vector<8x128xf32>
    %37 = arith.divf %35, %36 : vector<8x128xf32>
    %38 = arith.mulf %29, %11 : vector<8x128xf32>
    %39 = arith.mulf %23, %31 : vector<8x128xf32>
    %40 = arith.addf %38, %39 : vector<8x128xf32>
    %41 = math.tanh %40 : vector<8x128xf32>
    %42 = arith.mulf %37, %41 : vector<8x128xf32>
    %43 = arith.index_cast %c0_i32 : i32 to index
    %c0_19 = arith.constant 0 : index
    %c0_20 = arith.constant 0 : index
    %44 = vector.load %arg6[%43, %c0_19, %c0_20] : memref<8x8x128xf32, #tpu.memory_space<vmem>>, vector<1x8x128xf32>
    %45 = vector.shape_cast %44 : vector<1x8x128xf32> to vector<8x128xf32>
    %46 = arith.subf %42, %11 : vector<8x128xf32>
    %47 = arith.mulf %45, %46 : vector<8x128xf32>
    %48 = arith.addf %11, %47 : vector<8x128xf32>
    %49 = arith.subf %40, %11 : vector<8x128xf32>
    %50 = arith.mulf %45, %49 : vector<8x128xf32>
    %51 = arith.addf %11, %50 : vector<8x128xf32>
    %52 = arith.mulf %45, %42 : vector<8x128xf32>
    %53 = arith.index_cast %c0_i32 : i32 to index
    %c0_21 = arith.constant 0 : index
    %c0_22 = arith.constant 0 : index
    %54 = vector.load %arg11[%53, %c0_21, %c0_22] : memref<8x8x128xf32, #tpu.memory_space<vmem>>, vector<1x8x128xf32>
    %55 = vector.shape_cast %54 : vector<1x8x128xf32> to vector<8x128xf32>
    %56 = vector.shape_cast %52 : vector<8x128xf32> to vector<1x8x128xf32>
    tpu.vector_store %arg11[%53, %c0_21, %c0_22], %56 {strides = array<i32>} : memref<8x8x128xf32, #tpu.memory_space<vmem>>, vector<1x8x128xf32>,
    %c1_i32 = arith.constant 1 : i32
    %57 = arith.index_cast %c1_i32 : i32 to index
    %c0_23 = arith.constant 0 : index
    %c0_24 = arith.constant 0 : index
    %58 = vector.load %arg10[%57, %c0_23, %c0_24] : memref<8x8x512xf32, #tpu.memory_space<vmem>>, vector<1x8x512xf32>
    %59 = vector.shape_cast %58 : vector<1x8x512xf32> to vector<8x512xf32>
    %60 = arith.truncf %48 : vector<8x128xf32> to vector<8x128xbf16>
    %cst_25 = arith.constant dense<0.000000e+00> : vector<8x512xf32>
    %61 = tpu.matmul %60, %10, %cst_25 {dimension_numbers = #tpu.dot_dimension_numbers<[1], [0], [0], [1], [0, 0, 1, 1], [], []>} : vector<8x128xbf16>, vector<128x512xbf16>, vector<8x512xf32> -> vector<8x512xf32>
    %62 = arith.addf %59, %61 : vector<8x512xf32>
    %63 = vector.extract_strided_slice %62 {offsets = [0, 0], sizes = [8, 128], strides = [1, 1]} : vector<8x512xf32> to vector<8x128xf32>
    %64 = arith.negf %63 : vector<8x128xf32>
    %65 = math.exp %64 : vector<8x128xf32>
    %cst_26 = arith.constant 1.000000e+00 : f32
    %66 = vector.broadcast %cst_26 : f32 to vector<8x128xf32>
    %67 = arith.addf %66, %65 : vector<8x128xf32>
    %68 = arith.divf %66, %67 : vector<8x128xf32>
    %69 = vector.extract_strided_slice %62 {offsets = [0, 128], sizes = [8, 128], strides = [1, 1]} : vector<8x512xf32> to vector<8x128xf32>
    %70 = arith.negf %69 : vector<8x128xf32>
    %71 = math.exp %70 : vector<8x128xf32>
    %cst_27 = arith.constant 1.000000e+00 : f32
    %72 = vector.broadcast %cst_27 : f32 to vector<8x128xf32>
    %73 = arith.addf %72, %71 : vector<8x128xf32>
    %74 = arith.divf %72, %73 : vector<8x128xf32>
    %75 = vector.extract_strided_slice %62 {offsets = [0, 256], sizes = [8, 128], strides = [1, 1]} : vector<8x512xf32> to vector<8x128xf32>
    %76 = math.tanh %75 : vector<8x128xf32>
    %77 = vector.extract_strided_slice %62 {offsets = [0, 384], sizes = [8, 128], strides = [1, 1]} : vector<8x512xf32> to vector<8x128xf32>
    %78 = arith.negf %77 : vector<8x128xf32>
    %79 = math.exp %78 : vector<8x128xf32>
    %cst_28 = arith.constant 1.000000e+00 : f32
    %80 = vector.broadcast %cst_28 : f32 to vector<8x128xf32>
    %81 = arith.addf %80, %79 : vector<8x128xf32>
    %82 = arith.divf %80, %81 : vector<8x128xf32>
    %83 = arith.mulf %74, %51 : vector<8x128xf32>
    %84 = arith.mulf %68, %76 : vector<8x128xf32>
    %85 = arith.addf %83, %84 : vector<8x128xf32>
    %86 = math.tanh %85 : vector<8x128xf32>
    %87 = arith.mulf %82, %86 : vector<8x128xf32>
    %88 = arith.index_cast %c1_i32 : i32 to index
    %c0_29 = arith.constant 0 : index
    %c0_30 = arith.constant 0 : index
    %89 = vector.load %arg6[%88, %c0_29, %c0_30] : memref<8x8x128xf32, #tpu.memory_space<vmem>>, vector<1x8x128xf32>
    %90 = vector.shape_cast %89 : vector<1x8x128xf32> to vector<8x128xf32>
    %91 = arith.subf %87, %48 : vector<8x128xf32>
    %92 = arith.mulf %90, %91 : vector<8x128xf32>
    %93 = arith.addf %48, %92 : vector<8x128xf32>
    %94 = arith.subf %85, %51 : vector<8x128xf32>
    %95 = arith.mulf %90, %94 : vector<8x128xf32>
    %96 = arith.addf %51, %95 : vector<8x128xf32>
    %97 = arith.mulf %90, %87 : vector<8x128xf32>
    %98 = arith.index_cast %c1_i32 : i32 to index
    %c0_31 = arith.constant 0 : index
    %c0_32 = arith.constant 0 : index
    %99 = vector.load %arg11[%98, %c0_31, %c0_32] : memref<8x8x128xf32, #tpu.memory_space<vmem>>, vector<1x8x128xf32>
    %100 = vector.shape_cast %99 : vector<1x8x128xf32> to vector<8x128xf32>
    %101 = vector.shape_cast %97 : vector<8x128xf32> to vector<1x8x128xf32>
    tpu.vector_store %arg11[%98, %c0_31, %c0_32], %101 {strides = array<i32>} : memref<8x8x128xf32, #tpu.memory_space<vmem>>, vector<1x8x128xf32>,
    %c2_i32 = arith.constant 2 : i32
    %102 = arith.index_cast %c2_i32 : i32 to index
    %c0_33 = arith.constant 0 : index
    %c0_34 = arith.constant 0 : index
    %103 = vector.load %arg10[%102, %c0_33, %c0_34] : memref<8x8x512xf32, #tpu.memory_space<vmem>>, vector<1x8x512xf32>
    %104 = vector.shape_cast %103 : vector<1x8x512xf32> to vector<8x512xf32>
    %105 = arith.truncf %93 : vector<8x128xf32> to vector<8x128xbf16>
    %cst_35 = arith.constant dense<0.000000e+00> : vector<8x512xf32>
    %106 = tpu.matmul %105, %10, %cst_35 {dimension_numbers = #tpu.dot_dimension_numbers<[1], [0], [0], [1], [0, 0, 1, 1], [], []>} : vector<8x128xbf16>, vector<128x512xbf16>, vector<8x512xf32> -> vector<8x512xf32>
    %107 = arith.addf %104, %106 : vector<8x512xf32>
    %108 = vector.extract_strided_slice %107 {offsets = [0, 0], sizes = [8, 128], strides = [1, 1]} : vector<8x512xf32> to vector<8x128xf32>
    %109 = arith.negf %108 : vector<8x128xf32>
    %110 = math.exp %109 : vector<8x128xf32>
    %cst_36 = arith.constant 1.000000e+00 : f32
    %111 = vector.broadcast %cst_36 : f32 to vector<8x128xf32>
    %112 = arith.addf %111, %110 : vector<8x128xf32>
    %113 = arith.divf %111, %112 : vector<8x128xf32>
    %114 = vector.extract_strided_slice %107 {offsets = [0, 128], sizes = [8, 128], strides = [1, 1]} : vector<8x512xf32> to vector<8x128xf32>
    %115 = arith.negf %114 : vector<8x128xf32>
    %116 = math.exp %115 : vector<8x128xf32>
    %cst_37 = arith.constant 1.000000e+00 : f32
    %117 = vector.broadcast %cst_37 : f32 to vector<8x128xf32>
    %118 = arith.addf %117, %116 : vector<8x128xf32>
    %119 = arith.divf %117, %118 : vector<8x128xf32>
    %120 = vector.extract_strided_slice %107 {offsets = [0, 256], sizes = [8, 128], strides = [1, 1]} : vector<8x512xf32> to vector<8x128xf32>
    %121 = math.tanh %120 : vector<8x128xf32>
    %122 = vector.extract_strided_slice %107 {offsets = [0, 384], sizes = [8, 128], strides = [1, 1]} : vector<8x512xf32> to vector<8x128xf32>
    %123 = arith.negf %122 : vector<8x128xf32>
    %124 = math.exp %123 : vector<8x128xf32>
    %cst_38 = arith.constant 1.000000e+00 : f32
    %125 = vector.broadcast %cst_38 : f32 to vector<8x128xf32>
    %126 = arith.addf %125, %124 : vector<8x128xf32>
    %127 = arith.divf %125, %126 : vector<8x128xf32>
    %128 = arith.mulf %119, %96 : vector<8x128xf32>
    %129 = arith.mulf %113, %121 : vector<8x128xf32>
    %130 = arith.addf %128, %129 : vector<8x128xf32>
    %131 = math.tanh %130 : vector<8x128xf32>
    %132 = arith.mulf %127, %131 : vector<8x128xf32>
    %133 = arith.index_cast %c2_i32 : i32 to index
    %c0_39 = arith.constant 0 : index
    %c0_40 = arith.constant 0 : index
    %134 = vector.load %arg6[%133, %c0_39, %c0_40] : memref<8x8x128xf32, #tpu.memory_space<vmem>>, vector<1x8x128xf32>
    %135 = vector.shape_cast %134 : vector<1x8x128xf32> to vector<8x128xf32>
    %136 = arith.subf %132, %93 : vector<8x128xf32>
    %137 = arith.mulf %135, %136 : vector<8x128xf32>
    %138 = arith.addf %93, %137 : vector<8x128xf32>
    %139 = arith.subf %130, %96 : vector<8x128xf32>
    %140 = arith.mulf %135, %139 : vector<8x128xf32>
    %141 = arith.addf %96, %140 : vector<8x128xf32>
    %142 = arith.mulf %135, %132 : vector<8x128xf32>
    %143 = arith.index_cast %c2_i32 : i32 to index
    %c0_41 = arith.constant 0 : index
    %c0_42 = arith.constant 0 : index
    %144 = vector.load %arg11[%143, %c0_41, %c0_42] : memref<8x8x128xf32, #tpu.memory_space<vmem>>, vector<1x8x128xf32>
    %145 = vector.shape_cast %144 : vector<1x8x128xf32> to vector<8x128xf32>
    %146 = vector.shape_cast %142 : vector<8x128xf32> to vector<1x8x128xf32>
    tpu.vector_store %arg11[%143, %c0_41, %c0_42], %146 {strides = array<i32>} : memref<8x8x128xf32, #tpu.memory_space<vmem>>, vector<1x8x128xf32>,
    %c3_i32 = arith.constant 3 : i32
    %147 = arith.index_cast %c3_i32 : i32 to index
    %c0_43 = arith.constant 0 : index
    %c0_44 = arith.constant 0 : index
    %148 = vector.load %arg10[%147, %c0_43, %c0_44] : memref<8x8x512xf32, #tpu.memory_space<vmem>>, vector<1x8x512xf32>
    %149 = vector.shape_cast %148 : vector<1x8x512xf32> to vector<8x512xf32>
    %150 = arith.truncf %138 : vector<8x128xf32> to vector<8x128xbf16>
    %cst_45 = arith.constant dense<0.000000e+00> : vector<8x512xf32>
    %151 = tpu.matmul %150, %10, %cst_45 {dimension_numbers = #tpu.dot_dimension_numbers<[1], [0], [0], [1], [0, 0, 1, 1], [], []>} : vector<8x128xbf16>, vector<128x512xbf16>, vector<8x512xf32> -> vector<8x512xf32>
    %152 = arith.addf %149, %151 : vector<8x512xf32>
    %153 = vector.extract_strided_slice %152 {offsets = [0, 0], sizes = [8, 128], strides = [1, 1]} : vector<8x512xf32> to vector<8x128xf32>
    %154 = arith.negf %153 : vector<8x128xf32>
    %155 = math.exp %154 : vector<8x128xf32>
    %cst_46 = arith.constant 1.000000e+00 : f32
    %156 = vector.broadcast %cst_46 : f32 to vector<8x128xf32>
    %157 = arith.addf %156, %155 : vector<8x128xf32>
    %158 = arith.divf %156, %157 : vector<8x128xf32>
    %159 = vector.extract_strided_slice %152 {offsets = [0, 128], sizes = [8, 128], strides = [1, 1]} : vector<8x512xf32> to vector<8x128xf32>
    %160 = arith.negf %159 : vector<8x128xf32>
    %161 = math.exp %160 : vector<8x128xf32>
    %cst_47 = arith.constant 1.000000e+00 : f32
    %162 = vector.broadcast %cst_47 : f32 to vector<8x128xf32>
    %163 = arith.addf %162, %161 : vector<8x128xf32>
    %164 = arith.divf %162, %163 : vector<8x128xf32>
    %165 = vector.extract_strided_slice %152 {offsets = [0, 256], sizes = [8, 128], strides = [1, 1]} : vector<8x512xf32> to vector<8x128xf32>
    %166 = math.tanh %165 : vector<8x128xf32>
    %167 = vector.extract_strided_slice %152 {offsets = [0, 384], sizes = [8, 128], strides = [1, 1]} : vector<8x512xf32> to vector<8x128xf32>
    %168 = arith.negf %167 : vector<8x128xf32>
    %169 = math.exp %168 : vector<8x128xf32>
    %cst_48 = arith.constant 1.000000e+00 : f32
    %170 = vector.broadcast %cst_48 : f32 to vector<8x128xf32>
    %171 = arith.addf %170, %169 : vector<8x128xf32>
    %172 = arith.divf %170, %171 : vector<8x128xf32>
    %173 = arith.mulf %164, %141 : vector<8x128xf32>
    %174 = arith.mulf %158, %166 : vector<8x128xf32>
    %175 = arith.addf %173, %174 : vector<8x128xf32>
    %176 = math.tanh %175 : vector<8x128xf32>
    %177 = arith.mulf %172, %176 : vector<8x128xf32>
    %178 = arith.index_cast %c3_i32 : i32 to index
    %c0_49 = arith.constant 0 : index
    %c0_50 = arith.constant 0 : index
    %179 = vector.load %arg6[%178, %c0_49, %c0_50] : memref<8x8x128xf32, #tpu.memory_space<vmem>>, vector<1x8x128xf32>
    %180 = vector.shape_cast %179 : vector<1x8x128xf32> to vector<8x128xf32>
    %181 = arith.subf %177, %138 : vector<8x128xf32>
    %182 = arith.mulf %180, %181 : vector<8x128xf32>
    %183 = arith.addf %138, %182 : vector<8x128xf32>
    %184 = arith.subf %175, %141 : vector<8x128xf32>
    %185 = arith.mulf %180, %184 : vector<8x128xf32>
    %186 = arith.addf %141, %185 : vector<8x128xf32>
    %187 = arith.mulf %180, %177 : vector<8x128xf32>
    %188 = arith.index_cast %c3_i32 : i32 to index
    %c0_51 = arith.constant 0 : index
    %c0_52 = arith.constant 0 : index
    %189 = vector.load %arg11[%188, %c0_51, %c0_52] : memref<8x8x128xf32, #tpu.memory_space<vmem>>, vector<1x8x128xf32>
    %190 = vector.shape_cast %189 : vector<1x8x128xf32> to vector<8x128xf32>
    %191 = vector.shape_cast %187 : vector<8x128xf32> to vector<1x8x128xf32>
    tpu.vector_store %arg11[%188, %c0_51, %c0_52], %191 {strides = array<i32>} : memref<8x8x128xf32, #tpu.memory_space<vmem>>, vector<1x8x128xf32>,
    %c4_i32 = arith.constant 4 : i32
    %192 = arith.index_cast %c4_i32 : i32 to index
    %c0_53 = arith.constant 0 : index
    %c0_54 = arith.constant 0 : index
    %193 = vector.load %arg10[%192, %c0_53, %c0_54] : memref<8x8x512xf32, #tpu.memory_space<vmem>>, vector<1x8x512xf32>
    %194 = vector.shape_cast %193 : vector<1x8x512xf32> to vector<8x512xf32>
    %195 = arith.truncf %183 : vector<8x128xf32> to vector<8x128xbf16>
    %cst_55 = arith.constant dense<0.000000e+00> : vector<8x512xf32>
    %196 = tpu.matmul %195, %10, %cst_55 {dimension_numbers = #tpu.dot_dimension_numbers<[1], [0], [0], [1], [0, 0, 1, 1], [], []>} : vector<8x128xbf16>, vector<128x512xbf16>, vector<8x512xf32> -> vector<8x512xf32>
    %197 = arith.addf %194, %196 : vector<8x512xf32>
    %198 = vector.extract_strided_slice %197 {offsets = [0, 0], sizes = [8, 128], strides = [1, 1]} : vector<8x512xf32> to vector<8x128xf32>
    %199 = arith.negf %198 : vector<8x128xf32>
    %200 = math.exp %199 : vector<8x128xf32>
    %cst_56 = arith.constant 1.000000e+00 : f32
    %201 = vector.broadcast %cst_56 : f32 to vector<8x128xf32>
    %202 = arith.addf %201, %200 : vector<8x128xf32>
    %203 = arith.divf %201, %202 : vector<8x128xf32>
    %204 = vector.extract_strided_slice %197 {offsets = [0, 128], sizes = [8, 128], strides = [1, 1]} : vector<8x512xf32> to vector<8x128xf32>
    %205 = arith.negf %204 : vector<8x128xf32>
    %206 = math.exp %205 : vector<8x128xf32>
    %cst_57 = arith.constant 1.000000e+00 : f32
    %207 = vector.broadcast %cst_57 : f32 to vector<8x128xf32>
    %208 = arith.addf %207, %206 : vector<8x128xf32>
    %209 = arith.divf %207, %208 : vector<8x128xf32>
    %210 = vector.extract_strided_slice %197 {offsets = [0, 256], sizes = [8, 128], strides = [1, 1]} : vector<8x512xf32> to vector<8x128xf32>
    %211 = math.tanh %210 : vector<8x128xf32>
    %212 = vector.extract_strided_slice %197 {offsets = [0, 384], sizes = [8, 128], strides = [1, 1]} : vector<8x512xf32> to vector<8x128xf32>
    %213 = arith.negf %212 : vector<8x128xf32>
    %214 = math.exp %213 : vector<8x128xf32>
    %cst_58 = arith.constant 1.000000e+00 : f32
    %215 = vector.broadcast %cst_58 : f32 to vector<8x128xf32>
    %216 = arith.addf %215, %214 : vector<8x128xf32>
    %217 = arith.divf %215, %216 : vector<8x128xf32>
    %218 = arith.mulf %209, %186 : vector<8x128xf32>
    %219 = arith.mulf %203, %211 : vector<8x128xf32>
    %220 = arith.addf %218, %219 : vector<8x128xf32>
    %221 = math.tanh %220 : vector<8x128xf32>
    %222 = arith.mulf %217, %221 : vector<8x128xf32>
    %223 = arith.index_cast %c4_i32 : i32 to index
    %c0_59 = arith.constant 0 : index
    %c0_60 = arith.constant 0 : index
    %224 = vector.load %arg6[%223, %c0_59, %c0_60] : memref<8x8x128xf32, #tpu.memory_space<vmem>>, vector<1x8x128xf32>
    %225 = vector.shape_cast %224 : vector<1x8x128xf32> to vector<8x128xf32>
    %226 = arith.subf %222, %183 : vector<8x128xf32>
    %227 = arith.mulf %225, %226 : vector<8x128xf32>
    %228 = arith.addf %183, %227 : vector<8x128xf32>
    %229 = arith.subf %220, %186 : vector<8x128xf32>
    %230 = arith.mulf %225, %229 : vector<8x128xf32>
    %231 = arith.addf %186, %230 : vector<8x128xf32>
    %232 = arith.mulf %225, %222 : vector<8x128xf32>
    %233 = arith.index_cast %c4_i32 : i32 to index
    %c0_61 = arith.constant 0 : index
    %c0_62 = arith.constant 0 : index
    %234 = vector.load %arg11[%233, %c0_61, %c0_62] : memref<8x8x128xf32, #tpu.memory_space<vmem>>, vector<1x8x128xf32>
    %235 = vector.shape_cast %234 : vector<1x8x128xf32> to vector<8x128xf32>
    %236 = vector.shape_cast %232 : vector<8x128xf32> to vector<1x8x128xf32>
    tpu.vector_store %arg11[%233, %c0_61, %c0_62], %236 {strides = array<i32>} : memref<8x8x128xf32, #tpu.memory_space<vmem>>, vector<1x8x128xf32>,
    %c5_i32 = arith.constant 5 : i32
    %237 = arith.index_cast %c5_i32 : i32 to index
    %c0_63 = arith.constant 0 : index
    %c0_64 = arith.constant 0 : index
    %238 = vector.load %arg10[%237, %c0_63, %c0_64] : memref<8x8x512xf32, #tpu.memory_space<vmem>>, vector<1x8x512xf32>
    %239 = vector.shape_cast %238 : vector<1x8x512xf32> to vector<8x512xf32>
    %240 = arith.truncf %228 : vector<8x128xf32> to vector<8x128xbf16>
    %cst_65 = arith.constant dense<0.000000e+00> : vector<8x512xf32>
    %241 = tpu.matmul %240, %10, %cst_65 {dimension_numbers = #tpu.dot_dimension_numbers<[1], [0], [0], [1], [0, 0, 1, 1], [], []>} : vector<8x128xbf16>, vector<128x512xbf16>, vector<8x512xf32> -> vector<8x512xf32>
    %242 = arith.addf %239, %241 : vector<8x512xf32>
    %243 = vector.extract_strided_slice %242 {offsets = [0, 0], sizes = [8, 128], strides = [1, 1]} : vector<8x512xf32> to vector<8x128xf32>
    %244 = arith.negf %243 : vector<8x128xf32>
    %245 = math.exp %244 : vector<8x128xf32>
    %cst_66 = arith.constant 1.000000e+00 : f32
    %246 = vector.broadcast %cst_66 : f32 to vector<8x128xf32>
    %247 = arith.addf %246, %245 : vector<8x128xf32>
    %248 = arith.divf %246, %247 : vector<8x128xf32>
    %249 = vector.extract_strided_slice %242 {offsets = [0, 128], sizes = [8, 128], strides = [1, 1]} : vector<8x512xf32> to vector<8x128xf32>
    %250 = arith.negf %249 : vector<8x128xf32>
    %251 = math.exp %250 : vector<8x128xf32>
    %cst_67 = arith.constant 1.000000e+00 : f32
    %252 = vector.broadcast %cst_67 : f32 to vector<8x128xf32>
    %253 = arith.addf %252, %251 : vector<8x128xf32>
    %254 = arith.divf %252, %253 : vector<8x128xf32>
    %255 = vector.extract_strided_slice %242 {offsets = [0, 256], sizes = [8, 128], strides = [1, 1]} : vector<8x512xf32> to vector<8x128xf32>
    %256 = math.tanh %255 : vector<8x128xf32>
    %257 = vector.extract_strided_slice %242 {offsets = [0, 384], sizes = [8, 128], strides = [1, 1]} : vector<8x512xf32> to vector<8x128xf32>
    %258 = arith.negf %257 : vector<8x128xf32>
    %259 = math.exp %258 : vector<8x128xf32>
    %cst_68 = arith.constant 1.000000e+00 : f32
    %260 = vector.broadcast %cst_68 : f32 to vector<8x128xf32>
    %261 = arith.addf %260, %259 : vector<8x128xf32>
    %262 = arith.divf %260, %261 : vector<8x128xf32>
    %263 = arith.mulf %254, %231 : vector<8x128xf32>
    %264 = arith.mulf %248, %256 : vector<8x128xf32>
    %265 = arith.addf %263, %264 : vector<8x128xf32>
    %266 = math.tanh %265 : vector<8x128xf32>
    %267 = arith.mulf %262, %266 : vector<8x128xf32>
    %268 = arith.index_cast %c5_i32 : i32 to index
    %c0_69 = arith.constant 0 : index
    %c0_70 = arith.constant 0 : index
    %269 = vector.load %arg6[%268, %c0_69, %c0_70] : memref<8x8x128xf32, #tpu.memory_space<vmem>>, vector<1x8x128xf32>
    %270 = vector.shape_cast %269 : vector<1x8x128xf32> to vector<8x128xf32>
    %271 = arith.subf %267, %228 : vector<8x128xf32>
    %272 = arith.mulf %270, %271 : vector<8x128xf32>
    %273 = arith.addf %228, %272 : vector<8x128xf32>
    %274 = arith.subf %265, %231 : vector<8x128xf32>
    %275 = arith.mulf %270, %274 : vector<8x128xf32>
    %276 = arith.addf %231, %275 : vector<8x128xf32>
    %277 = arith.mulf %270, %267 : vector<8x128xf32>
    %278 = arith.index_cast %c5_i32 : i32 to index
    %c0_71 = arith.constant 0 : index
    %c0_72 = arith.constant 0 : index
    %279 = vector.load %arg11[%278, %c0_71, %c0_72] : memref<8x8x128xf32, #tpu.memory_space<vmem>>, vector<1x8x128xf32>
    %280 = vector.shape_cast %279 : vector<1x8x128xf32> to vector<8x128xf32>
    %281 = vector.shape_cast %277 : vector<8x128xf32> to vector<1x8x128xf32>
    tpu.vector_store %arg11[%278, %c0_71, %c0_72], %281 {strides = array<i32>} : memref<8x8x128xf32, #tpu.memory_space<vmem>>, vector<1x8x128xf32>,
    %c6_i32 = arith.constant 6 : i32
    %282 = arith.index_cast %c6_i32 : i32 to index
    %c0_73 = arith.constant 0 : index
    %c0_74 = arith.constant 0 : index
    %283 = vector.load %arg10[%282, %c0_73, %c0_74] : memref<8x8x512xf32, #tpu.memory_space<vmem>>, vector<1x8x512xf32>
    %284 = vector.shape_cast %283 : vector<1x8x512xf32> to vector<8x512xf32>
    %285 = arith.truncf %273 : vector<8x128xf32> to vector<8x128xbf16>
    %cst_75 = arith.constant dense<0.000000e+00> : vector<8x512xf32>
    %286 = tpu.matmul %285, %10, %cst_75 {dimension_numbers = #tpu.dot_dimension_numbers<[1], [0], [0], [1], [0, 0, 1, 1], [], []>} : vector<8x128xbf16>, vector<128x512xbf16>, vector<8x512xf32> -> vector<8x512xf32>
    %287 = arith.addf %284, %286 : vector<8x512xf32>
    %288 = vector.extract_strided_slice %287 {offsets = [0, 0], sizes = [8, 128], strides = [1, 1]} : vector<8x512xf32> to vector<8x128xf32>
    %289 = arith.negf %288 : vector<8x128xf32>
    %290 = math.exp %289 : vector<8x128xf32>
    %cst_76 = arith.constant 1.000000e+00 : f32
    %291 = vector.broadcast %cst_76 : f32 to vector<8x128xf32>
    %292 = arith.addf %291, %290 : vector<8x128xf32>
    %293 = arith.divf %291, %292 : vector<8x128xf32>
    %294 = vector.extract_strided_slice %287 {offsets = [0, 128], sizes = [8, 128], strides = [1, 1]} : vector<8x512xf32> to vector<8x128xf32>
    %295 = arith.negf %294 : vector<8x128xf32>
    %296 = math.exp %295 : vector<8x128xf32>
    %cst_77 = arith.constant 1.000000e+00 : f32
    %297 = vector.broadcast %cst_77 : f32 to vector<8x128xf32>
    %298 = arith.addf %297, %296 : vector<8x128xf32>
    %299 = arith.divf %297, %298 : vector<8x128xf32>
    %300 = vector.extract_strided_slice %287 {offsets = [0, 256], sizes = [8, 128], strides = [1, 1]} : vector<8x512xf32> to vector<8x128xf32>
    %301 = math.tanh %300 : vector<8x128xf32>
    %302 = vector.extract_strided_slice %287 {offsets = [0, 384], sizes = [8, 128], strides = [1, 1]} : vector<8x512xf32> to vector<8x128xf32>
    %303 = arith.negf %302 : vector<8x128xf32>
    %304 = math.exp %303 : vector<8x128xf32>
    %cst_78 = arith.constant 1.000000e+00 : f32
    %305 = vector.broadcast %cst_78 : f32 to vector<8x128xf32>
    %306 = arith.addf %305, %304 : vector<8x128xf32>
    %307 = arith.divf %305, %306 : vector<8x128xf32>
    %308 = arith.mulf %299, %276 : vector<8x128xf32>
    %309 = arith.mulf %293, %301 : vector<8x128xf32>
    %310 = arith.addf %308, %309 : vector<8x128xf32>
    %311 = math.tanh %310 : vector<8x128xf32>
    %312 = arith.mulf %307, %311 : vector<8x128xf32>
    %313 = arith.index_cast %c6_i32 : i32 to index
    %c0_79 = arith.constant 0 : index
    %c0_80 = arith.constant 0 : index
    %314 = vector.load %arg6[%313, %c0_79, %c0_80] : memref<8x8x128xf32, #tpu.memory_space<vmem>>, vector<1x8x128xf32>
    %315 = vector.shape_cast %314 : vector<1x8x128xf32> to vector<8x128xf32>
    %316 = arith.subf %312, %273 : vector<8x128xf32>
    %317 = arith.mulf %315, %316 : vector<8x128xf32>
    %318 = arith.addf %273, %317 : vector<8x128xf32>
    %319 = arith.subf %310, %276 : vector<8x128xf32>
    %320 = arith.mulf %315, %319 : vector<8x128xf32>
    %321 = arith.addf %276, %320 : vector<8x128xf32>
    %322 = arith.mulf %315, %312 : vector<8x128xf32>
    %323 = arith.index_cast %c6_i32 : i32 to index
    %c0_81 = arith.constant 0 : index
    %c0_82 = arith.constant 0 : index
    %324 = vector.load %arg11[%323, %c0_81, %c0_82] : memref<8x8x128xf32, #tpu.memory_space<vmem>>, vector<1x8x128xf32>
    %325 = vector.shape_cast %324 : vector<1x8x128xf32> to vector<8x128xf32>
    %326 = vector.shape_cast %322 : vector<8x128xf32> to vector<1x8x128xf32>
    tpu.vector_store %arg11[%323, %c0_81, %c0_82], %326 {strides = array<i32>} : memref<8x8x128xf32, #tpu.memory_space<vmem>>, vector<1x8x128xf32>,
    %c7_i32 = arith.constant 7 : i32
    %327 = arith.index_cast %c7_i32 : i32 to index
    %c0_83 = arith.constant 0 : index
    %c0_84 = arith.constant 0 : index
    %328 = vector.load %arg10[%327, %c0_83, %c0_84] : memref<8x8x512xf32, #tpu.memory_space<vmem>>, vector<1x8x512xf32>
    %329 = vector.shape_cast %328 : vector<1x8x512xf32> to vector<8x512xf32>
    %330 = arith.truncf %318 : vector<8x128xf32> to vector<8x128xbf16>
    %cst_85 = arith.constant dense<0.000000e+00> : vector<8x512xf32>
    %331 = tpu.matmul %330, %10, %cst_85 {dimension_numbers = #tpu.dot_dimension_numbers<[1], [0], [0], [1], [0, 0, 1, 1], [], []>} : vector<8x128xbf16>, vector<128x512xbf16>, vector<8x512xf32> -> vector<8x512xf32>
    %332 = arith.addf %329, %331 : vector<8x512xf32>
    %333 = vector.extract_strided_slice %332 {offsets = [0, 0], sizes = [8, 128], strides = [1, 1]} : vector<8x512xf32> to vector<8x128xf32>
    %334 = arith.negf %333 : vector<8x128xf32>
    %335 = math.exp %334 : vector<8x128xf32>
    %cst_86 = arith.constant 1.000000e+00 : f32
    %336 = vector.broadcast %cst_86 : f32 to vector<8x128xf32>
    %337 = arith.addf %336, %335 : vector<8x128xf32>
    %338 = arith.divf %336, %337 : vector<8x128xf32>
    %339 = vector.extract_strided_slice %332 {offsets = [0, 128], sizes = [8, 128], strides = [1, 1]} : vector<8x512xf32> to vector<8x128xf32>
    %340 = arith.negf %339 : vector<8x128xf32>
    %341 = math.exp %340 : vector<8x128xf32>
    %cst_87 = arith.constant 1.000000e+00 : f32
    %342 = vector.broadcast %cst_87 : f32 to vector<8x128xf32>
    %343 = arith.addf %342, %341 : vector<8x128xf32>
    %344 = arith.divf %342, %343 : vector<8x128xf32>
    %345 = vector.extract_strided_slice %332 {offsets = [0, 256], sizes = [8, 128], strides = [1, 1]} : vector<8x512xf32> to vector<8x128xf32>
    %346 = math.tanh %345 : vector<8x128xf32>
    %347 = vector.extract_strided_slice %332 {offsets = [0, 384], sizes = [8, 128], strides = [1, 1]} : vector<8x512xf32> to vector<8x128xf32>
    %348 = arith.negf %347 : vector<8x128xf32>
    %349 = math.exp %348 : vector<8x128xf32>
    %cst_88 = arith.constant 1.000000e+00 : f32
    %350 = vector.broadcast %cst_88 : f32 to vector<8x128xf32>
    %351 = arith.addf %350, %349 : vector<8x128xf32>
    %352 = arith.divf %350, %351 : vector<8x128xf32>
    %353 = arith.mulf %344, %321 : vector<8x128xf32>
    %354 = arith.mulf %338, %346 : vector<8x128xf32>
    %355 = arith.addf %353, %354 : vector<8x128xf32>
    %356 = math.tanh %355 : vector<8x128xf32>
    %357 = arith.mulf %352, %356 : vector<8x128xf32>
    %358 = arith.index_cast %c7_i32 : i32 to index
    %c0_89 = arith.constant 0 : index
    %c0_90 = arith.constant 0 : index
    %359 = vector.load %arg6[%358, %c0_89, %c0_90] : memref<8x8x128xf32, #tpu.memory_space<vmem>>, vector<1x8x128xf32>
    %360 = vector.shape_cast %359 : vector<1x8x128xf32> to vector<8x128xf32>
    %361 = arith.subf %357, %318 : vector<8x128xf32>
    %362 = arith.mulf %360, %361 : vector<8x128xf32>
    %363 = arith.addf %318, %362 : vector<8x128xf32>
    %364 = arith.subf %355, %321 : vector<8x128xf32>
    %365 = arith.mulf %360, %364 : vector<8x128xf32>
    %366 = arith.addf %321, %365 : vector<8x128xf32>
    %367 = arith.mulf %360, %357 : vector<8x128xf32>
    %368 = arith.index_cast %c7_i32 : i32 to index
    %c0_91 = arith.constant 0 : index
    %c0_92 = arith.constant 0 : index
    %369 = vector.load %arg11[%368, %c0_91, %c0_92] : memref<8x8x128xf32, #tpu.memory_space<vmem>>, vector<1x8x128xf32>
    %370 = vector.shape_cast %369 : vector<1x8x128xf32> to vector<8x128xf32>
    %371 = vector.shape_cast %367 : vector<8x128xf32> to vector<1x8x128xf32>
    tpu.vector_store %arg11[%368, %c0_91, %c0_92], %371 {strides = array<i32>} : memref<8x8x128xf32, #tpu.memory_space<vmem>>, vector<1x8x128xf32>,
    %c8_i32 = arith.constant 8 : i32
    %c0_93 = arith.constant 0 : index
    %c0_94 = arith.constant 0 : index
    %c0_95 = arith.constant 0 : index
    %372 = vector.load %arg8[%c0_93, %c0_94, %c0_95] : memref<2x8x128xf32, #tpu.memory_space<vmem>>, vector<1x8x128xf32>
    %373 = vector.shape_cast %372 : vector<1x8x128xf32> to vector<8x128xf32>
    %374 = vector.shape_cast %363 : vector<8x128xf32> to vector<1x8x128xf32>
    tpu.vector_store %arg8[%c0_93, %c0_94, %c0_95], %374 {strides = array<i32>} : memref<2x8x128xf32, #tpu.memory_space<vmem>>, vector<1x8x128xf32>,
    %c0_96 = arith.constant 0 : index
    %c0_97 = arith.constant 0 : index
    %c0_98 = arith.constant 0 : index
    %375 = vector.load %arg9[%c0_96, %c0_97, %c0_98] : memref<2x8x128xf32, #tpu.memory_space<vmem>>, vector<1x8x128xf32>
    %376 = vector.shape_cast %375 : vector<1x8x128xf32> to vector<8x128xf32>
    %377 = vector.shape_cast %366 : vector<8x128xf32> to vector<1x8x128xf32>
    tpu.vector_store %arg9[%c0_96, %c0_97, %c0_98], %377 {strides = array<i32>} : memref<2x8x128xf32, #tpu.memory_space<vmem>>, vector<1x8x128xf32>,
    %c0_99 = arith.constant 0 : index
    %c0_100 = arith.constant 0 : index
    %c0_101 = arith.constant 0 : index
    %378 = vector.load %arg11[%c0_99, %c0_100, %c0_101] : memref<8x8x128xf32, #tpu.memory_space<vmem>>, vector<8x8x128xf32>
    %379 = vector.shape_cast %378 : vector<8x8x128xf32> to vector<64x128xf32>
    %380 = arith.truncf %379 : vector<64x128xf32> to vector<64x128xbf16>
    %c0_102 = arith.constant 0 : index
    %c0_103 = arith.constant 0 : index
    %c0_104 = arith.constant 0 : index
    %381 = vector.load %arg3[%c0_102, %c0_103, %c0_104] : memref<1x128x512xbf16, #tpu.memory_space<vmem>>, vector<1x128x512xbf16>
    %382 = vector.shape_cast %381 : vector<1x128x512xbf16> to vector<128x512xbf16>
    %cst_105 = arith.constant dense<0.000000e+00> : vector<64x512xf32>
    %383 = tpu.matmul %380, %382, %cst_105 {dimension_numbers = #tpu.dot_dimension_numbers<[1], [0], [0], [1], [0, 0, 1, 1], [], []>} : vector<64x128xbf16>, vector<128x512xbf16>, vector<64x512xf32> -> vector<64x512xf32>
    %c0_106 = arith.constant 0 : index
    %c0_107 = arith.constant 0 : index
    %c0_108 = arith.constant 0 : index
    %384 = vector.load %arg4[%c0_106, %c0_107, %c0_108] : memref<1x1x512xf32, #tpu.memory_space<vmem>>, vector<1x1x512xf32>
    %385 = vector.shape_cast %384 : vector<1x1x512xf32> to vector<1x512xf32>
    %386 = vector.broadcast %385 : vector<1x512xf32> to vector<64x512xf32>
    %387 = arith.addf %383, %386 : vector<64x512xf32>
    %388 = vector.shape_cast %387 : vector<64x512xf32> to vector<8x8x512xf32>
    %c0_109 = arith.constant 0 : index
    %c0_110 = arith.constant 0 : index
    %c0_111 = arith.constant 0 : index
    %389 = vector.load %arg10[%c0_109, %c0_110, %c0_111] : memref<8x8x512xf32, #tpu.memory_space<vmem>>, vector<8x8x512xf32>
    tpu.vector_store %arg10[%c0_109, %c0_110, %c0_111], %388 {strides = array<i32>} : memref<8x8x512xf32, #tpu.memory_space<vmem>>, vector<8x8x512xf32>,
    %c1 = arith.constant 1 : index
    %c0_112 = arith.constant 0 : index
    %c0_113 = arith.constant 0 : index
    %390 = vector.load %arg5[%c1, %c0_112, %c0_113] : memref<2x128x512xbf16, #tpu.memory_space<vmem>>, vector<1x128x512xbf16>
    %391 = vector.shape_cast %390 : vector<1x128x512xbf16> to vector<128x512xbf16>
    %cst_114 = arith.constant 0.000000e+00 : f32
    %392 = vector.broadcast %cst_114 : f32 to vector<8x128xf32>
    %c0_i32_115 = arith.constant 0 : i32
    %393 = arith.index_cast %c0_i32_115 : i32 to index
    %c0_116 = arith.constant 0 : index
    %c0_117 = arith.constant 0 : index
    %394 = vector.load %arg10[%393, %c0_116, %c0_117] : memref<8x8x512xf32, #tpu.memory_space<vmem>>, vector<1x8x512xf32>
    %395 = vector.shape_cast %394 : vector<1x8x512xf32> to vector<8x512xf32>
    %396 = arith.truncf %392 : vector<8x128xf32> to vector<8x128xbf16>
    %cst_118 = arith.constant dense<0.000000e+00> : vector<8x512xf32>
    %397 = tpu.matmul %396, %391, %cst_118 {dimension_numbers = #tpu.dot_dimension_numbers<[1], [0], [0], [1], [0, 0, 1, 1], [], []>} : vector<8x128xbf16>, vector<128x512xbf16>, vector<8x512xf32> -> vector<8x512xf32>
    %398 = arith.addf %395, %397 : vector<8x512xf32>
    %399 = vector.extract_strided_slice %398 {offsets = [0, 0], sizes = [8, 128], strides = [1, 1]} : vector<8x512xf32> to vector<8x128xf32>
    %400 = arith.negf %399 : vector<8x128xf32>
    %401 = math.exp %400 : vector<8x128xf32>
    %cst_119 = arith.constant 1.000000e+00 : f32
    %402 = vector.broadcast %cst_119 : f32 to vector<8x128xf32>
    %403 = arith.addf %402, %401 : vector<8x128xf32>
    %404 = arith.divf %402, %403 : vector<8x128xf32>
    %405 = vector.extract_strided_slice %398 {offsets = [0, 128], sizes = [8, 128], strides = [1, 1]} : vector<8x512xf32> to vector<8x128xf32>
    %406 = arith.negf %405 : vector<8x128xf32>
    %407 = math.exp %406 : vector<8x128xf32>
    %cst_120 = arith.constant 1.000000e+00 : f32
    %408 = vector.broadcast %cst_120 : f32 to vector<8x128xf32>
    %409 = arith.addf %408, %407 : vector<8x128xf32>
    %410 = arith.divf %408, %409 : vector<8x128xf32>
    %411 = vector.extract_strided_slice %398 {offsets = [0, 256], sizes = [8, 128], strides = [1, 1]} : vector<8x512xf32> to vector<8x128xf32>
    %412 = math.tanh %411 : vector<8x128xf32>
    %413 = vector.extract_strided_slice %398 {offsets = [0, 384], sizes = [8, 128], strides = [1, 1]} : vector<8x512xf32> to vector<8x128xf32>
    %414 = arith.negf %413 : vector<8x128xf32>
    %415 = math.exp %414 : vector<8x128xf32>
    %cst_121 = arith.constant 1.000000e+00 : f32
    %416 = vector.broadcast %cst_121 : f32 to vector<8x128xf32>
    %417 = arith.addf %416, %415 : vector<8x128xf32>
    %418 = arith.divf %416, %417 : vector<8x128xf32>
    %419 = arith.mulf %410, %392 : vector<8x128xf32>
    %420 = arith.mulf %404, %412 : vector<8x128xf32>
    %421 = arith.addf %419, %420 : vector<8x128xf32>
    %422 = math.tanh %421 : vector<8x128xf32>
    %423 = arith.mulf %418, %422 : vector<8x128xf32>
    %424 = arith.index_cast %c0_i32_115 : i32 to index
    %c0_122 = arith.constant 0 : index
    %c0_123 = arith.constant 0 : index
    %425 = vector.load %arg6[%424, %c0_122, %c0_123] : memref<8x8x128xf32, #tpu.memory_space<vmem>>, vector<1x8x128xf32>
    %426 = vector.shape_cast %425 : vector<1x8x128xf32> to vector<8x128xf32>
    %427 = arith.subf %423, %392 : vector<8x128xf32>
    %428 = arith.mulf %426, %427 : vector<8x128xf32>
    %429 = arith.addf %392, %428 : vector<8x128xf32>
    %430 = arith.subf %421, %392 : vector<8x128xf32>
    %431 = arith.mulf %426, %430 : vector<8x128xf32>
    %432 = arith.addf %392, %431 : vector<8x128xf32>
    %433 = arith.mulf %426, %423 : vector<8x128xf32>
    %434 = arith.index_cast %c0_i32_115 : i32 to index
    %c0_124 = arith.constant 0 : index
    %c0_125 = arith.constant 0 : index
    %435 = vector.load %arg7[%434, %c0_124, %c0_125] : memref<8x8x128xf32, #tpu.memory_space<vmem>>, vector<1x8x128xf32>
    %436 = vector.shape_cast %435 : vector<1x8x128xf32> to vector<8x128xf32>
    %437 = vector.shape_cast %433 : vector<8x128xf32> to vector<1x8x128xf32>
    tpu.vector_store %arg7[%434, %c0_124, %c0_125], %437 {strides = array<i32>} : memref<8x8x128xf32, #tpu.memory_space<vmem>>, vector<1x8x128xf32>,
    %c1_i32_126 = arith.constant 1 : i32
    %438 = arith.index_cast %c1_i32_126 : i32 to index
    %c0_127 = arith.constant 0 : index
    %c0_128 = arith.constant 0 : index
    %439 = vector.load %arg10[%438, %c0_127, %c0_128] : memref<8x8x512xf32, #tpu.memory_space<vmem>>, vector<1x8x512xf32>
    %440 = vector.shape_cast %439 : vector<1x8x512xf32> to vector<8x512xf32>
    %441 = arith.truncf %429 : vector<8x128xf32> to vector<8x128xbf16>
    %cst_129 = arith.constant dense<0.000000e+00> : vector<8x512xf32>
    %442 = tpu.matmul %441, %391, %cst_129 {dimension_numbers = #tpu.dot_dimension_numbers<[1], [0], [0], [1], [0, 0, 1, 1], [], []>} : vector<8x128xbf16>, vector<128x512xbf16>, vector<8x512xf32> -> vector<8x512xf32>
    %443 = arith.addf %440, %442 : vector<8x512xf32>
    %444 = vector.extract_strided_slice %443 {offsets = [0, 0], sizes = [8, 128], strides = [1, 1]} : vector<8x512xf32> to vector<8x128xf32>
    %445 = arith.negf %444 : vector<8x128xf32>
    %446 = math.exp %445 : vector<8x128xf32>
    %cst_130 = arith.constant 1.000000e+00 : f32
    %447 = vector.broadcast %cst_130 : f32 to vector<8x128xf32>
    %448 = arith.addf %447, %446 : vector<8x128xf32>
    %449 = arith.divf %447, %448 : vector<8x128xf32>
    %450 = vector.extract_strided_slice %443 {offsets = [0, 128], sizes = [8, 128], strides = [1, 1]} : vector<8x512xf32> to vector<8x128xf32>
    %451 = arith.negf %450 : vector<8x128xf32>
    %452 = math.exp %451 : vector<8x128xf32>
    %cst_131 = arith.constant 1.000000e+00 : f32
    %453 = vector.broadcast %cst_131 : f32 to vector<8x128xf32>
    %454 = arith.addf %453, %452 : vector<8x128xf32>
    %455 = arith.divf %453, %454 : vector<8x128xf32>
    %456 = vector.extract_strided_slice %443 {offsets = [0, 256], sizes = [8, 128], strides = [1, 1]} : vector<8x512xf32> to vector<8x128xf32>
    %457 = math.tanh %456 : vector<8x128xf32>
    %458 = vector.extract_strided_slice %443 {offsets = [0, 384], sizes = [8, 128], strides = [1, 1]} : vector<8x512xf32> to vector<8x128xf32>
    %459 = arith.negf %458 : vector<8x128xf32>
    %460 = math.exp %459 : vector<8x128xf32>
    %cst_132 = arith.constant 1.000000e+00 : f32
    %461 = vector.broadcast %cst_132 : f32 to vector<8x128xf32>
    %462 = arith.addf %461, %460 : vector<8x128xf32>
    %463 = arith.divf %461, %462 : vector<8x128xf32>
    %464 = arith.mulf %455, %432 : vector<8x128xf32>
    %465 = arith.mulf %449, %457 : vector<8x128xf32>
    %466 = arith.addf %464, %465 : vector<8x128xf32>
    %467 = math.tanh %466 : vector<8x128xf32>
    %468 = arith.mulf %463, %467 : vector<8x128xf32>
    %469 = arith.index_cast %c1_i32_126 : i32 to index
    %c0_133 = arith.constant 0 : index
    %c0_134 = arith.constant 0 : index
    %470 = vector.load %arg6[%469, %c0_133, %c0_134] : memref<8x8x128xf32, #tpu.memory_space<vmem>>, vector<1x8x128xf32>
    %471 = vector.shape_cast %470 : vector<1x8x128xf32> to vector<8x128xf32>
    %472 = arith.subf %468, %429 : vector<8x128xf32>
    %473 = arith.mulf %471, %472 : vector<8x128xf32>
    %474 = arith.addf %429, %473 : vector<8x128xf32>
    %475 = arith.subf %466, %432 : vector<8x128xf32>
    %476 = arith.mulf %471, %475 : vector<8x128xf32>
    %477 = arith.addf %432, %476 : vector<8x128xf32>
    %478 = arith.mulf %471, %468 : vector<8x128xf32>
    %479 = arith.index_cast %c1_i32_126 : i32 to index
    %c0_135 = arith.constant 0 : index
    %c0_136 = arith.constant 0 : index
    %480 = vector.load %arg7[%479, %c0_135, %c0_136] : memref<8x8x128xf32, #tpu.memory_space<vmem>>, vector<1x8x128xf32>
    %481 = vector.shape_cast %480 : vector<1x8x128xf32> to vector<8x128xf32>
    %482 = vector.shape_cast %478 : vector<8x128xf32> to vector<1x8x128xf32>
    tpu.vector_store %arg7[%479, %c0_135, %c0_136], %482 {strides = array<i32>} : memref<8x8x128xf32, #tpu.memory_space<vmem>>, vector<1x8x128xf32>,
    %c2_i32_137 = arith.constant 2 : i32
    %483 = arith.index_cast %c2_i32_137 : i32 to index
    %c0_138 = arith.constant 0 : index
    %c0_139 = arith.constant 0 : index
    %484 = vector.load %arg10[%483, %c0_138, %c0_139] : memref<8x8x512xf32, #tpu.memory_space<vmem>>, vector<1x8x512xf32>
    %485 = vector.shape_cast %484 : vector<1x8x512xf32> to vector<8x512xf32>
    %486 = arith.truncf %474 : vector<8x128xf32> to vector<8x128xbf16>
    %cst_140 = arith.constant dense<0.000000e+00> : vector<8x512xf32>
    %487 = tpu.matmul %486, %391, %cst_140 {dimension_numbers = #tpu.dot_dimension_numbers<[1], [0], [0], [1], [0, 0, 1, 1], [], []>} : vector<8x128xbf16>, vector<128x512xbf16>, vector<8x512xf32> -> vector<8x512xf32>
    %488 = arith.addf %485, %487 : vector<8x512xf32>
    %489 = vector.extract_strided_slice %488 {offsets = [0, 0], sizes = [8, 128], strides = [1, 1]} : vector<8x512xf32> to vector<8x128xf32>
    %490 = arith.negf %489 : vector<8x128xf32>
    %491 = math.exp %490 : vector<8x128xf32>
    %cst_141 = arith.constant 1.000000e+00 : f32
    %492 = vector.broadcast %cst_141 : f32 to vector<8x128xf32>
    %493 = arith.addf %492, %491 : vector<8x128xf32>
    %494 = arith.divf %492, %493 : vector<8x128xf32>
    %495 = vector.extract_strided_slice %488 {offsets = [0, 128], sizes = [8, 128], strides = [1, 1]} : vector<8x512xf32> to vector<8x128xf32>
    %496 = arith.negf %495 : vector<8x128xf32>
    %497 = math.exp %496 : vector<8x128xf32>
    %cst_142 = arith.constant 1.000000e+00 : f32
    %498 = vector.broadcast %cst_142 : f32 to vector<8x128xf32>
    %499 = arith.addf %498, %497 : vector<8x128xf32>
    %500 = arith.divf %498, %499 : vector<8x128xf32>
    %501 = vector.extract_strided_slice %488 {offsets = [0, 256], sizes = [8, 128], strides = [1, 1]} : vector<8x512xf32> to vector<8x128xf32>
    %502 = math.tanh %501 : vector<8x128xf32>
    %503 = vector.extract_strided_slice %488 {offsets = [0, 384], sizes = [8, 128], strides = [1, 1]} : vector<8x512xf32> to vector<8x128xf32>
    %504 = arith.negf %503 : vector<8x128xf32>
    %505 = math.exp %504 : vector<8x128xf32>
    %cst_143 = arith.constant 1.000000e+00 : f32
    %506 = vector.broadcast %cst_143 : f32 to vector<8x128xf32>
    %507 = arith.addf %506, %505 : vector<8x128xf32>
    %508 = arith.divf %506, %507 : vector<8x128xf32>
    %509 = arith.mulf %500, %477 : vector<8x128xf32>
    %510 = arith.mulf %494, %502 : vector<8x128xf32>
    %511 = arith.addf %509, %510 : vector<8x128xf32>
    %512 = math.tanh %511 : vector<8x128xf32>
    %513 = arith.mulf %508, %512 : vector<8x128xf32>
    %514 = arith.index_cast %c2_i32_137 : i32 to index
    %c0_144 = arith.constant 0 : index
    %c0_145 = arith.constant 0 : index
    %515 = vector.load %arg6[%514, %c0_144, %c0_145] : memref<8x8x128xf32, #tpu.memory_space<vmem>>, vector<1x8x128xf32>
    %516 = vector.shape_cast %515 : vector<1x8x128xf32> to vector<8x128xf32>
    %517 = arith.subf %513, %474 : vector<8x128xf32>
    %518 = arith.mulf %516, %517 : vector<8x128xf32>
    %519 = arith.addf %474, %518 : vector<8x128xf32>
    %520 = arith.subf %511, %477 : vector<8x128xf32>
    %521 = arith.mulf %516, %520 : vector<8x128xf32>
    %522 = arith.addf %477, %521 : vector<8x128xf32>
    %523 = arith.mulf %516, %513 : vector<8x128xf32>
    %524 = arith.index_cast %c2_i32_137 : i32 to index
    %c0_146 = arith.constant 0 : index
    %c0_147 = arith.constant 0 : index
    %525 = vector.load %arg7[%524, %c0_146, %c0_147] : memref<8x8x128xf32, #tpu.memory_space<vmem>>, vector<1x8x128xf32>
    %526 = vector.shape_cast %525 : vector<1x8x128xf32> to vector<8x128xf32>
    %527 = vector.shape_cast %523 : vector<8x128xf32> to vector<1x8x128xf32>
    tpu.vector_store %arg7[%524, %c0_146, %c0_147], %527 {strides = array<i32>} : memref<8x8x128xf32, #tpu.memory_space<vmem>>, vector<1x8x128xf32>,
    %c3_i32_148 = arith.constant 3 : i32
    %528 = arith.index_cast %c3_i32_148 : i32 to index
    %c0_149 = arith.constant 0 : index
    %c0_150 = arith.constant 0 : index
    %529 = vector.load %arg10[%528, %c0_149, %c0_150] : memref<8x8x512xf32, #tpu.memory_space<vmem>>, vector<1x8x512xf32>
    %530 = vector.shape_cast %529 : vector<1x8x512xf32> to vector<8x512xf32>
    %531 = arith.truncf %519 : vector<8x128xf32> to vector<8x128xbf16>
    %cst_151 = arith.constant dense<0.000000e+00> : vector<8x512xf32>
    %532 = tpu.matmul %531, %391, %cst_151 {dimension_numbers = #tpu.dot_dimension_numbers<[1], [0], [0], [1], [0, 0, 1, 1], [], []>} : vector<8x128xbf16>, vector<128x512xbf16>, vector<8x512xf32> -> vector<8x512xf32>
    %533 = arith.addf %530, %532 : vector<8x512xf32>
    %534 = vector.extract_strided_slice %533 {offsets = [0, 0], sizes = [8, 128], strides = [1, 1]} : vector<8x512xf32> to vector<8x128xf32>
    %535 = arith.negf %534 : vector<8x128xf32>
    %536 = math.exp %535 : vector<8x128xf32>
    %cst_152 = arith.constant 1.000000e+00 : f32
    %537 = vector.broadcast %cst_152 : f32 to vector<8x128xf32>
    %538 = arith.addf %537, %536 : vector<8x128xf32>
    %539 = arith.divf %537, %538 : vector<8x128xf32>
    %540 = vector.extract_strided_slice %533 {offsets = [0, 128], sizes = [8, 128], strides = [1, 1]} : vector<8x512xf32> to vector<8x128xf32>
    %541 = arith.negf %540 : vector<8x128xf32>
    %542 = math.exp %541 : vector<8x128xf32>
    %cst_153 = arith.constant 1.000000e+00 : f32
    %543 = vector.broadcast %cst_153 : f32 to vector<8x128xf32>
    %544 = arith.addf %543, %542 : vector<8x128xf32>
    %545 = arith.divf %543, %544 : vector<8x128xf32>
    %546 = vector.extract_strided_slice %533 {offsets = [0, 256], sizes = [8, 128], strides = [1, 1]} : vector<8x512xf32> to vector<8x128xf32>
    %547 = math.tanh %546 : vector<8x128xf32>
    %548 = vector.extract_strided_slice %533 {offsets = [0, 384], sizes = [8, 128], strides = [1, 1]} : vector<8x512xf32> to vector<8x128xf32>
    %549 = arith.negf %548 : vector<8x128xf32>
    %550 = math.exp %549 : vector<8x128xf32>
    %cst_154 = arith.constant 1.000000e+00 : f32
    %551 = vector.broadcast %cst_154 : f32 to vector<8x128xf32>
    %552 = arith.addf %551, %550 : vector<8x128xf32>
    %553 = arith.divf %551, %552 : vector<8x128xf32>
    %554 = arith.mulf %545, %522 : vector<8x128xf32>
    %555 = arith.mulf %539, %547 : vector<8x128xf32>
    %556 = arith.addf %554, %555 : vector<8x128xf32>
    %557 = math.tanh %556 : vector<8x128xf32>
    %558 = arith.mulf %553, %557 : vector<8x128xf32>
    %559 = arith.index_cast %c3_i32_148 : i32 to index
    %c0_155 = arith.constant 0 : index
    %c0_156 = arith.constant 0 : index
    %560 = vector.load %arg6[%559, %c0_155, %c0_156] : memref<8x8x128xf32, #tpu.memory_space<vmem>>, vector<1x8x128xf32>
    %561 = vector.shape_cast %560 : vector<1x8x128xf32> to vector<8x128xf32>
    %562 = arith.subf %558, %519 : vector<8x128xf32>
    %563 = arith.mulf %561, %562 : vector<8x128xf32>
    %564 = arith.addf %519, %563 : vector<8x128xf32>
    %565 = arith.subf %556, %522 : vector<8x128xf32>
    %566 = arith.mulf %561, %565 : vector<8x128xf32>
    %567 = arith.addf %522, %566 : vector<8x128xf32>
    %568 = arith.mulf %561, %558 : vector<8x128xf32>
    %569 = arith.index_cast %c3_i32_148 : i32 to index
    %c0_157 = arith.constant 0 : index
    %c0_158 = arith.constant 0 : index
    %570 = vector.load %arg7[%569, %c0_157, %c0_158] : memref<8x8x128xf32, #tpu.memory_space<vmem>>, vector<1x8x128xf32>
    %571 = vector.shape_cast %570 : vector<1x8x128xf32> to vector<8x128xf32>
    %572 = vector.shape_cast %568 : vector<8x128xf32> to vector<1x8x128xf32>
    tpu.vector_store %arg7[%569, %c0_157, %c0_158], %572 {strides = array<i32>} : memref<8x8x128xf32, #tpu.memory_space<vmem>>, vector<1x8x128xf32>,
    %c4_i32_159 = arith.constant 4 : i32
    %573 = arith.index_cast %c4_i32_159 : i32 to index
    %c0_160 = arith.constant 0 : index
    %c0_161 = arith.constant 0 : index
    %574 = vector.load %arg10[%573, %c0_160, %c0_161] : memref<8x8x512xf32, #tpu.memory_space<vmem>>, vector<1x8x512xf32>
    %575 = vector.shape_cast %574 : vector<1x8x512xf32> to vector<8x512xf32>
    %576 = arith.truncf %564 : vector<8x128xf32> to vector<8x128xbf16>
    %cst_162 = arith.constant dense<0.000000e+00> : vector<8x512xf32>
    %577 = tpu.matmul %576, %391, %cst_162 {dimension_numbers = #tpu.dot_dimension_numbers<[1], [0], [0], [1], [0, 0, 1, 1], [], []>} : vector<8x128xbf16>, vector<128x512xbf16>, vector<8x512xf32> -> vector<8x512xf32>
    %578 = arith.addf %575, %577 : vector<8x512xf32>
    %579 = vector.extract_strided_slice %578 {offsets = [0, 0], sizes = [8, 128], strides = [1, 1]} : vector<8x512xf32> to vector<8x128xf32>
    %580 = arith.negf %579 : vector<8x128xf32>
    %581 = math.exp %580 : vector<8x128xf32>
    %cst_163 = arith.constant 1.000000e+00 : f32
    %582 = vector.broadcast %cst_163 : f32 to vector<8x128xf32>
    %583 = arith.addf %582, %581 : vector<8x128xf32>
    %584 = arith.divf %582, %583 : vector<8x128xf32>
    %585 = vector.extract_strided_slice %578 {offsets = [0, 128], sizes = [8, 128], strides = [1, 1]} : vector<8x512xf32> to vector<8x128xf32>
    %586 = arith.negf %585 : vector<8x128xf32>
    %587 = math.exp %586 : vector<8x128xf32>
    %cst_164 = arith.constant 1.000000e+00 : f32
    %588 = vector.broadcast %cst_164 : f32 to vector<8x128xf32>
    %589 = arith.addf %588, %587 : vector<8x128xf32>
    %590 = arith.divf %588, %589 : vector<8x128xf32>
    %591 = vector.extract_strided_slice %578 {offsets = [0, 256], sizes = [8, 128], strides = [1, 1]} : vector<8x512xf32> to vector<8x128xf32>
    %592 = math.tanh %591 : vector<8x128xf32>
    %593 = vector.extract_strided_slice %578 {offsets = [0, 384], sizes = [8, 128], strides = [1, 1]} : vector<8x512xf32> to vector<8x128xf32>
    %594 = arith.negf %593 : vector<8x128xf32>
    %595 = math.exp %594 : vector<8x128xf32>
    %cst_165 = arith.constant 1.000000e+00 : f32
    %596 = vector.broadcast %cst_165 : f32 to vector<8x128xf32>
    %597 = arith.addf %596, %595 : vector<8x128xf32>
    %598 = arith.divf %596, %597 : vector<8x128xf32>
    %599 = arith.mulf %590, %567 : vector<8x128xf32>
    %600 = arith.mulf %584, %592 : vector<8x128xf32>
    %601 = arith.addf %599, %600 : vector<8x128xf32>
    %602 = math.tanh %601 : vector<8x128xf32>
    %603 = arith.mulf %598, %602 : vector<8x128xf32>
    %604 = arith.index_cast %c4_i32_159 : i32 to index
    %c0_166 = arith.constant 0 : index
    %c0_167 = arith.constant 0 : index
    %605 = vector.load %arg6[%604, %c0_166, %c0_167] : memref<8x8x128xf32, #tpu.memory_space<vmem>>, vector<1x8x128xf32>
    %606 = vector.shape_cast %605 : vector<1x8x128xf32> to vector<8x128xf32>
    %607 = arith.subf %603, %564 : vector<8x128xf32>
    %608 = arith.mulf %606, %607 : vector<8x128xf32>
    %609 = arith.addf %564, %608 : vector<8x128xf32>
    %610 = arith.subf %601, %567 : vector<8x128xf32>
    %611 = arith.mulf %606, %610 : vector<8x128xf32>
    %612 = arith.addf %567, %611 : vector<8x128xf32>
    %613 = arith.mulf %606, %603 : vector<8x128xf32>
    %614 = arith.index_cast %c4_i32_159 : i32 to index
    %c0_168 = arith.constant 0 : index
    %c0_169 = arith.constant 0 : index
    %615 = vector.load %arg7[%614, %c0_168, %c0_169] : memref<8x8x128xf32, #tpu.memory_space<vmem>>, vector<1x8x128xf32>
    %616 = vector.shape_cast %615 : vector<1x8x128xf32> to vector<8x128xf32>
    %617 = vector.shape_cast %613 : vector<8x128xf32> to vector<1x8x128xf32>
    tpu.vector_store %arg7[%614, %c0_168, %c0_169], %617 {strides = array<i32>} : memref<8x8x128xf32, #tpu.memory_space<vmem>>, vector<1x8x128xf32>,
    %c5_i32_170 = arith.constant 5 : i32
    %618 = arith.index_cast %c5_i32_170 : i32 to index
    %c0_171 = arith.constant 0 : index
    %c0_172 = arith.constant 0 : index
    %619 = vector.load %arg10[%618, %c0_171, %c0_172] : memref<8x8x512xf32, #tpu.memory_space<vmem>>, vector<1x8x512xf32>
    %620 = vector.shape_cast %619 : vector<1x8x512xf32> to vector<8x512xf32>
    %621 = arith.truncf %609 : vector<8x128xf32> to vector<8x128xbf16>
    %cst_173 = arith.constant dense<0.000000e+00> : vector<8x512xf32>
    %622 = tpu.matmul %621, %391, %cst_173 {dimension_numbers = #tpu.dot_dimension_numbers<[1], [0], [0], [1], [0, 0, 1, 1], [], []>} : vector<8x128xbf16>, vector<128x512xbf16>, vector<8x512xf32> -> vector<8x512xf32>
    %623 = arith.addf %620, %622 : vector<8x512xf32>
    %624 = vector.extract_strided_slice %623 {offsets = [0, 0], sizes = [8, 128], strides = [1, 1]} : vector<8x512xf32> to vector<8x128xf32>
    %625 = arith.negf %624 : vector<8x128xf32>
    %626 = math.exp %625 : vector<8x128xf32>
    %cst_174 = arith.constant 1.000000e+00 : f32
    %627 = vector.broadcast %cst_174 : f32 to vector<8x128xf32>
    %628 = arith.addf %627, %626 : vector<8x128xf32>
    %629 = arith.divf %627, %628 : vector<8x128xf32>
    %630 = vector.extract_strided_slice %623 {offsets = [0, 128], sizes = [8, 128], strides = [1, 1]} : vector<8x512xf32> to vector<8x128xf32>
    %631 = arith.negf %630 : vector<8x128xf32>
    %632 = math.exp %631 : vector<8x128xf32>
    %cst_175 = arith.constant 1.000000e+00 : f32
    %633 = vector.broadcast %cst_175 : f32 to vector<8x128xf32>
    %634 = arith.addf %633, %632 : vector<8x128xf32>
    %635 = arith.divf %633, %634 : vector<8x128xf32>
    %636 = vector.extract_strided_slice %623 {offsets = [0, 256], sizes = [8, 128], strides = [1, 1]} : vector<8x512xf32> to vector<8x128xf32>
    %637 = math.tanh %636 : vector<8x128xf32>
    %638 = vector.extract_strided_slice %623 {offsets = [0, 384], sizes = [8, 128], strides = [1, 1]} : vector<8x512xf32> to vector<8x128xf32>
    %639 = arith.negf %638 : vector<8x128xf32>
    %640 = math.exp %639 : vector<8x128xf32>
    %cst_176 = arith.constant 1.000000e+00 : f32
    %641 = vector.broadcast %cst_176 : f32 to vector<8x128xf32>
    %642 = arith.addf %641, %640 : vector<8x128xf32>
    %643 = arith.divf %641, %642 : vector<8x128xf32>
    %644 = arith.mulf %635, %612 : vector<8x128xf32>
    %645 = arith.mulf %629, %637 : vector<8x128xf32>
    %646 = arith.addf %644, %645 : vector<8x128xf32>
    %647 = math.tanh %646 : vector<8x128xf32>
    %648 = arith.mulf %643, %647 : vector<8x128xf32>
    %649 = arith.index_cast %c5_i32_170 : i32 to index
    %c0_177 = arith.constant 0 : index
    %c0_178 = arith.constant 0 : index
    %650 = vector.load %arg6[%649, %c0_177, %c0_178] : memref<8x8x128xf32, #tpu.memory_space<vmem>>, vector<1x8x128xf32>
    %651 = vector.shape_cast %650 : vector<1x8x128xf32> to vector<8x128xf32>
    %652 = arith.subf %648, %609 : vector<8x128xf32>
    %653 = arith.mulf %651, %652 : vector<8x128xf32>
    %654 = arith.addf %609, %653 : vector<8x128xf32>
    %655 = arith.subf %646, %612 : vector<8x128xf32>
    %656 = arith.mulf %651, %655 : vector<8x128xf32>
    %657 = arith.addf %612, %656 : vector<8x128xf32>
    %658 = arith.mulf %651, %648 : vector<8x128xf32>
    %659 = arith.index_cast %c5_i32_170 : i32 to index
    %c0_179 = arith.constant 0 : index
    %c0_180 = arith.constant 0 : index
    %660 = vector.load %arg7[%659, %c0_179, %c0_180] : memref<8x8x128xf32, #tpu.memory_space<vmem>>, vector<1x8x128xf32>
    %661 = vector.shape_cast %660 : vector<1x8x128xf32> to vector<8x128xf32>
    %662 = vector.shape_cast %658 : vector<8x128xf32> to vector<1x8x128xf32>
    tpu.vector_store %arg7[%659, %c0_179, %c0_180], %662 {strides = array<i32>} : memref<8x8x128xf32, #tpu.memory_space<vmem>>, vector<1x8x128xf32>,
    %c6_i32_181 = arith.constant 6 : i32
    %663 = arith.index_cast %c6_i32_181 : i32 to index
    %c0_182 = arith.constant 0 : index
    %c0_183 = arith.constant 0 : index
    %664 = vector.load %arg10[%663, %c0_182, %c0_183] : memref<8x8x512xf32, #tpu.memory_space<vmem>>, vector<1x8x512xf32>
    %665 = vector.shape_cast %664 : vector<1x8x512xf32> to vector<8x512xf32>
    %666 = arith.truncf %654 : vector<8x128xf32> to vector<8x128xbf16>
    %cst_184 = arith.constant dense<0.000000e+00> : vector<8x512xf32>
    %667 = tpu.matmul %666, %391, %cst_184 {dimension_numbers = #tpu.dot_dimension_numbers<[1], [0], [0], [1], [0, 0, 1, 1], [], []>} : vector<8x128xbf16>, vector<128x512xbf16>, vector<8x512xf32> -> vector<8x512xf32>
    %668 = arith.addf %665, %667 : vector<8x512xf32>
    %669 = vector.extract_strided_slice %668 {offsets = [0, 0], sizes = [8, 128], strides = [1, 1]} : vector<8x512xf32> to vector<8x128xf32>
    %670 = arith.negf %669 : vector<8x128xf32>
    %671 = math.exp %670 : vector<8x128xf32>
    %cst_185 = arith.constant 1.000000e+00 : f32
    %672 = vector.broadcast %cst_185 : f32 to vector<8x128xf32>
    %673 = arith.addf %672, %671 : vector<8x128xf32>
    %674 = arith.divf %672, %673 : vector<8x128xf32>
    %675 = vector.extract_strided_slice %668 {offsets = [0, 128], sizes = [8, 128], strides = [1, 1]} : vector<8x512xf32> to vector<8x128xf32>
    %676 = arith.negf %675 : vector<8x128xf32>
    %677 = math.exp %676 : vector<8x128xf32>
    %cst_186 = arith.constant 1.000000e+00 : f32
    %678 = vector.broadcast %cst_186 : f32 to vector<8x128xf32>
    %679 = arith.addf %678, %677 : vector<8x128xf32>
    %680 = arith.divf %678, %679 : vector<8x128xf32>
    %681 = vector.extract_strided_slice %668 {offsets = [0, 256], sizes = [8, 128], strides = [1, 1]} : vector<8x512xf32> to vector<8x128xf32>
    %682 = math.tanh %681 : vector<8x128xf32>
    %683 = vector.extract_strided_slice %668 {offsets = [0, 384], sizes = [8, 128], strides = [1, 1]} : vector<8x512xf32> to vector<8x128xf32>
    %684 = arith.negf %683 : vector<8x128xf32>
    %685 = math.exp %684 : vector<8x128xf32>
    %cst_187 = arith.constant 1.000000e+00 : f32
    %686 = vector.broadcast %cst_187 : f32 to vector<8x128xf32>
    %687 = arith.addf %686, %685 : vector<8x128xf32>
    %688 = arith.divf %686, %687 : vector<8x128xf32>
    %689 = arith.mulf %680, %657 : vector<8x128xf32>
    %690 = arith.mulf %674, %682 : vector<8x128xf32>
    %691 = arith.addf %689, %690 : vector<8x128xf32>
    %692 = math.tanh %691 : vector<8x128xf32>
    %693 = arith.mulf %688, %692 : vector<8x128xf32>
    %694 = arith.index_cast %c6_i32_181 : i32 to index
    %c0_188 = arith.constant 0 : index
    %c0_189 = arith.constant 0 : index
    %695 = vector.load %arg6[%694, %c0_188, %c0_189] : memref<8x8x128xf32, #tpu.memory_space<vmem>>, vector<1x8x128xf32>
    %696 = vector.shape_cast %695 : vector<1x8x128xf32> to vector<8x128xf32>
    %697 = arith.subf %693, %654 : vector<8x128xf32>
    %698 = arith.mulf %696, %697 : vector<8x128xf32>
    %699 = arith.addf %654, %698 : vector<8x128xf32>
    %700 = arith.subf %691, %657 : vector<8x128xf32>
    %701 = arith.mulf %696, %700 : vector<8x128xf32>
    %702 = arith.addf %657, %701 : vector<8x128xf32>
    %703 = arith.mulf %696, %693 : vector<8x128xf32>
    %704 = arith.index_cast %c6_i32_181 : i32 to index
    %c0_190 = arith.constant 0 : index
    %c0_191 = arith.constant 0 : index
    %705 = vector.load %arg7[%704, %c0_190, %c0_191] : memref<8x8x128xf32, #tpu.memory_space<vmem>>, vector<1x8x128xf32>
    %706 = vector.shape_cast %705 : vector<1x8x128xf32> to vector<8x128xf32>
    %707 = vector.shape_cast %703 : vector<8x128xf32> to vector<1x8x128xf32>
    tpu.vector_store %arg7[%704, %c0_190, %c0_191], %707 {strides = array<i32>} : memref<8x8x128xf32, #tpu.memory_space<vmem>>, vector<1x8x128xf32>,
    %c7_i32_192 = arith.constant 7 : i32
    %708 = arith.index_cast %c7_i32_192 : i32 to index
    %c0_193 = arith.constant 0 : index
    %c0_194 = arith.constant 0 : index
    %709 = vector.load %arg10[%708, %c0_193, %c0_194] : memref<8x8x512xf32, #tpu.memory_space<vmem>>, vector<1x8x512xf32>
    %710 = vector.shape_cast %709 : vector<1x8x512xf32> to vector<8x512xf32>
    %711 = arith.truncf %699 : vector<8x128xf32> to vector<8x128xbf16>
    %cst_195 = arith.constant dense<0.000000e+00> : vector<8x512xf32>
    %712 = tpu.matmul %711, %391, %cst_195 {dimension_numbers = #tpu.dot_dimension_numbers<[1], [0], [0], [1], [0, 0, 1, 1], [], []>} : vector<8x128xbf16>, vector<128x512xbf16>, vector<8x512xf32> -> vector<8x512xf32>
    %713 = arith.addf %710, %712 : vector<8x512xf32>
    %714 = vector.extract_strided_slice %713 {offsets = [0, 0], sizes = [8, 128], strides = [1, 1]} : vector<8x512xf32> to vector<8x128xf32>
    %715 = arith.negf %714 : vector<8x128xf32>
    %716 = math.exp %715 : vector<8x128xf32>
    %cst_196 = arith.constant 1.000000e+00 : f32
    %717 = vector.broadcast %cst_196 : f32 to vector<8x128xf32>
    %718 = arith.addf %717, %716 : vector<8x128xf32>
    %719 = arith.divf %717, %718 : vector<8x128xf32>
    %720 = vector.extract_strided_slice %713 {offsets = [0, 128], sizes = [8, 128], strides = [1, 1]} : vector<8x512xf32> to vector<8x128xf32>
    %721 = arith.negf %720 : vector<8x128xf32>
    %722 = math.exp %721 : vector<8x128xf32>
    %cst_197 = arith.constant 1.000000e+00 : f32
    %723 = vector.broadcast %cst_197 : f32 to vector<8x128xf32>
    %724 = arith.addf %723, %722 : vector<8x128xf32>
    %725 = arith.divf %723, %724 : vector<8x128xf32>
    %726 = vector.extract_strided_slice %713 {offsets = [0, 256], sizes = [8, 128], strides = [1, 1]} : vector<8x512xf32> to vector<8x128xf32>
    %727 = math.tanh %726 : vector<8x128xf32>
    %728 = vector.extract_strided_slice %713 {offsets = [0, 384], sizes = [8, 128], strides = [1, 1]} : vector<8x512xf32> to vector<8x128xf32>
    %729 = arith.negf %728 : vector<8x128xf32>
    %730 = math.exp %729 : vector<8x128xf32>
    %cst_198 = arith.constant 1.000000e+00 : f32
    %731 = vector.broadcast %cst_198 : f32 to vector<8x128xf32>
    %732 = arith.addf %731, %730 : vector<8x128xf32>
    %733 = arith.divf %731, %732 : vector<8x128xf32>
    %734 = arith.mulf %725, %702 : vector<8x128xf32>
    %735 = arith.mulf %719, %727 : vector<8x128xf32>
    %736 = arith.addf %734, %735 : vector<8x128xf32>
    %737 = math.tanh %736 : vector<8x128xf32>
    %738 = arith.mulf %733, %737 : vector<8x128xf32>
    %739 = arith.index_cast %c7_i32_192 : i32 to index
    %c0_199 = arith.constant 0 : index
    %c0_200 = arith.constant 0 : index
    %740 = vector.load %arg6[%739, %c0_199, %c0_200] : memref<8x8x128xf32, #tpu.memory_space<vmem>>, vector<1x8x128xf32>
    %741 = vector.shape_cast %740 : vector<1x8x128xf32> to vector<8x128xf32>
    %742 = arith.subf %738, %699 : vector<8x128xf32>
    %743 = arith.mulf %741, %742 : vector<8x128xf32>
    %744 = arith.addf %699, %743 : vector<8x128xf32>
    %745 = arith.subf %736, %702 : vector<8x128xf32>
    %746 = arith.mulf %741, %745 : vector<8x128xf32>
    %747 = arith.addf %702, %746 : vector<8x128xf32>
    %748 = arith.mulf %741, %738 : vector<8x128xf32>
    %749 = arith.index_cast %c7_i32_192 : i32 to index
    %c0_201 = arith.constant 0 : index
    %c0_202 = arith.constant 0 : index
    %750 = vector.load %arg7[%749, %c0_201, %c0_202] : memref<8x8x128xf32, #tpu.memory_space<vmem>>, vector<1x8x128xf32>
    %751 = vector.shape_cast %750 : vector<1x8x128xf32> to vector<8x128xf32>
    %752 = vector.shape_cast %748 : vector<8x128xf32> to vector<1x8x128xf32>
    tpu.vector_store %arg7[%749, %c0_201, %c0_202], %752 {strides = array<i32>} : memref<8x8x128xf32, #tpu.memory_space<vmem>>, vector<1x8x128xf32>,
    %c8_i32_203 = arith.constant 8 : i32
    %c1_204 = arith.constant 1 : index
    %c0_205 = arith.constant 0 : index
    %c0_206 = arith.constant 0 : index
    %753 = vector.load %arg8[%c1_204, %c0_205, %c0_206] : memref<2x8x128xf32, #tpu.memory_space<vmem>>, vector<1x8x128xf32>
    %754 = vector.shape_cast %753 : vector<1x8x128xf32> to vector<8x128xf32>
    %755 = vector.shape_cast %744 : vector<8x128xf32> to vector<1x8x128xf32>
    tpu.vector_store %arg8[%c1_204, %c0_205, %c0_206], %755 {strides = array<i32>} : memref<2x8x128xf32, #tpu.memory_space<vmem>>, vector<1x8x128xf32>,
    %c1_207 = arith.constant 1 : index
    %c0_208 = arith.constant 0 : index
    %c0_209 = arith.constant 0 : index
    %756 = vector.load %arg9[%c1_207, %c0_208, %c0_209] : memref<2x8x128xf32, #tpu.memory_space<vmem>>, vector<1x8x128xf32>
    %757 = vector.shape_cast %756 : vector<1x8x128xf32> to vector<8x128xf32>
    %758 = vector.shape_cast %747 : vector<8x128xf32> to vector<1x8x128xf32>
    tpu.vector_store %arg9[%c1_207, %c0_208, %c0_209], %758 {strides = array<i32>} : memref<2x8x128xf32, #tpu.memory_space<vmem>>, vector<1x8x128xf32>,
    return
  }
}

</mosaic_0001>

<bundles_post_ra>
// kernel: char_rnn_forward.3
= control target key start
LH: loop header
LB: loop body
LE: loop exit
PB: predicated region body
PF: predicated region fallthrough
CT: control target
= control target key end

     0   :  { %s355_s1 = inlined_call_operand.vmem [shape: bf16[128,128], index: 1, kind: input, shape index: {}]   ;;  %s356_s0 = inlined_call_operand.vmem [shape: bf16[64,128], index: 0, kind: input, shape index: {}]   ;;  %s357_s2 = inlined_call_operand.vmem [shape: f32[1,128], index: 2, kind: input, shape index: {}]   ;;  %s358_s3 = inlined_call_operand.vmem [shape: f32[64,128], index: 3, kind: output, shape index: {}]  }
   0x1   :  { %v260_v0 = vld [vmem:[%s355_s1] sm:$0xff]   ;;  %v261_v1 = vld [vmem:[%s355_s1 + $0x8] sm:$0xff]   ;;  %v262_v2 = vld [vmem:[%s355_s1 + $0x10] sm:$0xff]  }
   0x2   :  { %220 = vmatprep.subr.bf16.mxu0 %v260_v0  ;;  %244 = vmatprep.subr.bf16.mxu1 %v260_v0  ;;  %v263_v3 = vld [vmem:[%s355_s1 + $0x18] sm:$0xff]   ;;  %v268_v4 = vld [vmem:[%s356_s0] sm:$0xff]   ;;  %v269_v5 = vld [vmem:[%s356_s0 + $0x10] sm:$0xff]  }
   0x3   :  { %221 = vmatpush3.bf16.msra.mxu0 %v260_v0  ;;  %252 = vmatpush3.bf16.msra.mxu1 %v260_v0  ;;  %v264_v6 = vld [vmem:[%s355_s1 + $0x20] sm:$0xff]   ;;  %v265_v7 = vld [vmem:[%s355_s1 + $0x28] sm:$0xff]   ;;  %v266_v8 = vld [vmem:[%s355_s1 + $0x30] sm:$0xff]  }
   0x4   :  { %222 = vmatprep.subr.bf16.mxu0 %v261_v1  ;;  %245 = vmatprep.subr.bf16.mxu1 %v261_v1  ;;  %v267_v9 = vld [vmem:[%s355_s1 + $0x38] sm:$0xff]   ;;  %v270_v10 = vld [vmem:[%s356_s0 + $0x8] sm:$0xff]   ;;  %v195_v12 = vld [vmem:[%s357_s2] ss:$0 sm:$0xff] }
   0x5   :  { %236 = vmatprep.mubr.bf16.mxu0 %v268_v4  ;;  %240 = vmatprep.mubr.bf16.mxu1 %v269_v5  ;;  %v271_v11 = vld [vmem:[%s356_s0 + $0x18] sm:$0xff]  }
   0x7   :  { %223 = vmatpush3.bf16.msra.mxu0 %v261_v1  ;;  %253 = vmatpush3.bf16.msra.mxu1 %v261_v1 }
   0x8   :  { %224 = vmatprep.subr.bf16.mxu0 %v262_v2  ;;  %246 = vmatprep.subr.bf16.mxu1 %v262_v2 }
   0xb   :  { %225 = vmatpush3.bf16.msra.mxu0 %v262_v2  ;;  %254 = vmatpush3.bf16.msra.mxu1 %v262_v2 }
   0xc   :  { %226 = vmatprep.subr.bf16.mxu0 %v263_v3  ;;  %247 = vmatprep.subr.bf16.mxu1 %v263_v3 }
   0xf   :  { %227 = vmatpush3.bf16.msra.mxu0 %v263_v3  ;;  %255 = vmatpush3.bf16.msra.mxu1 %v263_v3 }
  0x10   :  { %228 = vmatprep.subr.bf16.mxu0 %v264_v6  ;;  %248 = vmatprep.subr.bf16.mxu1 %v264_v6 }
  0x13   :  { %229 = vmatpush3.bf16.msra.mxu0 %v264_v6  ;;  %256 = vmatpush3.bf16.msra.mxu1 %v264_v6 }
  0x14   :  { %230 = vmatprep.subr.bf16.mxu0 %v265_v7  ;;  %249 = vmatprep.subr.bf16.mxu1 %v265_v7 }
  0x17   :  { %231 = vmatpush3.bf16.msra.mxu0 %v265_v7  ;;  %257 = vmatpush3.bf16.msra.mxu1 %v265_v7 }
  0x18   :  { %232 = vmatprep.subr.bf16.mxu0 %v266_v8  ;;  %250 = vmatprep.subr.bf16.mxu1 %v266_v8 }
  0x1b   :  { %233 = vmatpush3.bf16.msra.mxu0 %v266_v8  ;;  %258 = vmatpush3.bf16.msra.mxu1 %v266_v8 }
  0x1c   :  { %234 = vmatprep.subr.bf16.mxu0 %v267_v9  ;;  %251 = vmatprep.subr.bf16.mxu1 %v267_v9 }
  0x1f   :  { %235 = vmatpush3.bf16.msra.mxu0 %v267_v9  ;;  %259 = vmatpush3.bf16.msra.mxu1 %v267_v9 }
  0x22   :  { %237 = vmatmul.mubr.bf16.vlgmr.msra.gmra.mrb[0].mxu0 %v270_v10  ;;  %241 = vmatmul.mubr.bf16.vlgmr.msra.gmra.mrb[0].mxu1 %v271_v11 }
  0xf5   :  { %v238_v13 = vpop.f32.mrb[0].mxu0  ;;  %v242_v14 = vpop.f32.mrb[0].mxu1 }
  0xf6   :  { %v161_v15 = vadd.f32 %v238_v13, %v195_v12  ;;  %v177_v16 = vadd.f32 %v242_v14, %v195_v12  ;;  %v152_v17 = vpop.f32.mrb[1].mxu0  ;;  %v168_v18 = vpop.f32.mrb[1].mxu1 }
  0xf7   :  { %v153_v19 = vadd.f32 %v195_v12, %v152_v17  ;;  %v169_v20 = vadd.f32 %v195_v12, %v168_v18  ;;  %v239_v21 = vpop.f32.mrb[2].mxu0  ;;  %v243_v22 = vpop.f32.mrb[2].mxu1 }
  0xf8   :  { %185 = vst [vmem:[%s358_s3 + $0x10] sm:$0xff] %v161_v15  ;;  %189 = vst [vmem:[%s358_s3 + $0x30] sm:$0xff] %v177_v16  ;;  %v164_v23 = vadd.f32 %v239_v21, %v195_v12  ;;  %v180_v24 = vadd.f32 %v243_v22, %v195_v12  ;;  %v155_v25 = vpop.f32.mrb[3].mxu0  ;;  %v171_v26 = vpop.f32.mrb[3].mxu1 }
  0xf9   :  { %183 = vst [vmem:[%s358_s3] sm:$0xff] %v153_v19  ;;  %187 = vst [vmem:[%s358_s3 + $0x20] sm:$0xff] %v169_v20  ;;  %v156_v27 = vadd.f32 %v195_v12, %v155_v25  ;;  %v172_v28 = vadd.f32 %v195_v12, %v171_v26 }
  0xfa   :  { %186 = vst [vmem:[%s358_s3 + $0x18] sm:$0xff] %v164_v23  ;;  %190 = vst [vmem:[%s358_s3 + $0x38] sm:$0xff] %v180_v24 }
  0xfb   :  { %184 = vst [vmem:[%s358_s3 + $0x8] sm:$0xff] %v156_v27  ;;  %188 = vst [vmem:[%s358_s3 + $0x28] sm:$0xff] %v172_v28 }

// kernel: char_rnn_forward.2
= control target key start
LH: loop header
LB: loop body
LE: loop exit
PB: predicated region body
PF: predicated region fallthrough
CT: control target
= control target key end

     0   :  { %v6013_v1 = vmov 0   ;;  %s5999_s1 = inlined_call_operand.vmem [shape: bf16[128,512], index: 1, kind: input, shape index: {}]   ;;  %s6000_s0 = inlined_call_operand.vmem [shape: bf16[8,8,128], index: 0, kind: input, shape index: {}]   ;;  %s6001_s5 = inlined_call_operand.vmem [shape: bf16[2,128,512], index: 5, kind: input, shape index: {}]   ;;  %s6002_s2 = inlined_call_operand.vmem [shape: f32[1,512], index: 2, kind: input, shape index: {}]   ;;  %s6003_s6 = inlined_call_operand.vmem [shape: f32[8,8,128], index: 6, kind: input, shape index: {}]   ;;  %s6004_s3 = inlined_call_operand.vmem [shape: bf16[1,128,512], index: 3, kind: input, shape index: {}]   ;;  %s6005_s9 = inlined_call_operand.vmem [shape: f32[2,8,128], index: 9, kind: output, shape index: {2}]   ;;  %s6006_s8 = inlined_call_operand.vmem [shape: f32[2,8,128], index: 8, kind: output, shape index: {1}]   ;;  %s6007_s4 = inlined_call_operand.vmem [shape: f32[1,1,512], index: 4, kind: input, shape index: {}]   ;;  %s6008_s7 = inlined_call_operand.vmem [shape: f32[8,8,128], index: 7, kind: output, shape index: {0}]  }
   0x1   :  { %v3501_v0 = vld [vmem:[%s5999_s1 + $0x4] ss:$16 sps:$4 sm:$0xff]   ;;  %308 = vmatprep.mubr.bf16.mxu0 %v6013_v1  ;;  %381 = vmatprep.mubr.bf16.mxu1 %v6013_v1  ;;  %v3503_v2 = vld [vmem:[%s5999_s1 + $0xc] ss:$16 sps:$4 sm:$0xff]   ;;  %v3505_v3 = vld [vmem:[%s5999_s1] ss:$16 sps:$4 sm:$0xff]  }
   0x2   :  { %276 = vmatprep.subr.bf16.mxu0 %v3501_v0  ;;  %v3506_v4 = vld [vmem:[%s5999_s1 + $0x8] ss:$16 sps:$4 sm:$0xff]   ;;  %349 = vmatprep.subr.bf16.mxu1 %v3503_v2  ;;  %v3507_v5 = vld [vmem:[%s5999_s1 + $0x24] ss:$16 sps:$4 sm:$0xff]   ;;  %v3509_v6 = vld [vmem:[%s5999_s1 + $0x2c] ss:$16 sps:$4 sm:$0xff]  }
   0x3   :  { %277 = vmatpush1.bf16.msra.mxu0 %v3505_v3  ;;  %350 = vmatpush1.bf16.msra.mxu1 %v3506_v4  ;;  %v3511_v7 = vld [vmem:[%s5999_s1 + $0x20] ss:$16 sps:$4 sm:$0xff]   ;;  %v3512_v8 = vld [vmem:[%s5999_s1 + $0x28] ss:$16 sps:$4 sm:$0xff]   ;;  %v3513_v9 = vld [vmem:[%s5999_s1 + $0x44] ss:$16 sps:$4 sm:$0xff]  }
   0x4   :  { %278 = vmatprep.subr.bf16.mxu0 %v3507_v5  ;;  %351 = vmatprep.subr.bf16.mxu1 %v3509_v6  ;;  %v3515_v10 = vld [vmem:[%s5999_s1 + $0x4c] ss:$16 sps:$4 sm:$0xff]   ;;  %v3517_v11 = vld [vmem:[%s5999_s1 + $0x40] ss:$16 sps:$4 sm:$0xff]   ;;  %v3518_v12 = vld [vmem:[%s5999_s1 + $0x48] ss:$16 sps:$4 sm:$0xff]   ;;  %v72_v6 = vlaneseq }
   0x5   :  { %v3519_v13 = vld [vmem:[%s5999_s1 + $0x64] ss:$16 sps:$4 sm:$0xff]   ;;  %v3521_v14 = vld [vmem:[%s5999_s1 + $0x6c] ss:$16 sps:$4 sm:$0xff]   ;;  %v3523_v15 = vld [vmem:[%s5999_s1 + $0x60] ss:$16 sps:$4 sm:$0xff]  }
   0x6   :  { %v3524_v16 = vld [vmem:[%s5999_s1 + $0x68] ss:$16 sps:$4 sm:$0xff]   ;;  %v3525_v17 = vld [vmem:[%s5999_s1 + $0x84] ss:$16 sps:$4 sm:$0xff]   ;;  %v3527_v18 = vld [vmem:[%s5999_s1 + $0x8c] ss:$16 sps:$4 sm:$0xff]  }
   0x7   :  { %279 = vmatpush1.bf16.msra.mxu0 %v3511_v7  ;;  %352 = vmatpush1.bf16.msra.mxu1 %v3512_v8  ;;  %v3529_v19 = vld [vmem:[%s5999_s1 + $0x80] ss:$16 sps:$4 sm:$0xff]   ;;  %v3530_v20 = vld [vmem:[%s5999_s1 + $0x88] ss:$16 sps:$4 sm:$0xff]   ;;  %v3531_v21 = vld [vmem:[%s5999_s1 + $0xa4] ss:$16 sps:$4 sm:$0xff]  }
   0x8   :  { %280 = vmatprep.subr.bf16.mxu0 %v3513_v9  ;;  %353 = vmatprep.subr.bf16.mxu1 %v3515_v10  ;;  %v3533_v22 = vld [vmem:[%s5999_s1 + $0xac] ss:$16 sps:$4 sm:$0xff]   ;;  %v3535_v23 = vld [vmem:[%s5999_s1 + $0xa0] ss:$16 sps:$4 sm:$0xff]   ;;  %v3536_v24 = vld [vmem:[%s5999_s1 + $0xa8] ss:$16 sps:$4 sm:$0xff]  }
   0x9   :  { %v3537_v25 = vld [vmem:[%s5999_s1 + $0xc4] ss:$16 sps:$4 sm:$0xff]   ;;  %v3539_v26 = vld [vmem:[%s5999_s1 + $0xcc] ss:$16 sps:$4 sm:$0xff]   ;;  %v3541_v27 = vld [vmem:[%s5999_s1 + $0xc0] ss:$16 sps:$4 sm:$0xff]  }
   0xa   :  { %v3542_v28 = vld [vmem:[%s5999_s1 + $0xc8] ss:$16 sps:$4 sm:$0xff]   ;;  %v3543_v29 = vld [vmem:[%s5999_s1 + $0xe4] ss:$16 sps:$4 sm:$0xff]   ;;  %v3545_v30 = vld [vmem:[%s5999_s1 + $0xec] ss:$16 sps:$4 sm:$0xff]  }
   0xb   :  { %281 = vmatpush1.bf16.msra.mxu0 %v3517_v11  ;;  %354 = vmatpush1.bf16.msra.mxu1 %v3518_v12  ;;  %v3547_v31 = vld [vmem:[%s5999_s1 + $0xe0] ss:$16 sps:$4 sm:$0xff]   ;;  %v3548_v32 = vld [vmem:[%s5999_s1 + $0xe8] ss:$16 sps:$4 sm:$0xff]   ;;  %v4169_v33 = vld [vmem:[%s6001_s5 + $0x4] ss:$16 sps:$4 sm:$0xff]  }
   0xc   :  { %282 = vmatprep.subr.bf16.mxu0 %v3519_v13  ;;  %355 = vmatprep.subr.bf16.mxu1 %v3521_v14  ;;  %v4174_v34 = vld [vmem:[%s6001_s5 + $0xc] ss:$16 sps:$4 sm:$0xff]   ;;  %v3549_v35 = vld [vmem:[%s6000_s0] sm:$0xff]   ;;  %v4187_v37 = vld [vmem:[%s6001_s5 + $0x8] ss:$16 sps:$4 sm:$0xff]   ;;  %v4416_v7 = vshrl.u32 %v72_v6, 7 }
   0xd   :  { %v4182_v36 = vld [vmem:[%s6001_s5] ss:$16 sps:$4 sm:$0xff]   ;;  %v4194_v38 = vld [vmem:[%s6001_s5 + $0x24] ss:$16 sps:$4 sm:$0xff]   ;;  %v4199_v39 = vld [vmem:[%s6001_s5 + $0x2c] ss:$16 sps:$4 sm:$0xff]  }
   0xe   :  { %v4204_v40 = vld [vmem:[%s6001_s5 + $0x20] ss:$16 sps:$4 sm:$0xff]   ;;  %v4211_v41 = vld [vmem:[%s6001_s5 + $0x28] ss:$16 sps:$4 sm:$0xff]   ;;  %v4218_v42 = vld [vmem:[%s6001_s5 + $0x44] ss:$16 sps:$4 sm:$0xff]  }
   0xf   :  { %283 = vmatpush1.bf16.msra.mxu0 %v3523_v15  ;;  %356 = vmatpush1.bf16.msra.mxu1 %v3524_v16  ;;  %v4223_v43 = vld [vmem:[%s6001_s5 + $0x4c] ss:$16 sps:$4 sm:$0xff]   ;;  %v4233_v45 = vld [vmem:[%s6001_s5 + $0x40] ss:$16 sps:$4 sm:$0xff]   ;;  %v4238_v46 = vld [vmem:[%s6001_s5 + $0x48] ss:$16 sps:$4 sm:$0xff]  }
  0x10   :  { %284 = vmatprep.subr.bf16.mxu0 %v3525_v17  ;;  %357 = vmatprep.subr.bf16.mxu1 %v3527_v18  ;;  %v3562_v44 = vld [vmem:[%s6000_s0 + $0x8] sm:$0xff]   ;;  %v4245_v47 = vld [vmem:[%s6001_s5 + $0x64] ss:$16 sps:$4 sm:$0xff]   ;;  %v4257_v49 = vld [vmem:[%s6001_s5 + $0x60] ss:$16 sps:$4 sm:$0xff]   ;;  %6017 = vst [vmem:[#allocation4_spill] sm:$0xff] %v4416_v7 }
  0x11   :  { %v4252_v48 = vld [vmem:[%s6001_s5 + $0x6c] ss:$16 sps:$4 sm:$0xff]   ;;  %v4262_v50 = vld [vmem:[%s6001_s5 + $0x68] ss:$16 sps:$4 sm:$0xff]   ;;  %v4269_v51 = vld [vmem:[%s6001_s5 + $0x84] ss:$16 sps:$4 sm:$0xff]  }
  0x12   :  { %v4276_v52 = vld [vmem:[%s6001_s5 + $0x8c] ss:$16 sps:$4 sm:$0xff]   ;;  %v3575_v53 = vld [vmem:[%s6000_s0 + $0x10] sm:$0xff]   ;;  %v4291_v55 = vld [vmem:[%s6001_s5 + $0x88] ss:$16 sps:$4 sm:$0xff]   ;;  %v6011_v8 = vsub.s32 2, %v4416_v7 }
  0x13   :  { %285 = vmatpush1.bf16.msra.mxu0 %v3529_v19  ;;  %358 = vmatpush1.bf16.msra.mxu1 %v3530_v20  ;;  %v4286_v54 = vld [vmem:[%s6001_s5 + $0x80] ss:$16 sps:$4 sm:$0xff]   ;;  %v4296_v56 = vld [vmem:[%s6001_s5 + $0xa4] ss:$16 sps:$4 sm:$0xff]   ;;  %v4301_v57 = vld [vmem:[%s6001_s5 + $0xac] ss:$16 sps:$4 sm:$0xff]  }
  0x14   :  { %286 = vmatprep.subr.bf16.mxu0 %v3531_v21  ;;  %359 = vmatprep.subr.bf16.mxu1 %v3533_v22  ;;  %v4310_v58 = vld [vmem:[%s6001_s5 + $0xa0] ss:$16 sps:$4 sm:$0xff]   ;;  %v4315_v59 = vld [vmem:[%s6001_s5 + $0xa8] ss:$16 sps:$4 sm:$0xff]   ;;  %v4320_v60 = vld [vmem:[%s6001_s5 + $0xc4] ss:$16 sps:$4 sm:$0xff]  }
  0x15   :  { %v4325_v61 = vld [vmem:[%s6001_s5 + $0xcc] ss:$16 sps:$4 sm:$0xff]   ;;  %v4339_v63 = vld [vmem:[%s6001_s5 + $0xc0] ss:$16 sps:$4 sm:$0xff]   ;;  %v4344_v0 = vld [vmem:[%s6001_s5 + $0xc8] ss:$16 sps:$4 sm:$0xff]  }
  0x16   :  { %v3588_v62 = vld [vmem:[%s6000_s0 + $0x18] sm:$0xff]   ;;  %v4349_v2 = vld [vmem:[%s6001_s5 + $0xe4] ss:$16 sps:$4 sm:$0xff]   ;;  %v4365_v4 = vld [vmem:[%s6001_s5 + $0xe0] ss:$16 sps:$4 sm:$0xff]   ;;  %v6009_v9 = vsub.s32 3, %v4416_v7 }
  0x17   :  { %287 = vmatpush1.bf16.msra.mxu0 %v3535_v23  ;;  %360 = vmatpush1.bf16.msra.mxu1 %v3536_v24  ;;  %v4358_v3 = vld [vmem:[%s6001_s5 + $0xec] ss:$16 sps:$4 sm:$0xff]   ;;  %v4370_v5 = vld [vmem:[%s6001_s5 + $0xe8] ss:$16 sps:$4 sm:$0xff]   ;;  %v6012_v10 = vsub.s32 0, %v4416_v7  ;;  %v6010_v12 = vsub.s32 1, %v4416_v7 }
  0x18   :  { %288 = vmatprep.subr.bf16.mxu0 %v3537_v25  ;;  %361 = vmatprep.subr.bf16.mxu1 %v3539_v26  ;;  %v70_v11 = vld [vmem:[%s6002_s2] sm:$0xf] }
  0x19   :  { %v4427_v13 = vrot.slane %v70_v11, %v6011_v8  ;;  %v4435_v16 = vrot.slane %v70_v11, %v6009_v9  ;;  %v75_v17 = vrot.slane %v70_v11, %v6012_v10  ;;  %v79_v20 = vrot.slane %v70_v11, %v6010_v12 }
  0x1b   :  { %289 = vmatpush1.bf16.msra.mxu0 %v3541_v27  ;;  %362 = vmatpush1.bf16.msra.mxu1 %v3542_v28 }
  0x1c   :  { %290 = vmatprep.subr.bf16.mxu0 %v3543_v29  ;;  %363 = vmatprep.subr.bf16.mxu1 %v3545_v30 }
  0x1f   :  { %291 = vmatpush1.bf16.msra.mxu0 %v3547_v31  ;;  %364 = vmatpush1.bf16.msra.mxu1 %v3548_v32 }
  0x20   :  { %650 = vmatprep.subr.bf16.mxu0 %v4169_v33  ;;  %691 = vmatprep.subr.bf16.mxu1 %v4174_v34 }
  0x22   :  { %309 = vmatmul.mubr.bf16.vlgmr.msra.gmra.mrb[0].mxu0 %v3549_v35  ;;  %382 = vmatmul.mubr.bf16.vlgmr.msra.gmra.mrb[0].mxu1 %v3549_v35 }
  0x23   :  { %651 = vmatpush1.bf16.msra.mxu0 %v4182_v36  ;;  %692 = vmatpush1.bf16.msra.mxu1 %v4187_v37 }
  0x24   :  { %652 = vmatprep.subr.bf16.mxu0 %v4194_v38  ;;  %693 = vmatprep.subr.bf16.mxu1 %v4199_v39 }
  0x25   :  { %318 = vmatprep.mubr.bf16.mxu0 %v6013_v1  ;;  %391 = vmatprep.mubr.bf16.mxu1 %v6013_v1 }
  0x27   :  { %653 = vmatpush1.bf16.msra.mxu0 %v4204_v40  ;;  %694 = vmatpush1.bf16.msra.mxu1 %v4211_v41 }
  0x28   :  { %654 = vmatprep.subr.bf16.mxu0 %v4218_v42  ;;  %695 = vmatprep.subr.bf16.mxu1 %v4223_v43 }
  0x2a   :  { %319 = vmatmul.mubr.bf16.gmra.mrb[4].mxu0 %v3562_v44  ;;  %392 = vmatmul.mubr.bf16.gmra.mrb[4].mxu1 %v3562_v44 }
  0x2b   :  { %655 = vmatpush1.bf16.msra.mxu0 %v4233_v45  ;;  %696 = vmatpush1.bf16.msra.mxu1 %v4238_v46 }
  0x2c   :  { %656 = vmatprep.subr.bf16.mxu0 %v4245_v47  ;;  %697 = vmatprep.subr.bf16.mxu1 %v4252_v48 }
  0x2d   :  { %328 = vmatprep.mubr.bf16.mxu0 %v6013_v1  ;;  %401 = vmatprep.mubr.bf16.mxu1 %v6013_v1 }
  0x2f   :  { %657 = vmatpush1.bf16.msra.mxu0 %v4257_v49  ;;  %698 = vmatpush1.bf16.msra.mxu1 %v4262_v50 }
  0x30   :  { %658 = vmatprep.subr.bf16.mxu0 %v4269_v51  ;;  %699 = vmatprep.subr.bf16.mxu1 %v4276_v52 }
  0x32   :  { %329 = vmatmul.mubr.bf16.gmra.mrb[8].mxu0 %v3575_v53  ;;  %402 = vmatmul.mubr.bf16.gmra.mrb[8].mxu1 %v3575_v53 }
  0x33   :  { %659 = vmatpush1.bf16.msra.mxu0 %v4286_v54  ;;  %700 = vmatpush1.bf16.msra.mxu1 %v4291_v55 }
  0x34   :  { %660 = vmatprep.subr.bf16.mxu0 %v4296_v56  ;;  %701 = vmatprep.subr.bf16.mxu1 %v4301_v57 }
  0x35   :  { %338 = vmatprep.mubr.bf16.mxu0 %v6013_v1  ;;  %411 = vmatprep.mubr.bf16.mxu1 %v6013_v1 }
  0x37   :  { %661 = vmatpush1.bf16.msra.mxu0 %v4310_v58  ;;  %702 = vmatpush1.bf16.msra.mxu1 %v4315_v59 }
  0x38   :  { %662 = vmatprep.subr.bf16.mxu0 %v4320_v60  ;;  %703 = vmatprep.subr.bf16.mxu1 %v4325_v61 }
  0x3a   :  { %339 = vmatmul.mubr.bf16.gmra.mrb[12].mxu0 %v3588_v62  ;;  %412 = vmatmul.mubr.bf16.gmra.mrb[12].mxu1 %v3588_v62 }
  0x3b   :  { %663 = vmatpush1.bf16.msra.mxu0 %v4339_v63  ;;  %704 = vmatpush1.bf16.msra.mxu1 %v4344_v0 }
  0x3c   :  { %664 = vmatprep.subr.bf16.mxu0 %v4349_v2  ;;  %705 = vmatprep.subr.bf16.mxu1 %v4358_v3 }
  0x3d   :  { %682 = vmatprep.mubr.bf16.mxu0 %v6013_v1  ;;  %723 = vmatprep.mubr.bf16.mxu1 %v6013_v1 }
  0x3f   :  { %665 = vmatpush1.bf16.msra.mxu0 %v4365_v4  ;;  %706 = vmatpush1.bf16.msra.mxu1 %v4370_v5 }
  0x40   :  { %772 = vmatprep.subr.bf16.mxu0 %v4169_v33  ;;  %813 = vmatprep.subr.bf16.mxu1 %v4174_v34 }
  0x42   :  { %683 = vmatmul.mubr.bf16.vlgmr.msra.gmra.mrb[16].mxu0 %v6013_v1  ;;  %724 = vmatmul.mubr.bf16.vlgmr.msra.gmra.mrb[16].mxu1 %v6013_v1 }
  0x43   :  { %773 = vmatpush1.bf16.msra.mxu0 %v4182_v36  ;;  %814 = vmatpush1.bf16.msra.mxu1 %v4187_v37 }
  0x44   :  { %774 = vmatprep.subr.bf16.mxu0 %v4194_v38  ;;  %815 = vmatprep.subr.bf16.mxu1 %v4199_v39 }
  0x45   :  { %804 = vmatprep.mubr.bf16.mxu0 %v6013_v1  ;;  %845 = vmatprep.mubr.bf16.mxu1 %v6013_v1 }
  0x47   :  { %775 = vmatpush1.bf16.msra.mxu0 %v4204_v40  ;;  %816 = vmatpush1.bf16.msra.mxu1 %v4211_v41 }
  0x48   :  { %776 = vmatprep.subr.bf16.mxu0 %v4218_v42  ;;  %817 = vmatprep.subr.bf16.mxu1 %v4223_v43 }
  0x4b   :  { %777 = vmatpush1.bf16.msra.mxu0 %v4233_v45  ;;  %818 = vmatpush1.bf16.msra.mxu1 %v4238_v46 }
  0x4c   :  { %778 = vmatprep.subr.bf16.mxu0 %v4245_v47  ;;  %819 = vmatprep.subr.bf16.mxu1 %v4252_v48 }
  0x4f   :  { %779 = vmatpush1.bf16.msra.mxu0 %v4257_v49  ;;  %820 = vmatpush1.bf16.msra.mxu1 %v4262_v50 }
  0x50   :  { %780 = vmatprep.subr.bf16.mxu0 %v4269_v51  ;;  %821 = vmatprep.subr.bf16.mxu1 %v4276_v52 }
  0x53   :  { %781 = vmatpush1.bf16.msra.mxu0 %v4286_v54  ;;  %822 = vmatpush1.bf16.msra.mxu1 %v4291_v55 }
  0x54   :  { %782 = vmatprep.subr.bf16.mxu0 %v4296_v56  ;;  %823 = vmatprep.subr.bf16.mxu1 %v4301_v57 }
  0x57   :  { %783 = vmatpush1.bf16.msra.mxu0 %v4310_v58  ;;  %824 = vmatpush1.bf16.msra.mxu1 %v4315_v59 }
  0x58   :  { %784 = vmatprep.subr.bf16.mxu0 %v4320_v60  ;;  %825 = vmatprep.subr.bf16.mxu1 %v4325_v61 }
  0x5b   :  { %785 = vmatpush1.bf16.msra.mxu0 %v4339_v63  ;;  %826 = vmatpush1.bf16.msra.mxu1 %v4344_v0 }
  0x5c   :  { %786 = vmatprep.subr.bf16.mxu0 %v4349_v2  ;;  %827 = vmatprep.subr.bf16.mxu1 %v4358_v3 }
  0x5f   :  { %787 = vmatpush1.bf16.msra.mxu0 %v4365_v4  ;;  %828 = vmatpush1.bf16.msra.mxu1 %v4370_v5 }
  0x60   :  { %899 = vmatprep.subr.bf16.mxu0 %v4169_v33  ;;  %940 = vmatprep.subr.bf16.mxu1 %v4174_v34 }
  0xf5   :  { %v4429_v14 = vpop.f32.mrb[0].mxu0  ;;  %v4431_v15 = vpop.f32.mrb[0].mxu1 }
  0xf6   :  { %v312_v18 = vpop.f32.mrb[1].mxu0  ;;  %v385_v19 = vpop.f32.mrb[1].mxu1 }
  0xf7   :  { %v314_v21 = vpop.f32.mrb[2].mxu0  ;;  %v387_v22 = vpop.f32.mrb[2].mxu1 }
  0xf8   :  { %v4441_v23 = vadd.f32 %v314_v21, %v75_v17  ;;  %v316_v24 = vpop.f32.mrb[3].mxu0  ;;  %v4444_v25 = vadd.f32 %v387_v22, %v4427_v13  ;;  %v389_v26 = vpop.f32.mrb[3].mxu1 }
  0xf9   :  { %v4446_v27 = vadd.f32 %v316_v24, %v79_v20  ;;  %v4449_v28 = vadd.f32 %v389_v26, %v4435_v16 }
  0xfd   :  { %v320_v29 = vpop.f32.mrb[4].mxu0  ;;  %v393_v30 = vpop.f32.mrb[4].mxu1 }
  0xfe   :  { %v4451_v31 = vadd.f32 %v320_v29, %v75_v17  ;;  %v322_v32 = vpop.f32.mrb[5].mxu0  ;;  %v4454_v35 = vadd.f32 %v393_v30, %v4427_v13  ;;  %v395_v44 = vpop.f32.mrb[5].mxu1 }
  0xff   :  { %v4456_v53 = vadd.f32 %v322_v32, %v79_v20  ;;  %v324_v62 = vpop.f32.mrb[6].mxu0  ;;  %v4459_v6 = vadd.f32 %v395_v44, %v4435_v16  ;;  %v397_v11 = vpop.f32.mrb[6].mxu1 }
 0x100   :  { %v4461_v21 = vadd.f32 %v324_v62, %v75_v17  ;;  %v326_v22 = vpop.f32.mrb[7].mxu0  ;;  %v4464_v24 = vadd.f32 %v397_v11, %v4427_v13  ;;  %v399_v26 = vpop.f32.mrb[7].mxu1 }
 0x101   :  { %6018 = vst [vmem:[#allocation5_spill] sm:$0xff] %v4459_v6  ;;  %v4466_v29 = vadd.f32 %v326_v22, %v79_v20  ;;  %v4469_v30 = vadd.f32 %v399_v26, %v4435_v16 }
 0x102   :  { %6019 = vst [vmem:[#allocation6_spill] sm:$0xff] %v4461_v21  ;;  %6020 = vst [vmem:[#allocation7_spill] sm:$0xff] %v4464_v24 }
 0x103   :  { %6021 = vst [vmem:[#allocation8_spill] sm:$0xff] %v4466_v29  ;;  %6022 = vst [vmem:[#allocation9_spill] sm:$0xff] %v4469_v30 }
 0x105   :  { %v330_v9 = vpop.f32.mrb[8].mxu0  ;;  %v403_v32 = vpop.f32.mrb[8].mxu1 }
 0x106   :  { %v4471_v12 = vadd.f32 %v330_v9, %v75_v17  ;;  %v332_v8 = vpop.f32.mrb[9].mxu0  ;;  %v4474_v44 = vadd.f32 %v403_v32, %v4427_v13  ;;  %v405_v62 = vpop.f32.mrb[9].mxu1 }
 0x107   :  { %v4476_v10 = vadd.f32 %v332_v8, %v79_v20  ;;  %v334_v1 = vpop.f32.mrb[10].mxu0  ;;  %v4479_v11 = vadd.f32 %v405_v62, %v4435_v16  ;;  %v407_v22 = vpop.f32.mrb[10].mxu1 }
 0x108   :  { %6023 = vst [vmem:[#allocation10_spill] sm:$0xff] %v4471_v12  ;;  %6024 = vst [vmem:[#allocation11_spill] sm:$0xff] %v4474_v44  ;;  %v4481_v7 = vadd.f32 %v334_v1, %v75_v17  ;;  %v336_v26 = vpop.f32.mrb[11].mxu0  ;;  %v4484_v30 = vadd.f32 %v407_v22, %v4427_v13  ;;  %v409_v9 = vpop.f32.mrb[11].mxu1 }
 0x109   :  { %6025 = vst [vmem:[#allocation12_spill] sm:$0xff] %v4476_v10  ;;  %6026 = vst [vmem:[#allocation13_spill] sm:$0xff] %v4479_v11  ;;  %v4486_v12 = vadd.f32 %v336_v26, %v79_v20  ;;  %v4489_v32 = vadd.f32 %v409_v9, %v4435_v16 }
 0x10a   :  { %6027 = vst [vmem:[#allocation14_spill] sm:$0xff] %v4481_v7  ;;  %6028 = vst [vmem:[#allocation15_spill] sm:$0xff] %v4484_v30 }
 0x10b   :  { %6029 = vst [vmem:[#allocation16_spill] sm:$0xff] %v4486_v12  ;;  %6030 = vst [vmem:[#allocation17_spill] sm:$0xff] %v4489_v32 }
 0x10d   :  { %v340_v44 = vpop.f32.mrb[12].mxu0  ;;  %v413_v8 = vpop.f32.mrb[12].mxu1 }
 0x10e   :  { %v4491_v10 = vadd.f32 %v340_v44, %v75_v17  ;;  %v342_v29 = vpop.f32.mrb[13].mxu0  ;;  %v4494_v62 = vadd.f32 %v413_v8, %v4427_v13  ;;  %v415_v1 = vpop.f32.mrb[13].mxu1 }
 0x10f   :  { %v4496_v7 = vadd.f32 %v342_v29, %v79_v20  ;;  %v344_v11 = vpop.f32.mrb[14].mxu0  ;;  %v4499_v22 = vadd.f32 %v415_v1, %v4435_v16  ;;  %v417_v26 = vpop.f32.mrb[14].mxu1  ;;  %v311_v29 = vadd.f32 %v4429_v14, %v75_v17  ;;  %v313_v1 = vadd.f32 %v312_v18, %v79_v20 }
 0x110   :  { %6031 = vst [vmem:[#allocation18_spill] sm:$0xff] %v4491_v10  ;;  %6032 = vst [vmem:[#allocation19_spill] sm:$0xff] %v4494_v62  ;;  %v4501_v12 = vadd.f32 %v344_v11, %v75_v17  ;;  %v346_v9 = vpop.f32.mrb[15].mxu0  ;;  %v4504_v32 = vadd.f32 %v417_v26, %v4427_v13  ;;  %v419_v44 = vpop.f32.mrb[15].mxu1 }
 0x111   :  { %6033 = vst [vmem:[#allocation20_spill] sm:$0xff] %v4496_v7  ;;  %6034 = vst [vmem:[#allocation21_spill] sm:$0xff] %v4499_v22  ;;  %v4506_v10 = vadd.f32 %v346_v9, %v79_v20  ;;  %v4509_v8 = vadd.f32 %v419_v44, %v4435_v16  ;;  %v384_v7 = vadd.f32 %v4431_v15, %v4427_v13 }
 0x112   :  { %6035 = vst [vmem:[#allocation22_spill] sm:$0xff] %v4501_v12  ;;  %6036 = vst [vmem:[#allocation23_spill] sm:$0xff] %v4504_v32  ;;  %v386_v22 = vadd.f32 %v385_v19, %v4435_v16 }
 0x113   :  { %6037 = vst [vmem:[#allocation24_spill] sm:$0xff] %v4506_v10  ;;  %6038 = vst [vmem:[#allocation25_spill] sm:$0xff] %v4509_v8 }
 0x115   :  { %v684_v11 = vpop.f32.mrb[16].mxu0  ;;  %v725_v12 = vpop.f32.mrb[16].mxu1 }
 0x116   :  { %v732_v62 = vadd.f32 %v684_v11, %v311_v29  ;;  %v734_v30 = vadd.f32 %v725_v12, %v384_v7  ;;  %v686_v26 = vpop.f32.mrb[17].mxu0  ;;  %v727_v32 = vpop.f32.mrb[17].mxu1  ;;  %v6039_v11 = vmov 0  }
 0x117   :  { %v733_v24 = vadd.f32 %v686_v26, %v313_v1  ;;  %v735_v9 = vadd.f32 %v727_v32, %v386_v22  ;;  %v688_v10 = vpop.f32.mrb[18].mxu0  ;;  %v729_v21 = vpop.f32.mrb[18].mxu1 }
 0x118   :  { %v3333_v44 = vmul.f32 -1.442695, %v732_v62  ;;  %v689_v8 = vpop.f32.mrb[19].mxu0  ;;  %v730_v6 = vpop.f32.mrb[19].mxu1 }
 0x119   :  { %v3334_v14 = vmul.f32 -1.442695, %v733_v24  ;;  %v3335_v13 = vmul.f32 -1.442695, %v735_v9  ;;  %v760_v6 = vld [vmem:[%s6003_s6] sm:$0xff] }
 0x11a   :  { %3697 = vpow2.f32 %v3333_v44 }
 0x11b   :  { %3699 = vpow2.f32 %v3334_v14 }
 0x11c   :  { %3701 = vpow2.f32 %v3335_v13 }
 0x11d   :  { %3703 = vtanh.f32 %v734_v30 }
 0x124   :  { %v3698_v15 = vpop.eup %3697 }
 0x125   :  { %v3700_v17 = vpop.eup %3699  ;;  %v739_v16 = vadd.f32 1.0, %v3698_v15 }
 0x126   :  { %v745_v18 = vadd.f32 1.0, %v3700_v17  ;;  %v3702_v7 = vpop.eup %3701 }
 0x127   :  { %3705 = vrcp.f32 %v739_v16  ;;  %v3704_v12 = vpop.eup %3703  ;;  %v752_v21 = vadd.f32 1.0, %v3702_v7 }
 0x128   :  { %3707 = vrcp.f32 %v745_v18 }
 0x129   :  { %3709 = vrcp.f32 %v752_v21 }
 0x131   :  { %v3706_v19 = vpop.eup %3705 }
 0x132   :  { %v3708_v10 = vpop.eup %3707  ;;  %v756_v20 = vmul.f32 %v3706_v19, %v3704_v12 }
 0x133   :  { %v755_v32 = vmul.f32 0.0, %v3708_v10  ;;  %v3710_v30 = vpop.eup %3709 }
 0x135   :  { %v757_v24 = vadd.f32 %v756_v20, %v755_v32 }
 0x137   :  { %3711 = vtanh.f32 %v757_v24  ;;  %v4518_v62 = vmul.f32 %v760_v6, %v757_v24 }
 0x141   :  { %v3712_v22 = vpop.eup %3711 }
 0x142   :  { %v759_v8 = vmul.f32 %v3712_v22, %v3710_v30 }
 0x144   :  { %v4520_v29 = vmul.f32 %v760_v6, %v759_v8 }
 0x146   :  { %v771_v1 = vpack.c.bf16 %v4520_v29, %v4520_v29 }
 0x148   :  { %805 = vmatmul.mubr.bf16.vlgmr.msra.gmra.mrb[20].mxu0 %v771_v1  ;;  %846 = vmatmul.mubr.bf16.vlgmr.msra.gmra.mrb[20].mxu1 %v771_v1 }
 0x149   :  { %900 = vmatpush1.bf16.msra.mxu0 %v4182_v36  ;;  %941 = vmatpush1.bf16.msra.mxu1 %v4187_v37 }
 0x14a   :  { %901 = vmatprep.subr.bf16.mxu0 %v4194_v38  ;;  %942 = vmatprep.subr.bf16.mxu1 %v4199_v39 }
 0x14b   :  { %931 = vmatprep.mubr.bf16.mxu0 %v6039_v11  ;;  %972 = vmatprep.mubr.bf16.mxu1 %v6039_v11 }
 0x14d   :  { %902 = vmatpush1.bf16.msra.mxu0 %v4204_v40  ;;  %943 = vmatpush1.bf16.msra.mxu1 %v4211_v41 }
 0x14e   :  { %903 = vmatprep.subr.bf16.mxu0 %v4218_v42  ;;  %944 = vmatprep.subr.bf16.mxu1 %v4223_v43 }
 0x151   :  { %904 = vmatpush1.bf16.msra.mxu0 %v4233_v45  ;;  %945 = vmatpush1.bf16.msra.mxu1 %v4238_v46 }
 0x152   :  { %905 = vmatprep.subr.bf16.mxu0 %v4245_v47  ;;  %946 = vmatprep.subr.bf16.mxu1 %v4252_v48 }
 0x155   :  { %906 = vmatpush1.bf16.msra.mxu0 %v4257_v49  ;;  %947 = vmatpush1.bf16.msra.mxu1 %v4262_v50 }
 0x156   :  { %907 = vmatprep.subr.bf16.mxu0 %v4269_v51  ;;  %948 = vmatprep.subr.bf16.mxu1 %v4276_v52 }
 0x159   :  { %908 = vmatpush1.bf16.msra.mxu0 %v4286_v54  ;;  %949 = vmatpush1.bf16.msra.mxu1 %v4291_v55 }
 0x15a   :  { %909 = vmatprep.subr.bf16.mxu0 %v4296_v56  ;;  %950 = vmatprep.subr.bf16.mxu1 %v4301_v57 }
 0x15d   :  { %910 = vmatpush1.bf16.msra.mxu0 %v4310_v58  ;;  %951 = vmatpush1.bf16.msra.mxu1 %v4315_v59 }
 0x15e   :  { %911 = vmatprep.subr.bf16.mxu0 %v4320_v60  ;;  %952 = vmatprep.subr.bf16.mxu1 %v4325_v61 }
 0x161   :  { %912 = vmatpush1.bf16.msra.mxu0 %v4339_v63  ;;  %953 = vmatpush1.bf16.msra.mxu1 %v4344_v0 }
 0x162   :  { %913 = vmatprep.subr.bf16.mxu0 %v4349_v2  ;;  %954 = vmatprep.subr.bf16.mxu1 %v4358_v3 }
 0x165   :  { %914 = vmatpush1.bf16.msra.mxu0 %v4365_v4  ;;  %955 = vmatpush1.bf16.msra.mxu1 %v4370_v5 }
 0x166   :  { %1026 = vmatprep.subr.bf16.mxu0 %v4169_v33  ;;  %1067 = vmatprep.subr.bf16.mxu1 %v4174_v34 }
 0x21b   :  { %v806_v26 = vpop.f32.mrb[20].mxu0  ;;  %v847_v9 = vpop.f32.mrb[20].mxu1 }
 0x21c   :  { %v854_v44 = vadd.f32 %v806_v26, %v4441_v23  ;;  %v856_v14 = vadd.f32 %v847_v9, %v4444_v25  ;;  %v808_v13 = vpop.f32.mrb[21].mxu0  ;;  %v849_v15 = vpop.f32.mrb[21].mxu1  ;;  %v3339_v9 = vld [vmem:[%s6003_s6 + $0x8] sm:$0xff] }
 0x21d   :  { %v855_v17 = vadd.f32 %v808_v13, %v4446_v27  ;;  %v857_v16 = vadd.f32 %v849_v15, %v4449_v28  ;;  %v810_v18 = vpop.f32.mrb[22].mxu0  ;;  %v851_v7 = vpop.f32.mrb[22].mxu1 }
 0x21e   :  { %v3336_v12 = vmul.f32 -1.442695, %v854_v44  ;;  %v811_v19 = vpop.f32.mrb[23].mxu0  ;;  %v852_v10 = vpop.f32.mrb[23].mxu1 }
 0x21f   :  { %v3337_v20 = vmul.f32 -1.442695, %v855_v17  ;;  %v3338_v21 = vmul.f32 -1.442695, %v857_v16 }
 0x220   :  { %3713 = vpow2.f32 %v3336_v12 }
 0x221   :  { %3715 = vpow2.f32 %v3337_v20 }
 0x222   :  { %3717 = vpow2.f32 %v3338_v21 }
 0x223   :  { %3719 = vtanh.f32 %v856_v14 }
 0x22a   :  { %v3714_v32 = vpop.eup %3713 }
 0x22b   :  { %v3716_v6 = vpop.eup %3715  ;;  %v861_v23 = vadd.f32 1.0, %v3714_v32 }
 0x22c   :  { %v867_v25 = vadd.f32 1.0, %v3716_v6  ;;  %v3718_v27 = vpop.eup %3717 }
 0x22d   :  { %3721 = vrcp.f32 %v861_v23  ;;  %v3720_v24 = vpop.eup %3719  ;;  %v874_v8 = vadd.f32 1.0, %v3718_v27  ;;  %v6040_v27 = vld [vmem:[#allocation5_spill] sm:$0xff] }
 0x22e   :  { %3723 = vrcp.f32 %v867_v25 }
 0x22f   :  { %3725 = vrcp.f32 %v874_v8 }
 0x237   :  { %v3722_v28 = vpop.eup %3721 }
 0x238   :  { %v3724_v30 = vpop.eup %3723  ;;  %v878_v22 = vmul.f32 %v3722_v28, %v3720_v24 }
 0x239   :  { %v877_v1 = vmul.f32 %v3724_v30, %v4518_v62  ;;  %v3726_v15 = vpop.eup %3725 }
 0x23b   :  { %v879_v26 = vadd.f32 %v878_v22, %v877_v1 }
 0x23d   :  { %3727 = vtanh.f32 %v879_v26  ;;  %v887_v44 = vsub.f32 %v879_v26, %v4518_v62 }
 0x23f   :  { %v888_v14 = vmul.f32 %v3339_v9, %v887_v44 }
 0x241   :  { %v4568_v13 = vadd.f32 %v888_v14, %v4518_v62 }
 0x247   :  { %v3728_v17 = vpop.eup %3727 }
 0x248   :  { %v881_v16 = vmul.f32 %v3728_v17, %v3726_v15 }
 0x24a   :  { %v884_v18 = vsub.f32 %v881_v16, %v4520_v29  ;;  %v4571_v7 = vmul.f32 %v3339_v9, %v881_v16 }
 0x24c   :  { %v885_v12 = vmul.f32 %v3339_v9, %v884_v18 }
 0x24e   :  { %v4574_v19 = vadd.f32 %v885_v12, %v4520_v29 }
 0x250   :  { %v898_v10 = vpack.c.bf16 %v4574_v19, %v4574_v19 }
 0x252   :  { %932 = vmatmul.mubr.bf16.vlgmr.msra.gmra.mrb[24].mxu0 %v898_v10  ;;  %973 = vmatmul.mubr.bf16.vlgmr.msra.gmra.mrb[24].mxu1 %v898_v10 }
 0x253   :  { %1027 = vmatpush1.bf16.msra.mxu0 %v4182_v36  ;;  %1068 = vmatpush1.bf16.msra.mxu1 %v4187_v37 }
 0x254   :  { %1028 = vmatprep.subr.bf16.mxu0 %v4194_v38  ;;  %1069 = vmatprep.subr.bf16.mxu1 %v4199_v39 }
 0x255   :  { %1058 = vmatprep.mubr.bf16.mxu0 %v6039_v11  ;;  %1099 = vmatprep.mubr.bf16.mxu1 %v6039_v11 }
 0x257   :  { %1029 = vmatpush1.bf16.msra.mxu0 %v4204_v40  ;;  %1070 = vmatpush1.bf16.msra.mxu1 %v4211_v41 }
 0x258   :  { %1030 = vmatprep.subr.bf16.mxu0 %v4218_v42  ;;  %1071 = vmatprep.subr.bf16.mxu1 %v4223_v43 }
 0x25b   :  { %1031 = vmatpush1.bf16.msra.mxu0 %v4233_v45  ;;  %1072 = vmatpush1.bf16.msra.mxu1 %v4238_v46 }
 0x25c   :  { %1032 = vmatprep.subr.bf16.mxu0 %v4245_v47  ;;  %1073 = vmatprep.subr.bf16.mxu1 %v4252_v48 }
 0x25f   :  { %1033 = vmatpush1.bf16.msra.mxu0 %v4257_v49  ;;  %1074 = vmatpush1.bf16.msra.mxu1 %v4262_v50 }
 0x260   :  { %1034 = vmatprep.subr.bf16.mxu0 %v4269_v51  ;;  %1075 = vmatprep.subr.bf16.mxu1 %v4276_v52 }
 0x263   :  { %1035 = vmatpush1.bf16.msra.mxu0 %v4286_v54  ;;  %1076 = vmatpush1.bf16.msra.mxu1 %v4291_v55 }
 0x264   :  { %1036 = vmatprep.subr.bf16.mxu0 %v4296_v56  ;;  %1077 = vmatprep.subr.bf16.mxu1 %v4301_v57 }
 0x267   :  { %1037 = vmatpush1.bf16.msra.mxu0 %v4310_v58  ;;  %1078 = vmatpush1.bf16.msra.mxu1 %v4315_v59 }
 0x268   :  { %1038 = vmatprep.subr.bf16.mxu0 %v4320_v60  ;;  %1079 = vmatprep.subr.bf16.mxu1 %v4325_v61 }
 0x26b   :  { %1039 = vmatpush1.bf16.msra.mxu0 %v4339_v63  ;;  %1080 = vmatpush1.bf16.msra.mxu1 %v4344_v0 }
 0x26c   :  { %1040 = vmatprep.subr.bf16.mxu0 %v4349_v2  ;;  %1081 = vmatprep.subr.bf16.mxu1 %v4358_v3 }
 0x26f   :  { %1041 = vmatpush1.bf16.msra.mxu0 %v4365_v4  ;;  %1082 = vmatpush1.bf16.msra.mxu1 %v4370_v5 }
 0x270   :  { %1153 = vmatprep.subr.bf16.mxu0 %v4169_v33  ;;  %1194 = vmatprep.subr.bf16.mxu1 %v4174_v34 }
 0x325   :  { %v933_v62 = vpop.f32.mrb[24].mxu0  ;;  %v974_v20 = vpop.f32.mrb[24].mxu1 }
 0x326   :  { %v981_v21 = vadd.f32 %v933_v62, %v4451_v31  ;;  %v983_v32 = vadd.f32 %v974_v20, %v4454_v35  ;;  %v935_v6 = vpop.f32.mrb[25].mxu0  ;;  %v976_v23 = vpop.f32.mrb[25].mxu1  ;;  %v3343_v20 = vld [vmem:[%s6003_s6 + $0x10] sm:$0xff] }
 0x327   :  { %v982_v25 = vadd.f32 %v935_v6, %v4456_v53  ;;  %v984_v24 = vadd.f32 %v976_v23, %v6040_v27  ;;  %v937_v28 = vpop.f32.mrb[26].mxu0  ;;  %v978_v30 = vpop.f32.mrb[26].mxu1 }
 0x328   :  { %v3340_v22 = vmul.f32 -1.442695, %v981_v21  ;;  %v938_v8 = vpop.f32.mrb[27].mxu0  ;;  %v979_v1 = vpop.f32.mrb[27].mxu1 }
 0x329   :  { %v3341_v26 = vmul.f32 -1.442695, %v982_v25  ;;  %v3342_v9 = vmul.f32 -1.442695, %v984_v24 }
 0x32a   :  { %3729 = vpow2.f32 %v3340_v22 }
 0x32b   :  { %3731 = vpow2.f32 %v3341_v26 }
 0x32c   :  { %3733 = vpow2.f32 %v3342_v9 }
 0x32d   :  { %3735 = vtanh.f32 %v983_v32 }
 0x334   :  { %v3730_v44 = vpop.eup %3729 }
 0x335   :  { %v3732_v14 = vpop.eup %3731  ;;  %v988_v31 = vadd.f32 1.0, %v3730_v44 }
 0x336   :  { %v994_v35 = vadd.f32 1.0, %v3732_v14  ;;  %v3734_v53 = vpop.eup %3733 }
 0x337   :  { %3737 = vrcp.f32 %v988_v31  ;;  %v3736_v15 = vpop.eup %3735  ;;  %v1001_v12 = vadd.f32 1.0, %v3734_v53 }
 0x338   :  { %3739 = vrcp.f32 %v994_v35 }
 0x339   :  { %3741 = vrcp.f32 %v1001_v12 }
 0x341   :  { %v3738_v17 = vpop.eup %3737 }
 0x342   :  { %v3740_v16 = vpop.eup %3739  ;;  %v1005_v18 = vmul.f32 %v3738_v17, %v3736_v15 }
 0x343   :  { %v1004_v10 = vmul.f32 %v3740_v16, %v4568_v13  ;;  %v3742_v23 = vpop.eup %3741 }
 0x345   :  { %v1006_v62 = vadd.f32 %v1005_v18, %v1004_v10 }
 0x347   :  { %3743 = vtanh.f32 %v1006_v62  ;;  %v1014_v21 = vsub.f32 %v1006_v62, %v4568_v13 }
 0x349   :  { %v1015_v32 = vmul.f32 %v3343_v20, %v1014_v21 }
 0x34b   :  { %v4622_v6 = vadd.f32 %v1015_v32, %v4568_v13 }
 0x351   :  { %v3744_v25 = vpop.eup %3743 }
 0x352   :  { %v1008_v27 = vmul.f32 %v3744_v25, %v3742_v23 }
 0x354   :  { %v1011_v24 = vsub.f32 %v1008_v27, %v4574_v19  ;;  %v4625_v28 = vmul.f32 %v3343_v20, %v1008_v27 }
 0x356   :  { %v1012_v30 = vmul.f32 %v3343_v20, %v1011_v24  ;;  %v3347_v20 = vld [vmem:[%s6003_s6 + $0x18] sm:$0xff] }
 0x358   :  { %v4628_v22 = vadd.f32 %v1012_v30, %v4574_v19 }
 0x35a   :  { %v1025_v8 = vpack.c.bf16 %v4628_v22, %v4628_v22 }
 0x35c   :  { %1059 = vmatmul.mubr.bf16.vlgmr.msra.gmra.mrb[28].mxu0 %v1025_v8  ;;  %1100 = vmatmul.mubr.bf16.vlgmr.msra.gmra.mrb[28].mxu1 %v1025_v8 }
 0x35d   :  { %1154 = vmatpush1.bf16.msra.mxu0 %v4182_v36  ;;  %1195 = vmatpush1.bf16.msra.mxu1 %v4187_v37 }
 0x35e   :  { %1155 = vmatprep.subr.bf16.mxu0 %v4194_v38  ;;  %1196 = vmatprep.subr.bf16.mxu1 %v4199_v39  ;;  %v6041_v38 = vld [vmem:[#allocation6_spill] sm:$0xff] }
 0x35f   :  { %1185 = vmatprep.mubr.bf16.mxu0 %v6039_v11  ;;  %1226 = vmatprep.mubr.bf16.mxu1 %v6039_v11 }
 0x361   :  { %1156 = vmatpush1.bf16.msra.mxu0 %v4204_v40  ;;  %1197 = vmatpush1.bf16.msra.mxu1 %v4211_v41  ;;  %v6042_v40 = vld [vmem:[#allocation7_spill] sm:$0xff] }
 0x362   :  { %1157 = vmatprep.subr.bf16.mxu0 %v4218_v42  ;;  %1198 = vmatprep.subr.bf16.mxu1 %v4223_v43 }
 0x365   :  { %1158 = vmatpush1.bf16.msra.mxu0 %v4233_v45  ;;  %1199 = vmatpush1.bf16.msra.mxu1 %v4238_v46  ;;  %v6043_v45 = vld [vmem:[#allocation8_spill] sm:$0xff] }
 0x366   :  { %1159 = vmatprep.subr.bf16.mxu0 %v4245_v47  ;;  %1200 = vmatprep.subr.bf16.mxu1 %v4252_v48  ;;  %v6044_v47 = vld [vmem:[#allocation9_spill] sm:$0xff] }
 0x369   :  { %1160 = vmatpush1.bf16.msra.mxu0 %v4257_v49  ;;  %1201 = vmatpush1.bf16.msra.mxu1 %v4262_v50 }
 0x36a   :  { %1161 = vmatprep.subr.bf16.mxu0 %v4269_v51  ;;  %1202 = vmatprep.subr.bf16.mxu1 %v4276_v52 }
 0x36d   :  { %1162 = vmatpush1.bf16.msra.mxu0 %v4286_v54  ;;  %1203 = vmatpush1.bf16.msra.mxu1 %v4291_v55 }
 0x36e   :  { %1163 = vmatprep.subr.bf16.mxu0 %v4296_v56  ;;  %1204 = vmatprep.subr.bf16.mxu1 %v4301_v57 }
 0x371   :  { %1164 = vmatpush1.bf16.msra.mxu0 %v4310_v58  ;;  %1205 = vmatpush1.bf16.msra.mxu1 %v4315_v59 }
 0x372   :  { %1165 = vmatprep.subr.bf16.mxu0 %v4320_v60  ;;  %1206 = vmatprep.subr.bf16.mxu1 %v4325_v61 }
 0x375   :  { %1166 = vmatpush1.bf16.msra.mxu0 %v4339_v63  ;;  %1207 = vmatpush1.bf16.msra.mxu1 %v4344_v0 }
 0x376   :  { %1167 = vmatprep.subr.bf16.mxu0 %v4349_v2  ;;  %1208 = vmatprep.subr.bf16.mxu1 %v4358_v3 }
 0x379   :  { %1168 = vmatpush1.bf16.msra.mxu0 %v4365_v4  ;;  %1209 = vmatpush1.bf16.msra.mxu1 %v4370_v5 }
 0x37a   :  { %1280 = vmatprep.subr.bf16.mxu0 %v4169_v33  ;;  %1321 = vmatprep.subr.bf16.mxu1 %v4174_v34 }
 0x42f   :  { %v1060_v36 = vpop.f32.mrb[28].mxu0  ;;  %v1101_v37 = vpop.f32.mrb[28].mxu1 }
 0x430   :  { %v1108_v39 = vadd.f32 %v1060_v36, %v6041_v38  ;;  %v1110_v41 = vadd.f32 %v1101_v37, %v6042_v40  ;;  %v1062_v42 = vpop.f32.mrb[29].mxu0  ;;  %v1103_v43 = vpop.f32.mrb[29].mxu1  ;;  %v4708_v40 = vld [vmem:[%s6001_s5 + $0x2c] ss:$16 sps:$4 sm:$0xff]  }
 0x431   :  { %v1109_v46 = vadd.f32 %v1062_v42, %v6043_v45  ;;  %v1111_v48 = vadd.f32 %v1103_v43, %v6044_v47  ;;  %v1064_v13 = vpop.f32.mrb[30].mxu0  ;;  %v1105_v19 = vpop.f32.mrb[30].mxu1  ;;  %v4722_v42 = vld [vmem:[%s6001_s5 + $0x28] ss:$16 sps:$4 sm:$0xff]   ;;  %v4728_v43 = vld [vmem:[%s6001_s5 + $0x44] ss:$16 sps:$4 sm:$0xff]  }
 0x432   :  { %v3344_v1 = vmul.f32 -1.442695, %v1108_v39  ;;  %v1065_v26 = vpop.f32.mrb[31].mxu0  ;;  %v1106_v9 = vpop.f32.mrb[31].mxu1  ;;  %v4734_v45 = vld [vmem:[%s6001_s5 + $0x4c] ss:$16 sps:$4 sm:$0xff]  }
 0x433   :  { %v3345_v33 = vmul.f32 -1.442695, %v1109_v46  ;;  %v3346_v34 = vmul.f32 -1.442695, %v1111_v48  ;;  %v4740_v46 = vld [vmem:[%s6001_s5 + $0x40] ss:$16 sps:$4 sm:$0xff]  }
 0x434   :  { %3745 = vpow2.f32 %v3344_v1  ;;  %v4746_v47 = vld [vmem:[%s6001_s5 + $0x48] ss:$16 sps:$4 sm:$0xff]   ;;  %v4752_v48 = vld [vmem:[%s6001_s5 + $0x64] ss:$16 sps:$4 sm:$0xff]   ;;  %v4758_v13 = vld [vmem:[%s6001_s5 + $0x6c] ss:$16 sps:$4 sm:$0xff]  }
 0x435   :  { %3747 = vpow2.f32 %v3345_v33 }
 0x436   :  { %3749 = vpow2.f32 %v3346_v34 }
 0x437   :  { %3751 = vtanh.f32 %v1110_v41  ;;  %v4716_v41 = vld [vmem:[%s6001_s5 + $0x20] ss:$16 sps:$4 sm:$0xff]  }
 0x43e   :  { %v3746_v44 = vpop.eup %3745 }
 0x43f   :  { %v3748_v14 = vpop.eup %3747  ;;  %v1115_v31 = vadd.f32 1.0, %v3746_v44 }
 0x440   :  { %v1121_v35 = vadd.f32 1.0, %v3748_v14  ;;  %v3750_v53 = vpop.eup %3749 }
 0x441   :  { %3753 = vrcp.f32 %v1115_v31  ;;  %v3752_v15 = vpop.eup %3751  ;;  %v1128_v12 = vadd.f32 1.0, %v3750_v53 }
 0x442   :  { %3755 = vrcp.f32 %v1121_v35 }
 0x443   :  { %3757 = vrcp.f32 %v1128_v12  ;;  %v3351_v12 = vld [vmem:[%s6003_s6 + $0x20] sm:$0xff] }
 0x44b   :  { %v3754_v17 = vpop.eup %3753 }
 0x44c   :  { %v3756_v16 = vpop.eup %3755  ;;  %v1132_v18 = vmul.f32 %v3754_v17, %v3752_v15 }
 0x44d   :  { %v1131_v10 = vmul.f32 %v3756_v16, %v4622_v6  ;;  %v3758_v25 = vpop.eup %3757 }
 0x44f   :  { %v1133_v62 = vadd.f32 %v1132_v18, %v1131_v10 }
 0x451   :  { %3759 = vtanh.f32 %v1133_v62  ;;  %v1141_v21 = vsub.f32 %v1133_v62, %v4622_v6 }
 0x453   :  { %v1142_v32 = vmul.f32 %v3347_v20, %v1141_v21 }
 0x455   :  { %v4676_v23 = vadd.f32 %v1142_v32, %v4622_v6  ;;  %v4690_v6 = vld [vmem:[%s6001_s5] ss:$16 sps:$4 sm:$0xff]  }
 0x45b   :  { %v3760_v27 = vpop.eup %3759 }
 0x45c   :  { %v1135_v24 = vmul.f32 %v3760_v27, %v3758_v25 }
 0x45e   :  { %v1138_v30 = vsub.f32 %v1135_v24, %v4628_v22  ;;  %v1144_v8 = vmul.f32 %v3347_v20, %v1135_v24 }
 0x460   :  { %v1139_v36 = vmul.f32 %v3347_v20, %v1138_v30  ;;  %v4680_v37 = vpack.c.bf16 %v1144_v8, %v4625_v28  ;;  %v4696_v28 = vld [vmem:[%s6001_s5 + $0x8] ss:$16 sps:$4 sm:$0xff]  }
 0x462   :  { %v4683_v38 = vadd.f32 %v1139_v36, %v4628_v22  ;;  %v4702_v22 = vld [vmem:[%s6001_s5 + $0x24] ss:$16 sps:$4 sm:$0xff]  }
 0x464   :  { %v1152_v39 = vpack.c.bf16 %v4683_v38, %v4683_v38 }
 0x466   :  { %1186 = vmatmul.mubr.bf16.vlgmr.msra.gmra.mrb[32].mxu0 %v1152_v39  ;;  %1227 = vmatmul.mubr.bf16.vlgmr.msra.gmra.mrb[32].mxu1 %v1152_v39  ;;  %v4840_v39 = vld [vmem:[%s6001_s5 + $0x84] ss:$16 sps:$4 sm:$0xff]  }
 0x467   :  { %1281 = vmatpush1.bf16.msra.mxu0 %v4690_v6  ;;  %1322 = vmatpush1.bf16.msra.mxu1 %v4696_v28 }
 0x468   :  { %1282 = vmatprep.subr.bf16.mxu0 %v4702_v22  ;;  %1323 = vmatprep.subr.bf16.mxu1 %v4708_v40 }
 0x469   :  { %1312 = vmatprep.mubr.bf16.mxu0 %v6039_v11  ;;  %1353 = vmatprep.mubr.bf16.mxu1 %v6039_v11 }
 0x46b   :  { %1283 = vmatpush1.bf16.msra.mxu0 %v4716_v41  ;;  %1324 = vmatpush1.bf16.msra.mxu1 %v4722_v42 }
 0x46c   :  { %1284 = vmatprep.subr.bf16.mxu0 %v4728_v43  ;;  %1325 = vmatprep.subr.bf16.mxu1 %v4734_v45 }
 0x46f   :  { %1285 = vmatpush1.bf16.msra.mxu0 %v4740_v46  ;;  %1326 = vmatpush1.bf16.msra.mxu1 %v4746_v47 }
 0x470   :  { %1286 = vmatprep.subr.bf16.mxu0 %v4752_v48  ;;  %1327 = vmatprep.subr.bf16.mxu1 %v4758_v13 }
 0x473   :  { %1287 = vmatpush1.bf16.msra.mxu0 %v4257_v49  ;;  %1328 = vmatpush1.bf16.msra.mxu1 %v4262_v50  ;;  %v4782_v49 = vld [vmem:[%s6001_s5 + $0x4] ss:$16 sps:$4 sm:$0xff]   ;;  %v4788_v50 = vld [vmem:[%s6001_s5 + $0xc] ss:$16 sps:$4 sm:$0xff]  }
 0x474   :  { %1288 = vmatprep.subr.bf16.mxu0 %v4269_v51  ;;  %1329 = vmatprep.subr.bf16.mxu1 %v4276_v52 }
 0x477   :  { %1289 = vmatpush1.bf16.msra.mxu0 %v4286_v54  ;;  %1330 = vmatpush1.bf16.msra.mxu1 %v4291_v55  ;;  %v6045_v54 = vld [vmem:[#allocation10_spill] sm:$0xff] }
 0x478   :  { %1290 = vmatprep.subr.bf16.mxu0 %v4296_v56  ;;  %1331 = vmatprep.subr.bf16.mxu1 %v4301_v57  ;;  %v6046_v56 = vld [vmem:[#allocation11_spill] sm:$0xff] }
 0x47b   :  { %1291 = vmatpush1.bf16.msra.mxu0 %v4310_v58  ;;  %1332 = vmatpush1.bf16.msra.mxu1 %v4315_v59 }
 0x47c   :  { %1292 = vmatprep.subr.bf16.mxu0 %v4320_v60  ;;  %1333 = vmatprep.subr.bf16.mxu1 %v4325_v61  ;;  %v6047_v60 = vld [vmem:[#allocation12_spill] sm:$0xff] }
 0x47f   :  { %1293 = vmatpush1.bf16.msra.mxu0 %v4339_v63  ;;  %1334 = vmatpush1.bf16.msra.mxu1 %v4344_v0  ;;  %v6048_v63 = vld [vmem:[#allocation13_spill] sm:$0xff] }
 0x480   :  { %1294 = vmatprep.subr.bf16.mxu0 %v4349_v2  ;;  %1335 = vmatprep.subr.bf16.mxu1 %v4358_v3 }
 0x483   :  { %1295 = vmatpush1.bf16.msra.mxu0 %v4365_v4  ;;  %1336 = vmatpush1.bf16.msra.mxu1 %v4370_v5 }
 0x484   :  { %1407 = vmatprep.subr.bf16.mxu0 %v4782_v49  ;;  %1448 = vmatprep.subr.bf16.mxu1 %v4788_v50 }
 0x539   :  { %v1187_v51 = vpop.f32.mrb[32].mxu0  ;;  %v1228_v52 = vpop.f32.mrb[32].mxu1 }
 0x53a   :  { %v1235_v55 = vadd.f32 %v1187_v51, %v6045_v54  ;;  %v1237_v57 = vadd.f32 %v1228_v52, %v6046_v56  ;;  %v1189_v58 = vpop.f32.mrb[33].mxu0  ;;  %v1230_v59 = vpop.f32.mrb[33].mxu1  ;;  %v4846_v51 = vld [vmem:[%s6001_s5 + $0x8c] ss:$16 sps:$4 sm:$0xff]   ;;  %v4852_v52 = vld [vmem:[%s6001_s5 + $0x80] ss:$16 sps:$4 sm:$0xff]  }
 0x53b   :  { %v1236_v61 = vadd.f32 %v1189_v58, %v6047_v60  ;;  %v1238_v0 = vadd.f32 %v1230_v59, %v6048_v63  ;;  %v1191_v2 = vpop.f32.mrb[34].mxu0  ;;  %v1232_v3 = vpop.f32.mrb[34].mxu1  ;;  %v4858_v54 = vld [vmem:[%s6001_s5 + $0x88] ss:$16 sps:$4 sm:$0xff]   ;;  %v4870_v56 = vld [vmem:[%s6001_s5 + $0xac] ss:$16 sps:$4 sm:$0xff]  }
 0x53c   :  { %v3348_v4 = vmul.f32 -1.442695, %v1235_v55  ;;  %v1192_v5 = vpop.f32.mrb[35].mxu0  ;;  %v1233_v19 = vpop.f32.mrb[35].mxu1  ;;  %v4864_v55 = vld [vmem:[%s6001_s5 + $0xa4] ss:$16 sps:$4 sm:$0xff]  }
 0x53d   :  { %v3349_v1 = vmul.f32 -1.442695, %v1236_v61  ;;  %v3350_v26 = vmul.f32 -1.442695, %v1238_v0  ;;  %v4882_v58 = vld [vmem:[%s6001_s5 + $0xa8] ss:$16 sps:$4 sm:$0xff]  }
 0x53e   :  { %3761 = vpow2.f32 %v3348_v4  ;;  %v4888_v59 = vld [vmem:[%s6001_s5 + $0xc4] ss:$16 sps:$4 sm:$0xff]   ;;  %v4894_v60 = vld [vmem:[%s6001_s5 + $0xcc] ss:$16 sps:$4 sm:$0xff]   ;;  %v4900_v61 = vld [vmem:[%s6001_s5 + $0xc0] ss:$16 sps:$4 sm:$0xff]  }
 0x53f   :  { %3763 = vpow2.f32 %v3349_v1  ;;  %v4906_v63 = vld [vmem:[%s6001_s5 + $0xc8] ss:$16 sps:$4 sm:$0xff]   ;;  %v4912_v0 = vld [vmem:[%s6001_s5 + $0xe4] ss:$16 sps:$4 sm:$0xff]   ;;  %v4918_v2 = vld [vmem:[%s6001_s5 + $0xec] ss:$16 sps:$4 sm:$0xff]  }
 0x540   :  { %3765 = vpow2.f32 %v3350_v26  ;;  %v4924_v3 = vld [vmem:[%s6001_s5 + $0xe0] ss:$16 sps:$4 sm:$0xff]   ;;  %v4930_v4 = vld [vmem:[%s6001_s5 + $0xe8] ss:$16 sps:$4 sm:$0xff]  }
 0x541   :  { %3767 = vtanh.f32 %v1237_v57  ;;  %v4876_v57 = vld [vmem:[%s6001_s5 + $0xa0] ss:$16 sps:$4 sm:$0xff]  }
 0x542   :  { %v6049_v1 = vld [vmem:[#allocation14_spill] sm:$0xff] }
 0x548   :  { %v3762_v9 = vpop.eup %3761 }
 0x549   :  { %v3764_v33 = vpop.eup %3763  ;;  %v1242_v34 = vadd.f32 1.0, %v3762_v9  ;;  %v6050_v9 = vld [vmem:[#allocation15_spill] sm:$0xff] }
 0x54a   :  { %v1248_v44 = vadd.f32 1.0, %v3764_v33  ;;  %v3766_v14 = vpop.eup %3765 }
 0x54b   :  { %3769 = vrcp.f32 %v1242_v34  ;;  %v3768_v31 = vpop.eup %3767  ;;  %v1255_v17 = vadd.f32 1.0, %v3766_v14  ;;  %v6051_v14 = vld [vmem:[#allocation16_spill] sm:$0xff] }
 0x54c   :  { %3771 = vrcp.f32 %v1248_v44 }
 0x54d   :  { %3773 = vrcp.f32 %v1255_v17 }
 0x555   :  { %v3770_v35 = vpop.eup %3769 }
 0x556   :  { %v3772_v53 = vpop.eup %3771  ;;  %v1259_v15 = vmul.f32 %v3770_v35, %v3768_v31  ;;  %v6052_v35 = vld [vmem:[#allocation17_spill] sm:$0xff] }
 0x557   :  { %v1258_v16 = vmul.f32 %v3772_v53, %v4676_v23  ;;  %v3774_v21 = vpop.eup %3773 }
 0x559   :  { %v1260_v18 = vadd.f32 %v1259_v15, %v1258_v16 }
 0x55b   :  { %3775 = vtanh.f32 %v1260_v18  ;;  %v1268_v10 = vsub.f32 %v1260_v18, %v4676_v23 }
 0x55d   :  { %v1269_v62 = vmul.f32 %v3351_v12, %v1268_v10 }
 0x55f   :  { %v4801_v20 = vadd.f32 %v1269_v62, %v4676_v23  ;;  %v4828_v23 = vld [vmem:[%s6001_s5 + $0x60] ss:$16 sps:$4 sm:$0xff]  }
 0x565   :  { %v3776_v32 = vpop.eup %3775 }
 0x566   :  { %v1262_v25 = vmul.f32 %v3776_v32, %v3774_v21 }
 0x568   :  { %v1265_v27 = vsub.f32 %v1262_v25, %v4683_v38  ;;  %v4804_v24 = vmul.f32 %v3351_v12, %v1262_v25 }
 0x56a   :  { %v1266_v30 = vmul.f32 %v3351_v12, %v1265_v27 }
 0x56c   :  { %v4807_v8 = vadd.f32 %v1266_v30, %v4683_v38  ;;  %v4834_v38 = vld [vmem:[%s6001_s5 + $0x68] ss:$16 sps:$4 sm:$0xff]  }
 0x56e   :  { %v1279_v36 = vpack.c.bf16 %v4807_v8, %v4807_v8 }
 0x570   :  { %1313 = vmatmul.mubr.bf16.vlgmr.msra.gmra.mrb[36].mxu0 %v1279_v36  ;;  %1354 = vmatmul.mubr.bf16.vlgmr.msra.gmra.mrb[36].mxu1 %v1279_v36 }
 0x571   :  { %1408 = vmatpush1.bf16.msra.mxu0 %v4690_v6  ;;  %1449 = vmatpush1.bf16.msra.mxu1 %v4696_v28 }
 0x572   :  { %1409 = vmatprep.subr.bf16.mxu0 %v4702_v22  ;;  %1450 = vmatprep.subr.bf16.mxu1 %v4708_v40 }
 0x573   :  { %1439 = vmatprep.mubr.bf16.mxu0 %v6039_v11  ;;  %1480 = vmatprep.mubr.bf16.mxu1 %v6039_v11 }
 0x575   :  { %1410 = vmatpush1.bf16.msra.mxu0 %v4716_v41  ;;  %1451 = vmatpush1.bf16.msra.mxu1 %v4722_v42 }
 0x576   :  { %1411 = vmatprep.subr.bf16.mxu0 %v4728_v43  ;;  %1452 = vmatprep.subr.bf16.mxu1 %v4734_v45 }
 0x579   :  { %1412 = vmatpush1.bf16.msra.mxu0 %v4740_v46  ;;  %1453 = vmatpush1.bf16.msra.mxu1 %v4746_v47 }
 0x57a   :  { %1413 = vmatprep.subr.bf16.mxu0 %v4752_v48  ;;  %1454 = vmatprep.subr.bf16.mxu1 %v4758_v13 }
 0x57d   :  { %1414 = vmatpush1.bf16.msra.mxu0 %v4828_v23  ;;  %1455 = vmatpush1.bf16.msra.mxu1 %v4834_v38 }
 0x57e   :  { %1415 = vmatprep.subr.bf16.mxu0 %v4840_v39  ;;  %1456 = vmatprep.subr.bf16.mxu1 %v4846_v51 }
 0x581   :  { %1416 = vmatpush1.bf16.msra.mxu0 %v4852_v52  ;;  %1457 = vmatpush1.bf16.msra.mxu1 %v4858_v54 }
 0x582   :  { %1417 = vmatprep.subr.bf16.mxu0 %v4864_v55  ;;  %1458 = vmatprep.subr.bf16.mxu1 %v4870_v56 }
 0x585   :  { %1418 = vmatpush1.bf16.msra.mxu0 %v4876_v57  ;;  %1459 = vmatpush1.bf16.msra.mxu1 %v4882_v58 }
 0x586   :  { %1419 = vmatprep.subr.bf16.mxu0 %v4888_v59  ;;  %1460 = vmatprep.subr.bf16.mxu1 %v4894_v60 }
 0x589   :  { %1420 = vmatpush1.bf16.msra.mxu0 %v4900_v61  ;;  %1461 = vmatpush1.bf16.msra.mxu1 %v4906_v63 }
 0x58a   :  { %1421 = vmatprep.subr.bf16.mxu0 %v4912_v0  ;;  %1462 = vmatprep.subr.bf16.mxu1 %v4918_v2 }
 0x58d   :  { %1422 = vmatpush1.bf16.msra.mxu0 %v4924_v3  ;;  %1463 = vmatpush1.bf16.msra.mxu1 %v4930_v4 }
 0x58e   :  { %1534 = vmatprep.subr.bf16.mxu0 %v4782_v49  ;;  %1575 = vmatprep.subr.bf16.mxu1 %v4788_v50 }
 0x643   :  { %v1314_v5 = vpop.f32.mrb[36].mxu0  ;;  %v1355_v19 = vpop.f32.mrb[36].mxu1 }
 0x644   :  { %v1362_v26 = vadd.f32 %v1314_v5, %v6049_v1  ;;  %v1364_v33 = vadd.f32 %v1355_v19, %v6050_v9  ;;  %v1316_v34 = vpop.f32.mrb[37].mxu0  ;;  %v1357_v44 = vpop.f32.mrb[37].mxu1  ;;  %v3355_v9 = vld [vmem:[%s6003_s6 + $0x28] sm:$0xff] }
 0x645   :  { %v1363_v31 = vadd.f32 %v1316_v34, %v6051_v14  ;;  %v1365_v53 = vadd.f32 %v1357_v44, %v6052_v35  ;;  %v1318_v15 = vpop.f32.mrb[38].mxu0  ;;  %v1359_v17 = vpop.f32.mrb[38].mxu1 }
 0x646   :  { %v3352_v16 = vmul.f32 -1.442695, %v1362_v26  ;;  %v1319_v18 = vpop.f32.mrb[39].mxu0  ;;  %v1360_v12 = vpop.f32.mrb[39].mxu1 }
 0x647   :  { %v3353_v49 = vmul.f32 -1.442695, %v1363_v31  ;;  %v3354_v50 = vmul.f32 -1.442695, %v1365_v53 }
 0x648   :  { %3777 = vpow2.f32 %v3352_v16 }
 0x649   :  { %3779 = vpow2.f32 %v3353_v49  ;;  %v3359_v49 = vld [vmem:[%s6003_s6 + $0x30] sm:$0xff] }
 0x64a   :  { %3781 = vpow2.f32 %v3354_v50 }
 0x64b   :  { %3783 = vtanh.f32 %v1364_v33 }
 0x652   :  { %v3778_v10 = vpop.eup %3777 }
 0x653   :  { %v3780_v62 = vpop.eup %3779  ;;  %v1369_v21 = vadd.f32 1.0, %v3778_v10 }
 0x654   :  { %v1375_v32 = vadd.f32 1.0, %v3780_v62  ;;  %v3782_v25 = vpop.eup %3781 }
 0x655   :  { %3785 = vrcp.f32 %v1369_v21  ;;  %v3784_v27 = vpop.eup %3783  ;;  %v1382_v19 = vadd.f32 1.0, %v3782_v25 }
 0x656   :  { %3787 = vrcp.f32 %v1375_v32 }
 0x657   :  { %3789 = vrcp.f32 %v1382_v19  ;;  %v3601_v19 = vld [vmem:[%s6004_s3] ss:$16 sps:$4 sm:$0xff]  }
 0x65f   :  { %v3786_v30 = vpop.eup %3785 }
 0x660   :  { %v3788_v36 = vpop.eup %3787  ;;  %v1386_v5 = vmul.f32 %v3786_v30, %v3784_v27 }
 0x661   :  { %v1385_v1 = vmul.f32 %v3788_v36, %v4801_v20  ;;  %v3790_v14 = vpop.eup %3789 }
 0x663   :  { %v1387_v26 = vadd.f32 %v1386_v5, %v1385_v1  ;;  %v3604_v1 = vld [vmem:[%s6004_s3 + $0x8] ss:$16 sps:$4 sm:$0xff]  }
 0x665   :  { %3791 = vtanh.f32 %v1387_v26  ;;  %v1395_v33 = vsub.f32 %v1387_v26, %v4801_v20 }
 0x667   :  { %v1396_v34 = vmul.f32 %v3355_v9, %v1395_v33  ;;  %v3612_v33 = vld [vmem:[%s6004_s3 + $0x2c] ss:$16 sps:$4 sm:$0xff]  }
 0x669   :  { %v4945_v44 = vadd.f32 %v1396_v34, %v4801_v20  ;;  %v6056_v20 = vld [vmem:[#allocation21_spill] sm:$0xff]  ;;  %v3607_v34 = vld [vmem:[%s6004_s3 + $0x20] ss:$16 sps:$4 sm:$0xff]  }
 0x66f   :  { %v3792_v31 = vpop.eup %3791 }
 0x670   :  { %v1389_v35 = vmul.f32 %v3792_v31, %v3790_v14  ;;  %v3615_v14 = vld [vmem:[%s6004_s3 + $0x44] ss:$16 sps:$4 sm:$0xff]   ;;  %v3618_v31 = vld [vmem:[%s6004_s3 + $0x4c] ss:$16 sps:$4 sm:$0xff]  }
 0x672   :  { %v1392_v53 = vsub.f32 %v1389_v35, %v4807_v8  ;;  %v1398_v15 = vmul.f32 %v3355_v9, %v1389_v35  ;;  %v3613_v35 = vld [vmem:[%s6004_s3 + $0x40] ss:$16 sps:$4 sm:$0xff]  }
 0x674   :  { %v1393_v17 = vmul.f32 %v3355_v9, %v1392_v53  ;;  %v4949_v16 = vpack.c.bf16 %v1398_v15, %v4804_v24  ;;  %v3609_v9 = vld [vmem:[%s6004_s3 + $0x24] ss:$16 sps:$4 sm:$0xff]   ;;  %v3616_v53 = vld [vmem:[%s6004_s3 + $0x48] ss:$16 sps:$4 sm:$0xff]  }
 0x675   :  { %v3621_v15 = vld [vmem:[%s6004_s3 + $0x64] ss:$16 sps:$4 sm:$0xff]  }
 0x676   :  { %v4952_v18 = vadd.f32 %v1393_v17, %v4807_v8  ;;  %v3624_v17 = vld [vmem:[%s6004_s3 + $0x6c] ss:$16 sps:$4 sm:$0xff]  }
 0x678   :  { %v1406_v12 = vpack.c.bf16 %v4952_v18, %v4952_v18 }
 0x67a   :  { %1440 = vmatmul.mubr.bf16.vlgmr.msra.gmra.mrb[40].mxu0 %v1406_v12  ;;  %1481 = vmatmul.mubr.bf16.vlgmr.msra.gmra.mrb[40].mxu1 %v1406_v12  ;;  %v3622_v12 = vld [vmem:[%s6004_s3 + $0x68] ss:$16 sps:$4 sm:$0xff]  }
 0x67b   :  { %1535 = vmatpush1.bf16.msra.mxu0 %v4690_v6  ;;  %1576 = vmatpush1.bf16.msra.mxu1 %v4696_v28  ;;  %v3603_v6 = vld [vmem:[%s6004_s3 + $0x4] ss:$16 sps:$4 sm:$0xff]   ;;  %v3606_v28 = vld [vmem:[%s6004_s3 + $0xc] ss:$16 sps:$4 sm:$0xff]  }
 0x67c   :  { %1536 = vmatprep.subr.bf16.mxu0 %v4702_v22  ;;  %1577 = vmatprep.subr.bf16.mxu1 %v4708_v40 }
 0x67d   :  { %1566 = vmatprep.mubr.bf16.mxu0 %v6039_v11  ;;  %1607 = vmatprep.mubr.bf16.mxu1 %v6039_v11 }
 0x67f   :  { %1537 = vmatpush1.bf16.msra.mxu0 %v4716_v41  ;;  %1578 = vmatpush1.bf16.msra.mxu1 %v4722_v42  ;;  %v6053_v41 = vld [vmem:[#allocation18_spill] sm:$0xff] }
 0x680   :  { %1538 = vmatprep.subr.bf16.mxu0 %v4728_v43  ;;  %1579 = vmatprep.subr.bf16.mxu1 %v4734_v45  ;;  %v6054_v43 = vld [vmem:[#allocation19_spill] sm:$0xff] }
 0x683   :  { %1539 = vmatpush1.bf16.msra.mxu0 %v4740_v46  ;;  %1580 = vmatpush1.bf16.msra.mxu1 %v4746_v47 }
 0x684   :  { %1540 = vmatprep.subr.bf16.mxu0 %v4752_v48  ;;  %1581 = vmatprep.subr.bf16.mxu1 %v4758_v13  ;;  %v6055_v48 = vld [vmem:[#allocation20_spill] sm:$0xff] }
 0x687   :  { %1541 = vmatpush1.bf16.msra.mxu0 %v4828_v23  ;;  %1582 = vmatpush1.bf16.msra.mxu1 %v4834_v38 }
 0x688   :  { %1542 = vmatprep.subr.bf16.mxu0 %v4840_v39  ;;  %1583 = vmatprep.subr.bf16.mxu1 %v4846_v51 }
 0x68b   :  { %1543 = vmatpush1.bf16.msra.mxu0 %v4852_v52  ;;  %1584 = vmatpush1.bf16.msra.mxu1 %v4858_v54 }
 0x68c   :  { %1544 = vmatprep.subr.bf16.mxu0 %v4864_v55  ;;  %1585 = vmatprep.subr.bf16.mxu1 %v4870_v56 }
 0x68f   :  { %1545 = vmatpush1.bf16.msra.mxu0 %v4876_v57  ;;  %1586 = vmatpush1.bf16.msra.mxu1 %v4882_v58 }
 0x690   :  { %1546 = vmatprep.subr.bf16.mxu0 %v4888_v59  ;;  %1587 = vmatprep.subr.bf16.mxu1 %v4894_v60 }
 0x693   :  { %1547 = vmatpush1.bf16.msra.mxu0 %v4900_v61  ;;  %1588 = vmatpush1.bf16.msra.mxu1 %v4906_v63 }
 0x694   :  { %1548 = vmatprep.subr.bf16.mxu0 %v4912_v0  ;;  %1589 = vmatprep.subr.bf16.mxu1 %v4918_v2 }
 0x697   :  { %1549 = vmatpush1.bf16.msra.mxu0 %v4924_v3  ;;  %1590 = vmatpush1.bf16.msra.mxu1 %v4930_v4 }
 0x698   :  { %1883 = vmatprep.subr.bf16.mxu0 %v3603_v6  ;;  %1956 = vmatprep.subr.bf16.mxu1 %v3606_v28  ;;  %v3627_v6 = vld [vmem:[%s6004_s3 + $0x84] ss:$16 sps:$4 sm:$0xff]   ;;  %v3630_v28 = vld [vmem:[%s6004_s3 + $0x8c] ss:$16 sps:$4 sm:$0xff]  }
 0x74d   :  { %v1441_v22 = vpop.f32.mrb[40].mxu0  ;;  %v1482_v40 = vpop.f32.mrb[40].mxu1 }
 0x74e   :  { %v1489_v42 = vadd.f32 %v1441_v22, %v6053_v41  ;;  %v1491_v45 = vadd.f32 %v1482_v40, %v6054_v43  ;;  %v1443_v46 = vpop.f32.mrb[41].mxu0  ;;  %v1484_v47 = vpop.f32.mrb[41].mxu1  ;;  %v3625_v22 = vld [vmem:[%s6004_s3 + $0x80] ss:$16 sps:$4 sm:$0xff]   ;;  %v3628_v40 = vld [vmem:[%s6004_s3 + $0x88] ss:$16 sps:$4 sm:$0xff]  }
 0x74f   :  { %v1490_v13 = vadd.f32 %v1443_v46, %v6055_v48  ;;  %v1492_v24 = vadd.f32 %v1484_v47, %v6056_v20  ;;  %v1445_v8 = vpop.f32.mrb[42].mxu0  ;;  %v1486_v23 = vpop.f32.mrb[42].mxu1  ;;  %v3633_v41 = vld [vmem:[%s6004_s3 + $0xa4] ss:$16 sps:$4 sm:$0xff]   ;;  %v3631_v43 = vld [vmem:[%s6004_s3 + $0xa0] ss:$16 sps:$4 sm:$0xff]  }
 0x750   :  { %v3356_v38 = vmul.f32 -1.442695, %v1489_v42  ;;  %v1446_v39 = vpop.f32.mrb[43].mxu0  ;;  %v1487_v51 = vpop.f32.mrb[43].mxu1  ;;  %v3636_v42 = vld [vmem:[%s6004_s3 + $0xac] ss:$16 sps:$4 sm:$0xff]  }
 0x751   :  { %v3357_v52 = vmul.f32 -1.442695, %v1490_v13  ;;  %v3358_v54 = vmul.f32 -1.442695, %v1492_v24  ;;  %v3639_v46 = vld [vmem:[%s6004_s3 + $0xc4] ss:$16 sps:$4 sm:$0xff]  }
 0x752   :  { %3793 = vpow2.f32 %v3356_v38  ;;  %v3642_v47 = vld [vmem:[%s6004_s3 + $0xcc] ss:$16 sps:$4 sm:$0xff]   ;;  %v3637_v48 = vld [vmem:[%s6004_s3 + $0xc0] ss:$16 sps:$4 sm:$0xff]   ;;  %v3640_v13 = vld [vmem:[%s6004_s3 + $0xc8] ss:$16 sps:$4 sm:$0xff]   ;;  %v1665_v38 = vpack.c.bf16 %v4571_v7, %v4520_v29 }
 0x753   :  { %3795 = vpow2.f32 %v3357_v52  ;;  %v3645_v20 = vld [vmem:[%s6004_s3 + $0xe4] ss:$16 sps:$4 sm:$0xff]   ;;  %v3648_v24 = vld [vmem:[%s6004_s3 + $0xec] ss:$16 sps:$4 sm:$0xff]   ;;  %v3643_v8 = vld [vmem:[%s6004_s3 + $0xe0] ss:$16 sps:$4 sm:$0xff]  }
 0x754   :  { %3797 = vpow2.f32 %v3358_v54  ;;  %v3646_v23 = vld [vmem:[%s6004_s3 + $0xe8] ss:$16 sps:$4 sm:$0xff]   ;;  %v5121_v29 = vld [vmem:[%s6001_s5 + $0x104] ss:$16 sps:$4 sm:$0xff]   ;;  %v5126_v7 = vld [vmem:[%s6001_s5 + $0x10c] ss:$16 sps:$4 sm:$0xff]  }
 0x755   :  { %3799 = vtanh.f32 %v1491_v45  ;;  %v3634_v45 = vld [vmem:[%s6004_s3 + $0xa8] ss:$16 sps:$4 sm:$0xff]   ;;  %v5145_v39 = vld [vmem:[%s6001_s5 + $0x124] ss:$16 sps:$4 sm:$0xff]   ;;  %v5150_v51 = vld [vmem:[%s6001_s5 + $0x12c] ss:$16 sps:$4 sm:$0xff]  }
 0x756   :  { %v5155_v52 = vld [vmem:[%s6001_s5 + $0x120] ss:$16 sps:$4 sm:$0xff]   ;;  %v5160_v54 = vld [vmem:[%s6001_s5 + $0x128] ss:$16 sps:$4 sm:$0xff]  }
 0x75c   :  { %v3794_v55 = vpop.eup %3793 }
 0x75d   :  { %v3796_v56 = vpop.eup %3795  ;;  %v1496_v57 = vadd.f32 1.0, %v3794_v55  ;;  %v5169_v55 = vld [vmem:[%s6001_s5 + $0x144] ss:$16 sps:$4 sm:$0xff]  }
 0x75e   :  { %v1502_v58 = vadd.f32 1.0, %v3796_v56  ;;  %v3798_v59 = vpop.eup %3797  ;;  %v5174_v56 = vld [vmem:[%s6001_s5 + $0x14c] ss:$16 sps:$4 sm:$0xff]  }
 0x75f   :  { %3801 = vrcp.f32 %v1496_v57  ;;  %v3800_v60 = vpop.eup %3799  ;;  %v1509_v2 = vadd.f32 1.0, %v3798_v59  ;;  %v5179_v57 = vld [vmem:[%s6001_s5 + $0x140] ss:$16 sps:$4 sm:$0xff]   ;;  %v5193_v59 = vld [vmem:[%s6001_s5 + $0x164] ss:$16 sps:$4 sm:$0xff]  }
 0x760   :  { %3803 = vrcp.f32 %v1502_v58  ;;  %v5184_v58 = vld [vmem:[%s6001_s5 + $0x148] ss:$16 sps:$4 sm:$0xff]  }
 0x761   :  { %3805 = vrcp.f32 %v1509_v2  ;;  %v5222_v2 = vld [vmem:[%s6001_s5 + $0x18c] ss:$16 sps:$4 sm:$0xff]  }
 0x769   :  { %v3802_v61 = vpop.eup %3801 }
 0x76a   :  { %v3804_v63 = vpop.eup %3803  ;;  %v1513_v0 = vmul.f32 %v3802_v61, %v3800_v60  ;;  %v5198_v60 = vld [vmem:[%s6001_s5 + $0x16c] ss:$16 sps:$4 sm:$0xff]   ;;  %v5203_v61 = vld [vmem:[%s6001_s5 + $0x160] ss:$16 sps:$4 sm:$0xff]  }
 0x76b   :  { %v1512_v3 = vmul.f32 %v3804_v63, %v4945_v44  ;;  %v3806_v21 = vpop.eup %3805  ;;  %v5208_v63 = vld [vmem:[%s6001_s5 + $0x168] ss:$16 sps:$4 sm:$0xff]  }
 0x76d   :  { %v1514_v4 = vadd.f32 %v1513_v0, %v1512_v3  ;;  %v5217_v0 = vld [vmem:[%s6001_s5 + $0x184] ss:$16 sps:$4 sm:$0xff]   ;;  %v5227_v3 = vld [vmem:[%s6001_s5 + $0x180] ss:$16 sps:$4 sm:$0xff]  }
 0x76f   :  { %3807 = vtanh.f32 %v1514_v4  ;;  %v1522_v50 = vsub.f32 %v1514_v4, %v4945_v44  ;;  %v5232_v4 = vld [vmem:[%s6001_s5 + $0x188] ss:$16 sps:$4 sm:$0xff]  }
 0x771   :  { %v1523_v10 = vmul.f32 %v3359_v49, %v1522_v50  ;;  %v5246_v50 = vld [vmem:[%s6001_s5 + $0x1ac] ss:$16 sps:$4 sm:$0xff]  }
 0x773   :  { %v5004_v62 = vadd.f32 %v1523_v10, %v4945_v44  ;;  %v3610_v44 = vld [vmem:[%s6004_s3 + $0x28] ss:$16 sps:$4 sm:$0xff]   ;;  %v5251_v10 = vld [vmem:[%s6001_s5 + $0x1a0] ss:$16 sps:$4 sm:$0xff]  }
 0x779   :  { %v3808_v32 = vpop.eup %3807 }
 0x77a   :  { %v1516_v25 = vmul.f32 %v3808_v32, %v3806_v21  ;;  %v5256_v21 = vld [vmem:[%s6001_s5 + $0x1a8] ss:$16 sps:$4 sm:$0xff]   ;;  %v5265_v32 = vld [vmem:[%s6001_s5 + $0x1c4] ss:$16 sps:$4 sm:$0xff]  }
 0x77c   :  { %v1519_v27 = vsub.f32 %v1516_v25, %v4952_v18  ;;  %v5007_v30 = vmul.f32 %v3359_v49, %v1516_v25  ;;  %v5270_v25 = vld [vmem:[%s6001_s5 + $0x1cc] ss:$16 sps:$4 sm:$0xff]  }
 0x77e   :  { %v1520_v36 = vmul.f32 %v3359_v49, %v1519_v27  ;;  %v5241_v49 = vld [vmem:[%s6001_s5 + $0x1a4] ss:$16 sps:$4 sm:$0xff]   ;;  %v5275_v27 = vld [vmem:[%s6001_s5 + $0x1c0] ss:$16 sps:$4 sm:$0xff]  }
 0x780   :  { %v5010_v5 = vadd.f32 %v1520_v36, %v4952_v18  ;;  %v3619_v18 = vld [vmem:[%s6004_s3 + $0x60] ss:$16 sps:$4 sm:$0xff]   ;;  %v5280_v36 = vld [vmem:[%s6001_s5 + $0x1c8] ss:$16 sps:$4 sm:$0xff]  }
 0x782   :  { %v1533_v26 = vpack.c.bf16 %v5010_v5, %v5010_v5 }
 0x784   :  { %1567 = vmatmul.mubr.bf16.vlgmr.msra.gmra.mrb[44].mxu0 %v1533_v26  ;;  %1608 = vmatmul.mubr.bf16.vlgmr.msra.gmra.mrb[44].mxu1 %v1533_v26  ;;  %v5299_v26 = vld [vmem:[%s6001_s5 + $0x1e0] ss:$16 sps:$4 sm:$0xff]  }
 0x785   :  { %1884 = vmatpush1.bf16.msra.mxu0 %v3601_v19  ;;  %1957 = vmatpush1.bf16.msra.mxu1 %v3604_v1  ;;  %v5289_v19 = vld [vmem:[%s6001_s5 + $0x1e4] ss:$16 sps:$4 sm:$0xff]   ;;  %v5294_v1 = vld [vmem:[%s6001_s5 + $0x1ec] ss:$16 sps:$4 sm:$0xff]  }
 0x786   :  { %1885 = vmatprep.subr.bf16.mxu0 %v3609_v9  ;;  %1958 = vmatprep.subr.bf16.mxu1 %v3612_v33  ;;  %v5304_v9 = vld [vmem:[%s6001_s5 + $0x1e8] ss:$16 sps:$4 sm:$0xff]  }
 0x787   :  { %1915 = vmatprep.mubr.bf16.mxu0 %v6039_v11  ;;  %1988 = vmatprep.mubr.bf16.mxu1 %v6039_v11 }
 0x789   :  { %1886 = vmatpush1.bf16.msra.mxu0 %v3607_v34  ;;  %1959 = vmatpush1.bf16.msra.mxu1 %v3610_v44  ;;  %v6057_v44 = vld [vmem:[#allocation22_spill] sm:$0xff] }
 0x78a   :  { %1887 = vmatprep.subr.bf16.mxu0 %v3615_v14  ;;  %1960 = vmatprep.subr.bf16.mxu1 %v3618_v31  ;;  %v6058_v31 = vld [vmem:[#allocation23_spill] sm:$0xff] }
 0x78d   :  { %1888 = vmatpush1.bf16.msra.mxu0 %v3613_v35  ;;  %1961 = vmatpush1.bf16.msra.mxu1 %v3616_v53 }
 0x78e   :  { %1889 = vmatprep.subr.bf16.mxu0 %v3621_v15  ;;  %1962 = vmatprep.subr.bf16.mxu1 %v3624_v17  ;;  %v6059_v17 = vld [vmem:[#allocation24_spill] sm:$0xff] }
 0x791   :  { %1890 = vmatpush1.bf16.msra.mxu0 %v3619_v18  ;;  %1963 = vmatpush1.bf16.msra.mxu1 %v3622_v12  ;;  %v6060_v12 = vld [vmem:[#allocation25_spill] sm:$0xff] }
 0x792   :  { %1891 = vmatprep.subr.bf16.mxu0 %v3627_v6  ;;  %1964 = vmatprep.subr.bf16.mxu1 %v3630_v28 }
 0x795   :  { %1892 = vmatpush1.bf16.msra.mxu0 %v3625_v22  ;;  %1965 = vmatpush1.bf16.msra.mxu1 %v3628_v40 }
 0x796   :  { %1893 = vmatprep.subr.bf16.mxu0 %v3633_v41  ;;  %1966 = vmatprep.subr.bf16.mxu1 %v3636_v42 }
 0x799   :  { %1894 = vmatpush1.bf16.msra.mxu0 %v3631_v43  ;;  %1967 = vmatpush1.bf16.msra.mxu1 %v3634_v45 }
 0x79a   :  { %1895 = vmatprep.subr.bf16.mxu0 %v3639_v46  ;;  %1968 = vmatprep.subr.bf16.mxu1 %v3642_v47 }
 0x79d   :  { %1896 = vmatpush1.bf16.msra.mxu0 %v3637_v48  ;;  %1969 = vmatpush1.bf16.msra.mxu1 %v3640_v13 }
 0x79e   :  { %1897 = vmatprep.subr.bf16.mxu0 %v3645_v20  ;;  %1970 = vmatprep.subr.bf16.mxu1 %v3648_v24 }
 0x7a1   :  { %1898 = vmatpush1.bf16.msra.mxu0 %v3643_v8  ;;  %1971 = vmatpush1.bf16.msra.mxu1 %v3646_v23 }
 0x7a2   :  { %2258 = vmatprep.subr.bf16.mxu0 %v5121_v29  ;;  %2299 = vmatprep.subr.bf16.mxu1 %v5126_v7 }
 0x7a4   :  { %1916 = vmatmul.mubr.bf16.vlgmr.msra.gmra.mrb[48].mxu0 %v1665_v38  ;;  %1989 = vmatmul.mubr.bf16.vlgmr.msra.gmra.mrb[48].mxu1 %v1665_v38 }
 0x7a5   :  { %1925 = vmatprep.mubr.bf16.mxu0 %v6039_v11  ;;  %1998 = vmatprep.mubr.bf16.mxu1 %v6039_v11 }
 0x7ac   :  { %1926 = vmatmul.mubr.bf16.gmra.mrb[52].mxu0 %v4680_v37  ;;  %1999 = vmatmul.mubr.bf16.gmra.mrb[52].mxu1 %v4680_v37  ;;  %v5131_v37 = vld [vmem:[%s6001_s5 + $0x100] ss:$16 sps:$4 sm:$0xff]  }
 0x7ad   :  { %1935 = vmatprep.mubr.bf16.mxu0 %v6039_v11  ;;  %2008 = vmatprep.mubr.bf16.mxu1 %v6039_v11 }
 0x7ae   :  { %2259 = vmatpush1.bf16.msra.mxu0 %v5131_v37 }
 0x7af   :  { %2260 = vmatprep.subr.bf16.mxu0 %v5145_v39 }
 0x7b2   :  { %2261 = vmatpush1.bf16.msra.mxu0 %v5155_v52 }
 0x7b3   :  { %2262 = vmatprep.subr.bf16.mxu0 %v5169_v55 }
 0x7b4   :  { %1936 = vmatmul.mubr.bf16.gmra.mrb[56].mxu0 %v4949_v16  ;;  %2009 = vmatmul.mubr.bf16.gmra.mrb[56].mxu1 %v4949_v16  ;;  %v5136_v16 = vld [vmem:[%s6001_s5 + $0x108] ss:$16 sps:$4 sm:$0xff]  }
 0x7b5   :  { %1945 = vmatprep.mubr.bf16.mxu0 %v6039_v11  ;;  %2018 = vmatprep.mubr.bf16.mxu1 %v6039_v11 }
 0x7b6   :  { %2300 = vmatpush1.bf16.msra.mxu1 %v5136_v16  ;;  %2263 = vmatpush1.bf16.msra.mxu0 %v5179_v57 }
 0x7b7   :  { %2301 = vmatprep.subr.bf16.mxu1 %v5150_v51  ;;  %2264 = vmatprep.subr.bf16.mxu0 %v5193_v59 }
 0x7ba   :  { %2302 = vmatpush1.bf16.msra.mxu1 %v5160_v54  ;;  %2265 = vmatpush1.bf16.msra.mxu0 %v5203_v61 }
 0x7bb   :  { %2303 = vmatprep.subr.bf16.mxu1 %v5174_v56  ;;  %2266 = vmatprep.subr.bf16.mxu0 %v5217_v0 }
 0x7be   :  { %2304 = vmatpush1.bf16.msra.mxu1 %v5184_v58  ;;  %2267 = vmatpush1.bf16.msra.mxu0 %v5227_v3 }
 0x7bf   :  { %2305 = vmatprep.subr.bf16.mxu1 %v5198_v60  ;;  %2268 = vmatprep.subr.bf16.mxu0 %v5241_v49 }
 0x7c2   :  { %2306 = vmatpush1.bf16.msra.mxu1 %v5208_v63  ;;  %2269 = vmatpush1.bf16.msra.mxu0 %v5251_v10 }
 0x7c3   :  { %2307 = vmatprep.subr.bf16.mxu1 %v5222_v2  ;;  %2270 = vmatprep.subr.bf16.mxu0 %v5265_v32 }
 0x7c6   :  { %2308 = vmatpush1.bf16.msra.mxu1 %v5232_v4  ;;  %2271 = vmatpush1.bf16.msra.mxu0 %v5275_v27 }
 0x7c7   :  { %2309 = vmatprep.subr.bf16.mxu1 %v5246_v50  ;;  %2272 = vmatprep.subr.bf16.mxu0 %v5289_v19 }
 0x7ca   :  { %2310 = vmatpush1.bf16.msra.mxu1 %v5256_v21  ;;  %2273 = vmatpush1.bf16.msra.mxu0 %v5299_v26 }
 0x7cb   :  { %2311 = vmatprep.subr.bf16.mxu1 %v5270_v25  ;;  %2379 = vmatprep.subr.bf16.mxu0 %v5121_v29 }
 0x7ce   :  { %2312 = vmatpush1.bf16.msra.mxu1 %v5280_v36 }
 0x7cf   :  { %2313 = vmatprep.subr.bf16.mxu1 %v5294_v1 }
 0x7d2   :  { %2314 = vmatpush1.bf16.msra.mxu1 %v5304_v9 }
 0x7d3   :  { %2420 = vmatprep.subr.bf16.mxu1 %v5126_v7 }
 0x857   :  { %v1568_v33 = vpop.f32.mrb[44].mxu0  ;;  %v1609_v34 = vpop.f32.mrb[44].mxu1 }
 0x858   :  { %v1616_v14 = vadd.f32 %v1568_v33, %v6057_v44  ;;  %v1618_v35 = vadd.f32 %v1609_v34, %v6058_v31  ;;  %v1570_v53 = vpop.f32.mrb[45].mxu0  ;;  %v1611_v15 = vpop.f32.mrb[45].mxu1 }
 0x859   :  { %v1617_v18 = vadd.f32 %v1570_v53, %v6059_v17  ;;  %v1619_v6 = vadd.f32 %v1611_v15, %v6060_v12  ;;  %v1572_v28 = vpop.f32.mrb[46].mxu0  ;;  %v1613_v22 = vpop.f32.mrb[46].mxu1  ;;  %v3363_v15 = vld [vmem:[%s6003_s6 + $0x38] sm:$0xff] }
 0x85a   :  { %v3360_v40 = vmul.f32 -1.442695, %v1616_v14  ;;  %v1573_v41 = vpop.f32.mrb[47].mxu0  ;;  %v1614_v42 = vpop.f32.mrb[47].mxu1 }
 0x85b   :  { %v3361_v43 = vmul.f32 -1.442695, %v1617_v18  ;;  %v3362_v45 = vmul.f32 -1.442695, %v1619_v6 }
 0x85c   :  { %3809 = vpow2.f32 %v3360_v40 }
 0x85d   :  { %3811 = vpow2.f32 %v3361_v43 }
 0x85e   :  { %3813 = vpow2.f32 %v3362_v45 }
 0x85f   :  { %3815 = vtanh.f32 %v1618_v35 }
 0x866   :  { %v3810_v46 = vpop.eup %3809 }
 0x867   :  { %v3812_v47 = vpop.eup %3811  ;;  %v1623_v48 = vadd.f32 1.0, %v3810_v46 }
 0x868   :  { %v1629_v13 = vadd.f32 1.0, %v3812_v47  ;;  %v3814_v20 = vpop.eup %3813 }
 0x869   :  { %3817 = vrcp.f32 %v1623_v48  ;;  %v3816_v24 = vpop.eup %3815  ;;  %v1636_v33 = vadd.f32 1.0, %v3814_v20 }
 0x86a   :  { %3819 = vrcp.f32 %v1629_v13 }
 0x86b   :  { %3821 = vrcp.f32 %v1636_v33 }
 0x873   :  { %v3818_v8 = vpop.eup %3817 }
 0x874   :  { %v3820_v23 = vpop.eup %3819  ;;  %v1640_v38 = vmul.f32 %v3818_v8, %v3816_v24 }
 0x875   :  { %v1639_v34 = vmul.f32 %v3820_v23, %v5004_v62  ;;  %v3822_v48 = vpop.eup %3821 }
 0x877   :  { %v5317_v44 = vpop.f32.mrb[48].mxu0  ;;  %v5319_v14 = vpop.f32.mrb[48].mxu1  ;;  %v1641_v31 = vadd.f32 %v1640_v38, %v1639_v34 }
 0x878   :  { %v5321_v53 = vpop.f32.mrb[49].mxu0  ;;  %v5323_v35 = vpop.f32.mrb[49].mxu1 }
 0x879   :  { %v5328_v17 = vpop.f32.mrb[50].mxu0  ;;  %v5330_v18 = vpop.f32.mrb[50].mxu1  ;;  %3823 = vtanh.f32 %v1641_v31  ;;  %v1649_v12 = vsub.f32 %v1641_v31, %v5004_v62 }
 0x87a   :  { %v5333_v6 = vpop.f32.mrb[51].mxu0  ;;  %v5335_v28 = vpop.f32.mrb[51].mxu1 }
 0x87b   :  { %v1650_v22 = vmul.f32 %v3363_v15, %v1649_v12 }
 0x87d   :  { %v1651_v40 = vadd.f32 %v1650_v22, %v5004_v62 }
 0x87f   :  { %v5338_v41 = vpop.f32.mrb[52].mxu0  ;;  %v5340_v42 = vpop.f32.mrb[52].mxu1  ;;  %1656 = vst [vmem:[%s6005_s9] sm:$0xff] %v1651_v40 }
 0x880   :  { %6061 = vst [vmem:[#allocation5_spill] sm:$0xff] %v5340_v42  ;;  %v5345_v43 = vpop.f32.mrb[53].mxu0  ;;  %v5347_v45 = vpop.f32.mrb[53].mxu1 }
 0x881   :  { %6062 = vst [vmem:[#allocation6_spill] sm:$0xff] %v5345_v43  ;;  %6063 = vst [vmem:[#allocation7_spill] sm:$0xff] %v5347_v45  ;;  %v5349_v46 = vpop.f32.mrb[54].mxu0  ;;  %v5351_v47 = vpop.f32.mrb[54].mxu1 }
 0x882   :  { %6064 = vst [vmem:[#allocation8_spill] sm:$0xff] %v5349_v46  ;;  %6065 = vst [vmem:[#allocation9_spill] sm:$0xff] %v5351_v47  ;;  %v5353_v13 = vpop.f32.mrb[55].mxu0  ;;  %v5355_v62 = vpop.f32.mrb[55].mxu1 }
 0x883   :  { %6066 = vst [vmem:[#allocation10_spill] sm:$0xff] %v5353_v13  ;;  %6067 = vst [vmem:[#allocation11_spill] sm:$0xff] %v5355_v62  ;;  %v3824_v20 = vpop.eup %3823 }
 0x884   :  { %v1643_v24 = vmul.f32 %v3824_v20, %v3822_v48 }
 0x886   :  { %v1646_v8 = vsub.f32 %v1643_v24, %v5010_v5  ;;  %v1652_v23 = vmul.f32 %v3363_v15, %v1643_v24 }
 0x887   :  { %v5358_v38 = vpop.f32.mrb[56].mxu0  ;;  %v5360_v33 = vpop.f32.mrb[56].mxu1 }
 0x888   :  { %6068 = vst [vmem:[#allocation12_spill] sm:$0xff] %v5358_v38  ;;  %6069 = vst [vmem:[#allocation13_spill] sm:$0xff] %v5360_v33  ;;  %v5362_v34 = vpop.f32.mrb[57].mxu0  ;;  %v5364_v31 = vpop.f32.mrb[57].mxu1  ;;  %v1647_v12 = vmul.f32 %v3363_v15, %v1646_v8  ;;  %v1668_v22 = vpack.c.bf16 %v1652_v23, %v5007_v30  ;;  %v1701_v30 = vld [vmem:[%s6007_s4] sm:$0xf] }
 0x889   :  { %6070 = vst [vmem:[#allocation14_spill] sm:$0xff] %v5362_v34  ;;  %6071 = vst [vmem:[#allocation15_spill] sm:$0xff] %v5364_v31  ;;  %v5367_v40 = vpop.f32.mrb[58].mxu0  ;;  %v5369_v13 = vpop.f32.mrb[58].mxu1 }
 0x88a   :  { %6072 = vst [vmem:[#allocation16_spill] sm:$0xff] %v5367_v40  ;;  %6073 = vst [vmem:[#allocation17_spill] sm:$0xff] %v5369_v13  ;;  %v5371_v62 = vpop.f32.mrb[59].mxu0  ;;  %v5373_v48 = vpop.f32.mrb[59].mxu1  ;;  %v1648_v20 = vadd.f32 %v1647_v12, %v5010_v5  ;;  %1946 = vmatmul.mubr.bf16.gmra.mrb[60].mxu0 %v1668_v22  ;;  %2019 = vmatmul.mubr.bf16.gmra.mrb[60].mxu1 %v1668_v22  ;;  %v6082_v22 = vld [vmem:[#allocation4_spill] sm:$0xff] }
 0x88b   :  { %6074 = vst [vmem:[#allocation18_spill] sm:$0xff] %v5371_v62  ;;  %6075 = vst [vmem:[#allocation19_spill] sm:$0xff] %v5373_v48  ;;  %2290 = vmatprep.mubr.bf16.mxu0 %v6039_v11  ;;  %2331 = vmatprep.mubr.bf16.mxu1 %v6039_v11  ;;  %v6084_v62 = vsub.s32 2, %v6082_v22 }
 0x88c   :  { %1655 = vst [vmem:[%s6006_s8] sm:$0xff] %v1648_v20  ;;  %v6083_v20 = vsub.s32 0, %v6082_v22 }
 0x88d   :  { %v5438_v13 = vrot.slane %v1701_v30, %v6084_v62 }
 0x88e   :  { %v5434_v48 = vrot.slane %v1701_v30, %v6083_v20 }
 0x890   :  { %v1918_v20 = vadd.f32 %v5317_v44, %v5434_v48 }
 0x892   :  { %2291 = vmatmul.mubr.bf16.vlgmr.msra.gmra.mrb[64].mxu0 %v6039_v11  ;;  %2332 = vmatmul.mubr.bf16.vlgmr.msra.gmra.mrb[64].mxu1 %v6039_v11 }
 0x893   :  { %2380 = vmatpush1.bf16.msra.mxu0 %v5131_v37  ;;  %2421 = vmatpush1.bf16.msra.mxu1 %v5136_v16 }
 0x894   :  { %2381 = vmatprep.subr.bf16.mxu0 %v5145_v39  ;;  %2422 = vmatprep.subr.bf16.mxu1 %v5150_v51 }
 0x895   :  { %2411 = vmatprep.mubr.bf16.mxu0 %v6039_v11  ;;  %2452 = vmatprep.mubr.bf16.mxu1 %v6039_v11 }
 0x897   :  { %2382 = vmatpush1.bf16.msra.mxu0 %v5155_v52  ;;  %2423 = vmatpush1.bf16.msra.mxu1 %v5160_v54 }
 0x898   :  { %2383 = vmatprep.subr.bf16.mxu0 %v5169_v55  ;;  %2424 = vmatprep.subr.bf16.mxu1 %v5174_v56 }
 0x89b   :  { %2384 = vmatpush1.bf16.msra.mxu0 %v5179_v57  ;;  %2425 = vmatpush1.bf16.msra.mxu1 %v5184_v58 }
 0x89c   :  { %2385 = vmatprep.subr.bf16.mxu0 %v5193_v59  ;;  %2426 = vmatprep.subr.bf16.mxu1 %v5198_v60 }
 0x89f   :  { %2386 = vmatpush1.bf16.msra.mxu0 %v5203_v61  ;;  %2427 = vmatpush1.bf16.msra.mxu1 %v5208_v63 }
 0x8a0   :  { %2387 = vmatprep.subr.bf16.mxu0 %v5217_v0  ;;  %2428 = vmatprep.subr.bf16.mxu1 %v5222_v2 }
 0x8a3   :  { %2388 = vmatpush1.bf16.msra.mxu0 %v5227_v3  ;;  %2429 = vmatpush1.bf16.msra.mxu1 %v5232_v4 }
 0x8a4   :  { %2389 = vmatprep.subr.bf16.mxu0 %v5241_v49  ;;  %2430 = vmatprep.subr.bf16.mxu1 %v5246_v50 }
 0x8a7   :  { %2390 = vmatpush1.bf16.msra.mxu0 %v5251_v10  ;;  %2431 = vmatpush1.bf16.msra.mxu1 %v5256_v21 }
 0x8a8   :  { %2391 = vmatprep.subr.bf16.mxu0 %v5265_v32  ;;  %2432 = vmatprep.subr.bf16.mxu1 %v5270_v25 }
 0x8ab   :  { %2392 = vmatpush1.bf16.msra.mxu0 %v5275_v27  ;;  %2433 = vmatpush1.bf16.msra.mxu1 %v5280_v36 }
 0x8ac   :  { %2393 = vmatprep.subr.bf16.mxu0 %v5289_v19  ;;  %2434 = vmatprep.subr.bf16.mxu1 %v5294_v1 }
 0x8af   :  { %2394 = vmatpush1.bf16.msra.mxu0 %v5299_v26  ;;  %2435 = vmatpush1.bf16.msra.mxu1 %v5304_v9 }
 0x8b0   :  { %2504 = vmatprep.subr.bf16.mxu0 %v5121_v29  ;;  %2545 = vmatprep.subr.bf16.mxu1 %v5126_v7 }
 0x95d   :  { %v5420_v5 = vpop.f32.mrb[60].mxu0  ;;  %v5422_v15 = vpop.f32.mrb[60].mxu1 }
 0x95e   :  { %6076 = vst [vmem:[#allocation20_spill] sm:$0xff] %v5420_v5  ;;  %6077 = vst [vmem:[#allocation21_spill] sm:$0xff] %v5422_v15  ;;  %v5424_v24 = vpop.f32.mrb[61].mxu0  ;;  %v5426_v8 = vpop.f32.mrb[61].mxu1 }
 0x95f   :  { %6078 = vst [vmem:[#allocation22_spill] sm:$0xff] %v5424_v24  ;;  %6079 = vst [vmem:[#allocation23_spill] sm:$0xff] %v5426_v8  ;;  %v5428_v23 = vpop.f32.mrb[62].mxu0  ;;  %v5430_v12 = vpop.f32.mrb[62].mxu1  ;;  %v6087_v24 = vsub.s32 1, %v6082_v22 }
 0x960   :  { %6080 = vst [vmem:[#allocation24_spill] sm:$0xff] %v5428_v23  ;;  %6081 = vst [vmem:[#allocation25_spill] sm:$0xff] %v5430_v12  ;;  %v5440_v40 = vpop.f32.mrb[63].mxu0  ;;  %v5442_v5 = vpop.f32.mrb[63].mxu1  ;;  %v6088_v23 = vsub.s32 3, %v6082_v22  ;;  %v1991_v12 = vadd.f32 %v5319_v14, %v5438_v13 }
 0x961   :  { %6085 = vst [vmem:[#allocation4_spill] sm:$0xff] %v5440_v40  ;;  %6086 = vst [vmem:[#allocation26_spill] sm:$0xff] %v5442_v5  ;;  %v5446_v15 = vrot.slane %v1701_v30, %v6087_v24 }
 0x962   :  { %v5450_v8 = vrot.slane %v1701_v30, %v6088_v23 }
 0x963   :  { %v1920_v62 = vadd.f32 %v5321_v53, %v5446_v15 }
 0x964   :  { %v1993_v5 = vadd.f32 %v5323_v35, %v5450_v8 }
 0x965   :  { %v2292_v40 = vpop.f32.mrb[64].mxu0  ;;  %v2333_v31 = vpop.f32.mrb[64].mxu1 }
 0x966   :  { %v2340_v24 = vadd.f32 %v2292_v40, %v1918_v20  ;;  %v2342_v34 = vadd.f32 %v2333_v31, %v1991_v12  ;;  %v2294_v33 = vpop.f32.mrb[65].mxu0  ;;  %v2335_v22 = vpop.f32.mrb[65].mxu1 }
 0x967   :  { %v2341_v30 = vadd.f32 %v2294_v33, %v1920_v62  ;;  %v2343_v23 = vadd.f32 %v2335_v22, %v1993_v5  ;;  %v2296_v38 = vpop.f32.mrb[66].mxu0  ;;  %v2337_v47 = vpop.f32.mrb[66].mxu1 }
 0x968   :  { %v3460_v44 = vmul.f32 -1.442695, %v2340_v24  ;;  %v2297_v46 = vpop.f32.mrb[67].mxu0  ;;  %v2338_v45 = vpop.f32.mrb[67].mxu1 }
 0x969   :  { %v3461_v14 = vmul.f32 -1.442695, %v2341_v30  ;;  %v3462_v53 = vmul.f32 -1.442695, %v2343_v23  ;;  %v2368_v45 = vld [vmem:[%s6003_s6] sm:$0xff]  ;;  %v1922_v30 = vadd.f32 %v5328_v17, %v5434_v48  ;;  %v1995_v23 = vadd.f32 %v5330_v18, %v5438_v13 }
 0x96a   :  { %3825 = vpow2.f32 %v3460_v44  ;;  %v1924_v44 = vadd.f32 %v5333_v6, %v5446_v15 }
 0x96b   :  { %3827 = vpow2.f32 %v3461_v14  ;;  %v1997_v14 = vadd.f32 %v5335_v28, %v5450_v8 }
 0x96c   :  { %3829 = vpow2.f32 %v3462_v53 }
 0x96d   :  { %3831 = vtanh.f32 %v2342_v34 }
 0x974   :  { %v3826_v43 = vpop.eup %3825 }
 0x975   :  { %v3828_v42 = vpop.eup %3827  ;;  %v2347_v35 = vadd.f32 1.0, %v3826_v43 }
 0x976   :  { %v2353_v40 = vadd.f32 1.0, %v3828_v42  ;;  %v3830_v31 = vpop.eup %3829 }
 0x977   :  { %3833 = vrcp.f32 %v2347_v35  ;;  %v3832_v33 = vpop.eup %3831  ;;  %v2360_v12 = vadd.f32 1.0, %v3830_v31 }
 0x978   :  { %3835 = vrcp.f32 %v2353_v40 }
 0x979   :  { %3837 = vrcp.f32 %v2360_v12 }
 0x981   :  { %v3834_v5 = vpop.eup %3833 }
 0x982   :  { %v3836_v38 = vpop.eup %3835  ;;  %v2364_v47 = vmul.f32 %v3834_v5, %v3832_v33 }
 0x983   :  { %v2363_v46 = vmul.f32 0.0, %v3836_v38  ;;  %v3838_v34 = vpop.eup %3837 }
 0x985   :  { %v2365_v20 = vadd.f32 %v2364_v47, %v2363_v46 }
 0x987   :  { %3839 = vtanh.f32 %v2365_v20  ;;  %v5463_v43 = vmul.f32 %v2368_v45, %v2365_v20 }
 0x991   :  { %v3840_v42 = vpop.eup %3839 }
 0x992   :  { %v2367_v62 = vmul.f32 %v3840_v42, %v3838_v34 }
 0x994   :  { %v5465_v24 = vmul.f32 %v2368_v45, %v2367_v62 }
 0x996   :  { %2373 = vst [vmem:[%s6008_s7] sm:$0xff] %v5465_v24  ;;  %v2378_v22 = vpack.c.bf16 %v5465_v24, %v5465_v24 }
 0x998   :  { %2412 = vmatmul.mubr.bf16.vlgmr.msra.gmra.mrb[68].mxu0 %v2378_v22  ;;  %2453 = vmatmul.mubr.bf16.vlgmr.msra.gmra.mrb[68].mxu1 %v2378_v22 }
 0x999   :  { %2505 = vmatpush1.bf16.msra.mxu0 %v5131_v37  ;;  %2546 = vmatpush1.bf16.msra.mxu1 %v5136_v16 }
 0x99a   :  { %2506 = vmatprep.subr.bf16.mxu0 %v5145_v39  ;;  %2547 = vmatprep.subr.bf16.mxu1 %v5150_v51 }
 0x99b   :  { %2536 = vmatprep.mubr.bf16.mxu0 %v6039_v11  ;;  %2577 = vmatprep.mubr.bf16.mxu1 %v6039_v11 }
 0x99d   :  { %2507 = vmatpush1.bf16.msra.mxu0 %v5155_v52  ;;  %2548 = vmatpush1.bf16.msra.mxu1 %v5160_v54 }
 0x99e   :  { %2508 = vmatprep.subr.bf16.mxu0 %v5169_v55  ;;  %2549 = vmatprep.subr.bf16.mxu1 %v5174_v56 }
 0x9a1   :  { %2509 = vmatpush1.bf16.msra.mxu0 %v5179_v57  ;;  %2550 = vmatpush1.bf16.msra.mxu1 %v5184_v58 }
 0x9a2   :  { %2510 = vmatprep.subr.bf16.mxu0 %v5193_v59  ;;  %2551 = vmatprep.subr.bf16.mxu1 %v5198_v60 }
 0x9a5   :  { %2511 = vmatpush1.bf16.msra.mxu0 %v5203_v61  ;;  %2552 = vmatpush1.bf16.msra.mxu1 %v5208_v63 }
 0x9a6   :  { %2512 = vmatprep.subr.bf16.mxu0 %v5217_v0  ;;  %2553 = vmatprep.subr.bf16.mxu1 %v5222_v2 }
 0x9a9   :  { %2513 = vmatpush1.bf16.msra.mxu0 %v5227_v3  ;;  %2554 = vmatpush1.bf16.msra.mxu1 %v5232_v4 }
 0x9aa   :  { %2514 = vmatprep.subr.bf16.mxu0 %v5241_v49  ;;  %2555 = vmatprep.subr.bf16.mxu1 %v5246_v50 }
 0x9ad   :  { %2515 = vmatpush1.bf16.msra.mxu0 %v5251_v10  ;;  %2556 = vmatpush1.bf16.msra.mxu1 %v5256_v21 }
 0x9ae   :  { %2516 = vmatprep.subr.bf16.mxu0 %v5265_v32  ;;  %2557 = vmatprep.subr.bf16.mxu1 %v5270_v25 }
 0x9b1   :  { %2517 = vmatpush1.bf16.msra.mxu0 %v5275_v27  ;;  %2558 = vmatpush1.bf16.msra.mxu1 %v5280_v36 }
 0x9b2   :  { %2518 = vmatprep.subr.bf16.mxu0 %v5289_v19  ;;  %2559 = vmatprep.subr.bf16.mxu1 %v5294_v1 }
 0x9b5   :  { %2519 = vmatpush1.bf16.msra.mxu0 %v5299_v26  ;;  %2560 = vmatpush1.bf16.msra.mxu1 %v5304_v9 }
 0x9b6   :  { %2629 = vmatprep.subr.bf16.mxu0 %v5121_v29  ;;  %2670 = vmatprep.subr.bf16.mxu1 %v5126_v7 }
 0xa6b   :  { %v2413_v53 = vpop.f32.mrb[68].mxu0  ;;  %v2454_v35 = vpop.f32.mrb[68].mxu1 }
 0xa6c   :  { %v2461_v40 = vadd.f32 %v2413_v53, %v1922_v30  ;;  %v2463_v31 = vadd.f32 %v2454_v35, %v1995_v23  ;;  %v2415_v33 = vpop.f32.mrb[69].mxu0  ;;  %v2456_v5 = vpop.f32.mrb[69].mxu1 }
 0xa6d   :  { %v2462_v38 = vadd.f32 %v2415_v33, %v1924_v44  ;;  %v2464_v47 = vadd.f32 %v2456_v5, %v1997_v14  ;;  %v2417_v12 = vpop.f32.mrb[70].mxu0  ;;  %v2458_v46 = vpop.f32.mrb[70].mxu1  ;;  %v3466_v33 = vld [vmem:[%s6003_s6 + $0x8] sm:$0xff] }
 0xa6e   :  { %v3463_v17 = vmul.f32 -1.442695, %v2461_v40  ;;  %v2418_v45 = vpop.f32.mrb[71].mxu0  ;;  %v2459_v20 = vpop.f32.mrb[71].mxu1 }
 0xa6f   :  { %v3464_v18 = vmul.f32 -1.442695, %v2462_v38  ;;  %v3465_v6 = vmul.f32 -1.442695, %v2464_v47 }
 0xa70   :  { %3841 = vpow2.f32 %v3463_v17 }
 0xa71   :  { %3843 = vpow2.f32 %v3464_v18 }
 0xa72   :  { %3845 = vpow2.f32 %v3465_v6 }
 0xa73   :  { %3847 = vtanh.f32 %v2463_v31 }
 0xa7a   :  { %v3842_v34 = vpop.eup %3841 }
 0xa7b   :  { %v3844_v42 = vpop.eup %3843  ;;  %v2468_v28 = vadd.f32 1.0, %v3842_v34 }
 0xa7c   :  { %v2474_v62 = vadd.f32 1.0, %v3844_v42  ;;  %v3846_v22 = vpop.eup %3845  ;;  %v6090_v42 = vld [vmem:[#allocation6_spill] sm:$0xff] }
 0xa7d   :  { %3849 = vrcp.f32 %v2468_v28  ;;  %v3848_v30 = vpop.eup %3847  ;;  %v2481_v53 = vadd.f32 1.0, %v3846_v22  ;;  %v1930_v28 = vadd.f32 %v6090_v42, %v5446_v15 }
 0xa7e   :  { %3851 = vrcp.f32 %v2474_v62  ;;  %v6091_v62 = vld [vmem:[#allocation7_spill] sm:$0xff] }
 0xa7f   :  { %3853 = vrcp.f32 %v2481_v53  ;;  %v2003_v22 = vadd.f32 %v6091_v62, %v5450_v8 }
 0xa87   :  { %v3850_v23 = vpop.eup %3849 }
 0xa88   :  { %v3852_v44 = vpop.eup %3851  ;;  %v2485_v14 = vmul.f32 %v3850_v23, %v3848_v30 }
 0xa89   :  { %v2484_v35 = vmul.f32 %v3852_v44, %v5463_v43  ;;  %v3854_v47 = vpop.eup %3853 }
 0xa8b   :  { %v2486_v40 = vadd.f32 %v2485_v14, %v2484_v35 }
 0xa8d   :  { %3855 = vtanh.f32 %v2486_v40  ;;  %v2493_v31 = vsub.f32 %v2486_v40, %v5463_v43 }
 0xa8f   :  { %v2494_v5 = vmul.f32 %v3466_v33, %v2493_v31 }
 0xa91   :  { %v5521_v38 = vadd.f32 %v2494_v5, %v5463_v43  ;;  %v1928_v43 = vadd.f32 %v5338_v41, %v5434_v48 }
 0xa97   :  { %v3856_v12 = vpop.eup %3855 }
 0xa98   :  { %v2488_v46 = vmul.f32 %v3856_v12, %v3854_v47 }
 0xa9a   :  { %v2490_v17 = vsub.f32 %v2488_v46, %v5465_v24  ;;  %v2496_v45 = vmul.f32 %v3466_v33, %v2488_v46 }
 0xa9c   :  { %v2491_v20 = vmul.f32 %v3466_v33, %v2490_v17  ;;  %3467 = vst [vmem:[%s6008_s7 + $0x8] sm:$0xff] %v2496_v45 }
 0xa9e   :  { %v5528_v18 = vadd.f32 %v2491_v20, %v5465_v24  ;;  %v6089_v24 = vld [vmem:[#allocation5_spill] sm:$0xff] }
 0xa9f   :  { %v2001_v34 = vadd.f32 %v6089_v24, %v5438_v13 }
 0xaa0   :  { %v2503_v6 = vpack.c.bf16 %v5528_v18, %v5528_v18 }
 0xaa2   :  { %2537 = vmatmul.mubr.bf16.vlgmr.msra.gmra.mrb[72].mxu0 %v2503_v6  ;;  %2578 = vmatmul.mubr.bf16.vlgmr.msra.gmra.mrb[72].mxu1 %v2503_v6 }
 0xaa3   :  { %2630 = vmatpush1.bf16.msra.mxu0 %v5131_v37  ;;  %2671 = vmatpush1.bf16.msra.mxu1 %v5136_v16 }
 0xaa4   :  { %2631 = vmatprep.subr.bf16.mxu0 %v5145_v39  ;;  %2672 = vmatprep.subr.bf16.mxu1 %v5150_v51 }
 0xaa5   :  { %2661 = vmatprep.mubr.bf16.mxu0 %v6039_v11  ;;  %2702 = vmatprep.mubr.bf16.mxu1 %v6039_v11 }
 0xaa7   :  { %2632 = vmatpush1.bf16.msra.mxu0 %v5155_v52  ;;  %2673 = vmatpush1.bf16.msra.mxu1 %v5160_v54 }
 0xaa8   :  { %2633 = vmatprep.subr.bf16.mxu0 %v5169_v55  ;;  %2674 = vmatprep.subr.bf16.mxu1 %v5174_v56 }
 0xaab   :  { %2634 = vmatpush1.bf16.msra.mxu0 %v5179_v57  ;;  %2675 = vmatpush1.bf16.msra.mxu1 %v5184_v58 }
 0xaac   :  { %2635 = vmatprep.subr.bf16.mxu0 %v5193_v59  ;;  %2676 = vmatprep.subr.bf16.mxu1 %v5198_v60 }
 0xaaf   :  { %2636 = vmatpush1.bf16.msra.mxu0 %v5203_v61  ;;  %2677 = vmatpush1.bf16.msra.mxu1 %v5208_v63 }
 0xab0   :  { %2637 = vmatprep.subr.bf16.mxu0 %v5217_v0  ;;  %2678 = vmatprep.subr.bf16.mxu1 %v5222_v2 }
 0xab3   :  { %2638 = vmatpush1.bf16.msra.mxu0 %v5227_v3  ;;  %2679 = vmatpush1.bf16.msra.mxu1 %v5232_v4 }
 0xab4   :  { %2639 = vmatprep.subr.bf16.mxu0 %v5241_v49  ;;  %2680 = vmatprep.subr.bf16.mxu1 %v5246_v50 }
 0xab7   :  { %2640 = vmatpush1.bf16.msra.mxu0 %v5251_v10  ;;  %2681 = vmatpush1.bf16.msra.mxu1 %v5256_v21 }
 0xab8   :  { %2641 = vmatprep.subr.bf16.mxu0 %v5265_v32  ;;  %2682 = vmatprep.subr.bf16.mxu1 %v5270_v25 }
 0xabb   :  { %2642 = vmatpush1.bf16.msra.mxu0 %v5275_v27  ;;  %2683 = vmatpush1.bf16.msra.mxu1 %v5280_v36 }
 0xabc   :  { %2643 = vmatprep.subr.bf16.mxu0 %v5289_v19  ;;  %2684 = vmatprep.subr.bf16.mxu1 %v5294_v1 }
 0xabf   :  { %2644 = vmatpush1.bf16.msra.mxu0 %v5299_v26  ;;  %2685 = vmatpush1.bf16.msra.mxu1 %v5304_v9 }
 0xac0   :  { %2754 = vmatprep.subr.bf16.mxu0 %v5121_v29  ;;  %2795 = vmatprep.subr.bf16.mxu1 %v5126_v7 }
 0xb75   :  { %v2538_v30 = vpop.f32.mrb[72].mxu0  ;;  %v2579_v23 = vpop.f32.mrb[72].mxu1 }
 0xb76   :  { %v2586_v44 = vadd.f32 %v2538_v30, %v1928_v43  ;;  %v2588_v14 = vadd.f32 %v2579_v23, %v2001_v34  ;;  %v2540_v53 = vpop.f32.mrb[73].mxu0  ;;  %v2581_v35 = vpop.f32.mrb[73].mxu1 }
 0xb77   :  { %v2587_v40 = vadd.f32 %v2540_v53, %v1930_v28  ;;  %v2589_v33 = vadd.f32 %v2581_v35, %v2003_v22  ;;  %v2542_v31 = vpop.f32.mrb[74].mxu0  ;;  %v2583_v5 = vpop.f32.mrb[74].mxu1 }
 0xb78   :  { %v3468_v41 = vmul.f32 -1.442695, %v2586_v44  ;;  %v2543_v47 = vpop.f32.mrb[75].mxu0  ;;  %v2584_v12 = vpop.f32.mrb[75].mxu1  ;;  %v3471_v44 = vld [vmem:[%s6003_s6 + $0x10] sm:$0xff] }
 0xb79   :  { %v3469_v46 = vmul.f32 -1.442695, %v2587_v40  ;;  %v3470_v17 = vmul.f32 -1.442695, %v2589_v33 }
 0xb7a   :  { %3857 = vpow2.f32 %v3468_v41 }
 0xb7b   :  { %3859 = vpow2.f32 %v3469_v46 }
 0xb7c   :  { %3861 = vpow2.f32 %v3470_v17  ;;  %v6093_v17 = vld [vmem:[#allocation9_spill] sm:$0xff] }
 0xb7d   :  { %3863 = vtanh.f32 %v2588_v14 }
 0xb84   :  { %v3858_v45 = vpop.eup %3857 }
 0xb85   :  { %v3860_v20 = vpop.eup %3859  ;;  %v2593_v6 = vadd.f32 1.0, %v3858_v45  ;;  %v2005_v45 = vadd.f32 %v6093_v17, %v5438_v13 }
 0xb86   :  { %v2599_v43 = vadd.f32 1.0, %v3860_v20  ;;  %v3862_v24 = vpop.eup %3861  ;;  %v6094_v20 = vld [vmem:[#allocation10_spill] sm:$0xff] }
 0xb87   :  { %3865 = vrcp.f32 %v2593_v6  ;;  %v3864_v34 = vpop.eup %3863  ;;  %v2606_v22 = vadd.f32 1.0, %v3862_v24  ;;  %v1934_v6 = vadd.f32 %v6094_v20, %v5446_v15 }
 0xb88   :  { %3867 = vrcp.f32 %v2599_v43  ;;  %v6095_v43 = vld [vmem:[#allocation11_spill] sm:$0xff] }
 0xb89   :  { %3869 = vrcp.f32 %v2606_v22  ;;  %v2007_v24 = vadd.f32 %v6095_v43, %v5450_v8 }
 0xb91   :  { %v3866_v42 = vpop.eup %3865 }
 0xb92   :  { %v3868_v28 = vpop.eup %3867  ;;  %v2610_v62 = vmul.f32 %v3866_v42, %v3864_v34 }
 0xb93   :  { %v2609_v30 = vmul.f32 %v3868_v28, %v5521_v38  ;;  %v3870_v40 = vpop.eup %3869 }
 0xb95   :  { %v2611_v23 = vadd.f32 %v2610_v62, %v2609_v30 }
 0xb97   :  { %3871 = vtanh.f32 %v2611_v23  ;;  %v2618_v14 = vsub.f32 %v2611_v23, %v5521_v38 }
 0xb99   :  { %v2619_v53 = vmul.f32 %v3471_v44, %v2618_v14 }
 0xb9b   :  { %v5580_v35 = vadd.f32 %v2619_v53, %v5521_v38  ;;  %v6092_v38 = vld [vmem:[#allocation8_spill] sm:$0xff] }
 0xba1   :  { %v3872_v33 = vpop.eup %3871 }
 0xba2   :  { %v2613_v31 = vmul.f32 %v3872_v33, %v3870_v40 }
 0xba4   :  { %v2615_v5 = vsub.f32 %v2613_v31, %v5528_v18  ;;  %v2621_v41 = vmul.f32 %v3471_v44, %v2613_v31 }
 0xba6   :  { %v2616_v47 = vmul.f32 %v3471_v44, %v2615_v5  ;;  %3472 = vst [vmem:[%s6008_s7 + $0x10] sm:$0xff] %v2621_v41 }
 0xba8   :  { %v5587_v12 = vadd.f32 %v2616_v47, %v5528_v18  ;;  %v1932_v18 = vadd.f32 %v6092_v38, %v5434_v48 }
 0xbaa   :  { %v2628_v46 = vpack.c.bf16 %v5587_v12, %v5587_v12 }
 0xbac   :  { %2662 = vmatmul.mubr.bf16.vlgmr.msra.gmra.mrb[76].mxu0 %v2628_v46  ;;  %2703 = vmatmul.mubr.bf16.vlgmr.msra.gmra.mrb[76].mxu1 %v2628_v46 }
 0xbad   :  { %2755 = vmatpush1.bf16.msra.mxu0 %v5131_v37  ;;  %2796 = vmatpush1.bf16.msra.mxu1 %v5136_v16 }
 0xbae   :  { %2756 = vmatprep.subr.bf16.mxu0 %v5145_v39  ;;  %2797 = vmatprep.subr.bf16.mxu1 %v5150_v51 }
 0xbaf   :  { %2786 = vmatprep.mubr.bf16.mxu0 %v6039_v11  ;;  %2827 = vmatprep.mubr.bf16.mxu1 %v6039_v11 }
 0xbb1   :  { %2757 = vmatpush1.bf16.msra.mxu0 %v5155_v52  ;;  %2798 = vmatpush1.bf16.msra.mxu1 %v5160_v54 }
 0xbb2   :  { %2758 = vmatprep.subr.bf16.mxu0 %v5169_v55  ;;  %2799 = vmatprep.subr.bf16.mxu1 %v5174_v56 }
 0xbb5   :  { %2759 = vmatpush1.bf16.msra.mxu0 %v5179_v57  ;;  %2800 = vmatpush1.bf16.msra.mxu1 %v5184_v58 }
 0xbb6   :  { %2760 = vmatprep.subr.bf16.mxu0 %v5193_v59  ;;  %2801 = vmatprep.subr.bf16.mxu1 %v5198_v60 }
 0xbb9   :  { %2761 = vmatpush1.bf16.msra.mxu0 %v5203_v61  ;;  %2802 = vmatpush1.bf16.msra.mxu1 %v5208_v63 }
 0xbba   :  { %2762 = vmatprep.subr.bf16.mxu0 %v5217_v0  ;;  %2803 = vmatprep.subr.bf16.mxu1 %v5222_v2 }
 0xbbd   :  { %2763 = vmatpush1.bf16.msra.mxu0 %v5227_v3  ;;  %2804 = vmatpush1.bf16.msra.mxu1 %v5232_v4 }
 0xbbe   :  { %2764 = vmatprep.subr.bf16.mxu0 %v5241_v49  ;;  %2805 = vmatprep.subr.bf16.mxu1 %v5246_v50 }
 0xbc1   :  { %2765 = vmatpush1.bf16.msra.mxu0 %v5251_v10  ;;  %2806 = vmatpush1.bf16.msra.mxu1 %v5256_v21 }
 0xbc2   :  { %2766 = vmatprep.subr.bf16.mxu0 %v5265_v32  ;;  %2807 = vmatprep.subr.bf16.mxu1 %v5270_v25 }
 0xbc5   :  { %2767 = vmatpush1.bf16.msra.mxu0 %v5275_v27  ;;  %2808 = vmatpush1.bf16.msra.mxu1 %v5280_v36 }
 0xbc6   :  { %2768 = vmatprep.subr.bf16.mxu0 %v5289_v19  ;;  %2809 = vmatprep.subr.bf16.mxu1 %v5294_v1 }
 0xbc9   :  { %2769 = vmatpush1.bf16.msra.mxu0 %v5299_v26  ;;  %2810 = vmatpush1.bf16.msra.mxu1 %v5304_v9 }
 0xbca   :  { %2879 = vmatprep.subr.bf16.mxu0 %v5121_v29  ;;  %2920 = vmatprep.subr.bf16.mxu1 %v5126_v7 }
 0xc7f   :  { %v2663_v34 = vpop.f32.mrb[76].mxu0  ;;  %v2704_v42 = vpop.f32.mrb[76].mxu1 }
 0xc80   :  { %v2711_v28 = vadd.f32 %v2663_v34, %v1932_v18  ;;  %v2713_v62 = vadd.f32 %v2704_v42, %v2005_v45  ;;  %v2665_v22 = vpop.f32.mrb[77].mxu0  ;;  %v2706_v29 = vpop.f32.mrb[77].mxu1  ;;  %v3476_v34 = vld [vmem:[%s6003_s6 + $0x18] sm:$0xff] }
 0xc81   :  { %v2712_v30 = vadd.f32 %v2665_v22, %v1934_v6  ;;  %v2714_v7 = vadd.f32 %v2706_v29, %v2007_v24  ;;  %v2667_v23 = vpop.f32.mrb[78].mxu0  ;;  %v2708_v44 = vpop.f32.mrb[78].mxu1 }
 0xc82   :  { %v3473_v14 = vmul.f32 -1.442695, %v2711_v28  ;;  %v2668_v53 = vpop.f32.mrb[79].mxu0  ;;  %v2709_v40 = vpop.f32.mrb[79].mxu1 }
 0xc83   :  { %v3474_v33 = vmul.f32 -1.442695, %v2712_v30  ;;  %v3475_v31 = vmul.f32 -1.442695, %v2714_v7 }
 0xc84   :  { %3873 = vpow2.f32 %v3473_v14 }
 0xc85   :  { %3875 = vpow2.f32 %v3474_v33 }
 0xc86   :  { %3877 = vpow2.f32 %v3475_v31 }
 0xc87   :  { %3879 = vtanh.f32 %v2713_v62 }
 0xc8e   :  { %v3874_v5 = vpop.eup %3873 }
 0xc8f   :  { %v3876_v41 = vpop.eup %3875  ;;  %v2718_v47 = vadd.f32 1.0, %v3874_v5 }
 0xc90   :  { %v2724_v46 = vadd.f32 1.0, %v3876_v41  ;;  %v3878_v38 = vpop.eup %3877 }
 0xc91   :  { %3881 = vrcp.f32 %v2718_v47  ;;  %v3880_v18 = vpop.eup %3879  ;;  %v2731_v6 = vadd.f32 1.0, %v3878_v38  ;;  %v3481_v47 = vld [vmem:[%s6003_s6 + $0x20] sm:$0xff] }
 0xc92   :  { %3883 = vrcp.f32 %v2724_v46 }
 0xc93   :  { %3885 = vrcp.f32 %v2731_v6 }
 0xc9b   :  { %v3882_v17 = vpop.eup %3881 }
 0xc9c   :  { %v3884_v45 = vpop.eup %3883  ;;  %v2735_v20 = vmul.f32 %v3882_v17, %v3880_v18 }
 0xc9d   :  { %v2734_v43 = vmul.f32 %v3884_v45, %v5580_v35  ;;  %v3886_v22 = vpop.eup %3885 }
 0xc9f   :  { %v2736_v24 = vadd.f32 %v2735_v20, %v2734_v43 }
 0xca1   :  { %3887 = vtanh.f32 %v2736_v24  ;;  %v2743_v42 = vsub.f32 %v2736_v24, %v5580_v35 }
 0xca3   :  { %v2744_v28 = vmul.f32 %v3476_v34, %v2743_v42 }
 0xca5   :  { %v5639_v62 = vadd.f32 %v2744_v28, %v5580_v35  ;;  %v5722_v28 = vld [vmem:[%s6001_s5 + $0x100] ss:$16 sps:$4 sm:$0xff]  }
 0xcab   :  { %v3888_v29 = vpop.eup %3887 }
 0xcac   :  { %v2738_v30 = vmul.f32 %v3888_v29, %v3886_v22  ;;  %v5734_v22 = vld [vmem:[%s6001_s5 + $0x124] ss:$16 sps:$4 sm:$0xff]   ;;  %v5740_v29 = vld [vmem:[%s6001_s5 + $0x12c] ss:$16 sps:$4 sm:$0xff]  }
 0xcae   :  { %v2740_v7 = vsub.f32 %v2738_v30, %v5587_v12  ;;  %v2746_v23 = vmul.f32 %v3476_v34, %v2738_v30  ;;  %v5748_v30 = vld [vmem:[%s6001_s5 + $0x120] ss:$16 sps:$4 sm:$0xff]  }
 0xcb0   :  { %v2741_v44 = vmul.f32 %v3476_v34, %v2740_v7  ;;  %3477 = vst [vmem:[%s6008_s7 + $0x18] sm:$0xff] %v2746_v23  ;;  %v5754_v7 = vld [vmem:[%s6001_s5 + $0x128] ss:$16 sps:$4 sm:$0xff]   ;;  %v5760_v23 = vld [vmem:[%s6001_s5 + $0x144] ss:$16 sps:$4 sm:$0xff]  }
 0xcb2   :  { %v5646_v14 = vadd.f32 %v2741_v44, %v5587_v12  ;;  %v5766_v44 = vld [vmem:[%s6001_s5 + $0x14c] ss:$16 sps:$4 sm:$0xff]  }
 0xcb4   :  { %v2753_v53 = vpack.c.bf16 %v5646_v14, %v5646_v14 }
 0xcb6   :  { %2787 = vmatmul.mubr.bf16.vlgmr.msra.gmra.mrb[80].mxu0 %v2753_v53  ;;  %2828 = vmatmul.mubr.bf16.vlgmr.msra.gmra.mrb[80].mxu1 %v2753_v53  ;;  %v5778_v53 = vld [vmem:[%s6001_s5 + $0x148] ss:$16 sps:$4 sm:$0xff]  }
 0xcb7   :  { %2880 = vmatpush1.bf16.msra.mxu0 %v5131_v37  ;;  %2921 = vmatpush1.bf16.msra.mxu1 %v5136_v16  ;;  %v5685_v37 = vld [vmem:[%s6001_s5 + $0x104] ss:$16 sps:$4 sm:$0xff]   ;;  %v5691_v16 = vld [vmem:[%s6001_s5 + $0x10c] ss:$16 sps:$4 sm:$0xff]  }
 0xcb8   :  { %2881 = vmatprep.subr.bf16.mxu0 %v5145_v39  ;;  %2922 = vmatprep.subr.bf16.mxu1 %v5150_v51  ;;  %v6096_v39 = vld [vmem:[#allocation12_spill] sm:$0xff] }
 0xcb9   :  { %2911 = vmatprep.mubr.bf16.mxu0 %v6039_v11  ;;  %2952 = vmatprep.mubr.bf16.mxu1 %v6039_v11  ;;  %v1938_v51 = vadd.f32 %v6096_v39, %v5434_v48  ;;  %v5784_v39 = vld [vmem:[%s6001_s5 + $0x164] ss:$16 sps:$4 sm:$0xff]  }
 0xcbb   :  { %2882 = vmatpush1.bf16.msra.mxu0 %v5155_v52  ;;  %2923 = vmatpush1.bf16.msra.mxu1 %v5160_v54  ;;  %v6097_v52 = vld [vmem:[#allocation13_spill] sm:$0xff] }
 0xcbc   :  { %2883 = vmatprep.subr.bf16.mxu0 %v5169_v55  ;;  %2924 = vmatprep.subr.bf16.mxu1 %v5174_v56  ;;  %v2011_v54 = vadd.f32 %v6097_v52, %v5438_v13  ;;  %v6098_v55 = vld [vmem:[#allocation14_spill] sm:$0xff] }
 0xcbd   :  { %v1940_v56 = vadd.f32 %v6098_v55, %v5446_v15  ;;  %v5796_v52 = vld [vmem:[%s6001_s5 + $0x160] ss:$16 sps:$4 sm:$0xff]   ;;  %v5808_v55 = vld [vmem:[%s6001_s5 + $0x184] ss:$16 sps:$4 sm:$0xff]  }
 0xcbf   :  { %2884 = vmatpush1.bf16.msra.mxu0 %v5179_v57  ;;  %2925 = vmatpush1.bf16.msra.mxu1 %v5184_v58  ;;  %v6099_v57 = vld [vmem:[#allocation15_spill] sm:$0xff] }
 0xcc0   :  { %2885 = vmatprep.subr.bf16.mxu0 %v5193_v59  ;;  %2926 = vmatprep.subr.bf16.mxu1 %v5198_v60  ;;  %v2013_v58 = vadd.f32 %v6099_v57, %v5450_v8  ;;  %v5820_v57 = vld [vmem:[%s6001_s5 + $0x180] ss:$16 sps:$4 sm:$0xff]  }
 0xcc3   :  { %2886 = vmatpush1.bf16.msra.mxu0 %v5203_v61  ;;  %2927 = vmatpush1.bf16.msra.mxu1 %v5208_v63 }
 0xcc4   :  { %2887 = vmatprep.subr.bf16.mxu0 %v5217_v0  ;;  %2928 = vmatprep.subr.bf16.mxu1 %v5222_v2 }
 0xcc7   :  { %2888 = vmatpush1.bf16.msra.mxu0 %v5227_v3  ;;  %2929 = vmatpush1.bf16.msra.mxu1 %v5232_v4 }
 0xcc8   :  { %2889 = vmatprep.subr.bf16.mxu0 %v5241_v49  ;;  %2930 = vmatprep.subr.bf16.mxu1 %v5246_v50 }
 0xccb   :  { %2890 = vmatpush1.bf16.msra.mxu0 %v5251_v10  ;;  %2931 = vmatpush1.bf16.msra.mxu1 %v5256_v21 }
 0xccc   :  { %2891 = vmatprep.subr.bf16.mxu0 %v5265_v32  ;;  %2932 = vmatprep.subr.bf16.mxu1 %v5270_v25 }
 0xccf   :  { %2892 = vmatpush1.bf16.msra.mxu0 %v5275_v27  ;;  %2933 = vmatpush1.bf16.msra.mxu1 %v5280_v36 }
 0xcd0   :  { %2893 = vmatprep.subr.bf16.mxu0 %v5289_v19  ;;  %2934 = vmatprep.subr.bf16.mxu1 %v5294_v1 }
 0xcd3   :  { %2894 = vmatpush1.bf16.msra.mxu0 %v5299_v26  ;;  %2935 = vmatpush1.bf16.msra.mxu1 %v5304_v9 }
 0xcd4   :  { %3004 = vmatprep.subr.bf16.mxu0 %v5685_v37  ;;  %3045 = vmatprep.subr.bf16.mxu1 %v5691_v16 }
 0xd89   :  { %v2788_v59 = vpop.f32.mrb[80].mxu0  ;;  %v2829_v60 = vpop.f32.mrb[80].mxu1 }
 0xd8a   :  { %v2836_v61 = vadd.f32 %v2788_v59, %v1938_v51  ;;  %v2838_v63 = vadd.f32 %v2829_v60, %v2011_v54  ;;  %v2790_v0 = vpop.f32.mrb[81].mxu0  ;;  %v2831_v2 = vpop.f32.mrb[81].mxu1  ;;  %v5790_v51 = vld [vmem:[%s6001_s5 + $0x16c] ss:$16 sps:$4 sm:$0xff]   ;;  %v5802_v54 = vld [vmem:[%s6001_s5 + $0x168] ss:$16 sps:$4 sm:$0xff]  }
 0xd8b   :  { %v2837_v3 = vadd.f32 %v2790_v0, %v1940_v56  ;;  %v2839_v4 = vadd.f32 %v2831_v2, %v2013_v58  ;;  %v2792_v49 = vpop.f32.mrb[82].mxu0  ;;  %v2833_v50 = vpop.f32.mrb[82].mxu1  ;;  %v5814_v56 = vld [vmem:[%s6001_s5 + $0x18c] ss:$16 sps:$4 sm:$0xff]   ;;  %v5826_v58 = vld [vmem:[%s6001_s5 + $0x188] ss:$16 sps:$4 sm:$0xff]  }
 0xd8c   :  { %v3478_v10 = vmul.f32 -1.442695, %v2836_v61  ;;  %v2793_v21 = vpop.f32.mrb[83].mxu0  ;;  %v2834_v32 = vpop.f32.mrb[83].mxu1  ;;  %v5832_v59 = vld [vmem:[%s6001_s5 + $0x1a4] ss:$16 sps:$4 sm:$0xff]  }
 0xd8d   :  { %v3479_v25 = vmul.f32 -1.442695, %v2837_v3  ;;  %v3480_v27 = vmul.f32 -1.442695, %v2839_v4  ;;  %v5838_v60 = vld [vmem:[%s6001_s5 + $0x1ac] ss:$16 sps:$4 sm:$0xff]  }
 0xd8e   :  { %3889 = vpow2.f32 %v3478_v10  ;;  %v5844_v61 = vld [vmem:[%s6001_s5 + $0x1a0] ss:$16 sps:$4 sm:$0xff]   ;;  %v5856_v0 = vld [vmem:[%s6001_s5 + $0x1c4] ss:$16 sps:$4 sm:$0xff]   ;;  %v5862_v2 = vld [vmem:[%s6001_s5 + $0x1cc] ss:$16 sps:$4 sm:$0xff]  }
 0xd8f   :  { %3891 = vpow2.f32 %v3479_v25  ;;  %v5868_v3 = vld [vmem:[%s6001_s5 + $0x1c0] ss:$16 sps:$4 sm:$0xff]   ;;  %v5874_v4 = vld [vmem:[%s6001_s5 + $0x1c8] ss:$16 sps:$4 sm:$0xff]   ;;  %v5880_v49 = vld [vmem:[%s6001_s5 + $0x1e4] ss:$16 sps:$4 sm:$0xff]  }
 0xd90   :  { %3893 = vpow2.f32 %v3480_v27  ;;  %v5886_v50 = vld [vmem:[%s6001_s5 + $0x1ec] ss:$16 sps:$4 sm:$0xff]   ;;  %v5892_v10 = vld [vmem:[%s6001_s5 + $0x1e0] ss:$16 sps:$4 sm:$0xff]   ;;  %v5898_v21 = vld [vmem:[%s6001_s5 + $0x1e8] ss:$16 sps:$4 sm:$0xff]  }
 0xd91   :  { %3895 = vtanh.f32 %v2838_v63  ;;  %v5850_v63 = vld [vmem:[%s6001_s5 + $0x1a8] ss:$16 sps:$4 sm:$0xff]   ;;  %v6100_v32 = vld [vmem:[#allocation16_spill] sm:$0xff] }
 0xd92   :  { %v1942_v25 = vadd.f32 %v6100_v32, %v5434_v48  ;;  %v6101_v27 = vld [vmem:[#allocation17_spill] sm:$0xff] }
 0xd98   :  { %v3890_v36 = vpop.eup %3889 }
 0xd99   :  { %v3892_v19 = vpop.eup %3891  ;;  %v2843_v1 = vadd.f32 1.0, %v3890_v36  ;;  %v2015_v36 = vadd.f32 %v6101_v27, %v5438_v13 }
 0xd9a   :  { %v2849_v26 = vadd.f32 1.0, %v3892_v19  ;;  %v3894_v9 = vpop.eup %3893  ;;  %v6102_v19 = vld [vmem:[#allocation18_spill] sm:$0xff] }
 0xd9b   :  { %3897 = vrcp.f32 %v2843_v1  ;;  %v3896_v35 = vpop.eup %3895  ;;  %v2856_v31 = vadd.f32 1.0, %v3894_v9  ;;  %v1944_v1 = vadd.f32 %v6102_v19, %v5446_v15 }
 0xd9c   :  { %3899 = vrcp.f32 %v2849_v26  ;;  %v6103_v26 = vld [vmem:[#allocation19_spill] sm:$0xff] }
 0xd9d   :  { %3901 = vrcp.f32 %v2856_v31  ;;  %v2017_v9 = vadd.f32 %v6103_v26, %v5450_v8 }
 0xda5   :  { %v3898_v12 = vpop.eup %3897 }
 0xda6   :  { %v3900_v40 = vpop.eup %3899  ;;  %v2860_v33 = vmul.f32 %v3898_v12, %v3896_v35 }
 0xda7   :  { %v2859_v5 = vmul.f32 %v3900_v40, %v5639_v62  ;;  %v3902_v17 = vpop.eup %3901 }
 0xda9   :  { %v2861_v41 = vadd.f32 %v2860_v33, %v2859_v5 }
 0xdab   :  { %3903 = vtanh.f32 %v2861_v41  ;;  %v2868_v46 = vsub.f32 %v2861_v41, %v5639_v62 }
 0xdad   :  { %v2869_v38 = vmul.f32 %v3481_v47, %v2868_v46 }
 0xdaf   :  { %v5708_v18 = vadd.f32 %v2869_v38, %v5639_v62  ;;  %v5728_v62 = vld [vmem:[%s6001_s5 + $0x108] ss:$16 sps:$4 sm:$0xff]  }
 0xdb5   :  { %v3904_v45 = vpop.eup %3903 }
 0xdb6   :  { %v2863_v20 = vmul.f32 %v3904_v45, %v3902_v17 }
 0xdb8   :  { %v2865_v6 = vsub.f32 %v2863_v20, %v5646_v14  ;;  %v2871_v43 = vmul.f32 %v3481_v47, %v2863_v20 }
 0xdba   :  { %v2866_v24 = vmul.f32 %v3481_v47, %v2865_v6  ;;  %3482 = vst [vmem:[%s6008_s7 + $0x20] sm:$0xff] %v2871_v43 }
 0xdbc   :  { %v5715_v34 = vadd.f32 %v2866_v24, %v5646_v14  ;;  %v5772_v14 = vld [vmem:[%s6001_s5 + $0x140] ss:$16 sps:$4 sm:$0xff]  }
 0xdbe   :  { %v2878_v42 = vpack.c.bf16 %v5715_v34, %v5715_v34 }
 0xdc0   :  { %2912 = vmatmul.mubr.bf16.vlgmr.msra.gmra.mrb[84].mxu0 %v2878_v42  ;;  %2953 = vmatmul.mubr.bf16.vlgmr.msra.gmra.mrb[84].mxu1 %v2878_v42 }
 0xdc1   :  { %3005 = vmatpush1.bf16.msra.mxu0 %v5722_v28  ;;  %3046 = vmatpush1.bf16.msra.mxu1 %v5728_v62 }
 0xdc2   :  { %3006 = vmatprep.subr.bf16.mxu0 %v5734_v22  ;;  %3047 = vmatprep.subr.bf16.mxu1 %v5740_v29 }
 0xdc3   :  { %3036 = vmatprep.mubr.bf16.mxu0 %v6039_v11  ;;  %3077 = vmatprep.mubr.bf16.mxu1 %v6039_v11 }
 0xdc5   :  { %3007 = vmatpush1.bf16.msra.mxu0 %v5748_v30  ;;  %3048 = vmatpush1.bf16.msra.mxu1 %v5754_v7 }
 0xdc6   :  { %3008 = vmatprep.subr.bf16.mxu0 %v5760_v23  ;;  %3049 = vmatprep.subr.bf16.mxu1 %v5766_v44 }
 0xdc9   :  { %3009 = vmatpush1.bf16.msra.mxu0 %v5772_v14  ;;  %3050 = vmatpush1.bf16.msra.mxu1 %v5778_v53 }
 0xdca   :  { %3010 = vmatprep.subr.bf16.mxu0 %v5784_v39  ;;  %3051 = vmatprep.subr.bf16.mxu1 %v5790_v51 }
 0xdcd   :  { %3011 = vmatpush1.bf16.msra.mxu0 %v5796_v52  ;;  %3052 = vmatpush1.bf16.msra.mxu1 %v5802_v54 }
 0xdce   :  { %3012 = vmatprep.subr.bf16.mxu0 %v5808_v55  ;;  %3053 = vmatprep.subr.bf16.mxu1 %v5814_v56 }
 0xdd1   :  { %3013 = vmatpush1.bf16.msra.mxu0 %v5820_v57  ;;  %3054 = vmatpush1.bf16.msra.mxu1 %v5826_v58 }
 0xdd2   :  { %3014 = vmatprep.subr.bf16.mxu0 %v5832_v59  ;;  %3055 = vmatprep.subr.bf16.mxu1 %v5838_v60 }
 0xdd5   :  { %3015 = vmatpush1.bf16.msra.mxu0 %v5844_v61  ;;  %3056 = vmatpush1.bf16.msra.mxu1 %v5850_v63 }
 0xdd6   :  { %3016 = vmatprep.subr.bf16.mxu0 %v5856_v0  ;;  %3057 = vmatprep.subr.bf16.mxu1 %v5862_v2 }
 0xdd9   :  { %3017 = vmatpush1.bf16.msra.mxu0 %v5868_v3  ;;  %3058 = vmatpush1.bf16.msra.mxu1 %v5874_v4 }
 0xdda   :  { %3018 = vmatprep.subr.bf16.mxu0 %v5880_v49  ;;  %3059 = vmatprep.subr.bf16.mxu1 %v5886_v50 }
 0xddd   :  { %3019 = vmatpush1.bf16.msra.mxu0 %v5892_v10  ;;  %3060 = vmatpush1.bf16.msra.mxu1 %v5898_v21 }
 0xdde   :  { %3129 = vmatprep.subr.bf16.mxu0 %v5685_v37  ;;  %3170 = vmatprep.subr.bf16.mxu1 %v5691_v16 }
 0xe93   :  { %v2913_v35 = vpop.f32.mrb[84].mxu0  ;;  %v2954_v12 = vpop.f32.mrb[84].mxu1 }
 0xe94   :  { %v2961_v40 = vadd.f32 %v2913_v35, %v1942_v25  ;;  %v2963_v33 = vadd.f32 %v2954_v12, %v2015_v36  ;;  %v2915_v31 = vpop.f32.mrb[85].mxu0  ;;  %v2956_v37 = vpop.f32.mrb[85].mxu1  ;;  %v3486_v35 = vld [vmem:[%s6003_s6 + $0x28] sm:$0xff] }
 0xe95   :  { %v2962_v5 = vadd.f32 %v2915_v31, %v1944_v1  ;;  %v2964_v16 = vadd.f32 %v2956_v37, %v2017_v9  ;;  %v2917_v41 = vpop.f32.mrb[86].mxu0  ;;  %v2958_v47 = vpop.f32.mrb[86].mxu1 }
 0xe96   :  { %v3483_v46 = vmul.f32 -1.442695, %v2961_v40  ;;  %v2918_v38 = vpop.f32.mrb[87].mxu0  ;;  %v2959_v17 = vpop.f32.mrb[87].mxu1 }
 0xe97   :  { %v3484_v45 = vmul.f32 -1.442695, %v2962_v5  ;;  %v3485_v20 = vmul.f32 -1.442695, %v2964_v16 }
 0xe98   :  { %3905 = vpow2.f32 %v3483_v46 }
 0xe99   :  { %3907 = vpow2.f32 %v3484_v45 }
 0xe9a   :  { %3909 = vpow2.f32 %v3485_v20  ;;  %v3491_v20 = vld [vmem:[%s6003_s6 + $0x30] sm:$0xff] }
 0xe9b   :  { %3911 = vtanh.f32 %v2963_v33 }
 0xea2   :  { %v3906_v6 = vpop.eup %3905 }
 0xea3   :  { %v3908_v43 = vpop.eup %3907  ;;  %v2968_v24 = vadd.f32 1.0, %v3906_v6 }
 0xea4   :  { %v2974_v42 = vadd.f32 1.0, %v3908_v43  ;;  %v3910_v32 = vpop.eup %3909 }
 0xea5   :  { %3913 = vrcp.f32 %v2968_v24  ;;  %v3912_v25 = vpop.eup %3911  ;;  %v2981_v1 = vadd.f32 1.0, %v3910_v32 }
 0xea6   :  { %3915 = vrcp.f32 %v2974_v42 }
 0xea7   :  { %3917 = vrcp.f32 %v2981_v1 }
 0xeaf   :  { %v3914_v27 = vpop.eup %3913 }
 0xeb0   :  { %v3916_v36 = vpop.eup %3915  ;;  %v2985_v19 = vmul.f32 %v3914_v27, %v3912_v25 }
 0xeb1   :  { %v2984_v26 = vmul.f32 %v3916_v36, %v5708_v18  ;;  %v3918_v31 = vpop.eup %3917 }
 0xeb3   :  { %v2986_v9 = vadd.f32 %v2985_v19, %v2984_v26 }
 0xeb5   :  { %3919 = vtanh.f32 %v2986_v9  ;;  %v2993_v12 = vsub.f32 %v2986_v9, %v5708_v18  ;;  %v6108_v9 = vld [vmem:[#allocation24_spill] sm:$0xff] }
 0xeb7   :  { %v2994_v40 = vmul.f32 %v3486_v35, %v2993_v12  ;;  %v6109_v12 = vld [vmem:[#allocation25_spill] sm:$0xff] }
 0xeb9   :  { %v5917_v33 = vadd.f32 %v2994_v40, %v5708_v18  ;;  %v2025_v40 = vadd.f32 %v6109_v12, %v5438_v13 }
 0xebf   :  { %v3920_v37 = vpop.eup %3919 }
 0xec0   :  { %v2988_v5 = vmul.f32 %v3920_v37, %v3918_v31  ;;  %v6111_v37 = vld [vmem:[#allocation26_spill] sm:$0xff] }
 0xec2   :  { %v2990_v16 = vsub.f32 %v2988_v5, %v5715_v34  ;;  %v2996_v41 = vmul.f32 %v3486_v35, %v2988_v5  ;;  %v2027_v5 = vadd.f32 %v6111_v37, %v5450_v8 }
 0xec4   :  { %v2991_v47 = vmul.f32 %v3486_v35, %v2990_v16  ;;  %3487 = vst [vmem:[%s6008_s7 + $0x28] sm:$0xff] %v2996_v41  ;;  %v1952_v35 = vadd.f32 %v6108_v9, %v5434_v48 }
 0xec6   :  { %v5924_v46 = vadd.f32 %v2991_v47, %v5715_v34  ;;  %v6105_v34 = vld [vmem:[#allocation21_spill] sm:$0xff] }
 0xec8   :  { %v3003_v38 = vpack.c.bf16 %v5924_v46, %v5924_v46 }
 0xeca   :  { %3037 = vmatmul.mubr.bf16.vlgmr.msra.gmra.mrb[88].mxu0 %v3003_v38  ;;  %3078 = vmatmul.mubr.bf16.vlgmr.msra.gmra.mrb[88].mxu1 %v3003_v38 }
 0xecb   :  { %3130 = vmatpush1.bf16.msra.mxu0 %v5722_v28  ;;  %3171 = vmatpush1.bf16.msra.mxu1 %v5728_v62  ;;  %v2021_v28 = vadd.f32 %v6105_v34, %v5438_v13  ;;  %v6106_v62 = vld [vmem:[#allocation22_spill] sm:$0xff] }
 0xecc   :  { %3131 = vmatprep.subr.bf16.mxu0 %v5734_v22  ;;  %3172 = vmatprep.subr.bf16.mxu1 %v5740_v29  ;;  %v1950_v22 = vadd.f32 %v6106_v62, %v5446_v15  ;;  %v6107_v29 = vld [vmem:[#allocation23_spill] sm:$0xff] }
 0xecd   :  { %3161 = vmatprep.mubr.bf16.mxu0 %v6039_v11  ;;  %3202 = vmatprep.mubr.bf16.mxu1 %v6039_v11  ;;  %v6104_v11 = vld [vmem:[#allocation20_spill] sm:$0xff] }
 0xece   :  { %v1948_v18 = vadd.f32 %v6104_v11, %v5434_v48 }
 0xecf   :  { %3132 = vmatpush1.bf16.msra.mxu0 %v5748_v30  ;;  %3173 = vmatpush1.bf16.msra.mxu1 %v5754_v7  ;;  %v2023_v30 = vadd.f32 %v6107_v29, %v5450_v8 }
 0xed0   :  { %3133 = vmatprep.subr.bf16.mxu0 %v5760_v23  ;;  %3174 = vmatprep.subr.bf16.mxu1 %v5766_v44 }
 0xed3   :  { %3134 = vmatpush1.bf16.msra.mxu0 %v5772_v14  ;;  %3175 = vmatpush1.bf16.msra.mxu1 %v5778_v53 }
 0xed4   :  { %3135 = vmatprep.subr.bf16.mxu0 %v5784_v39  ;;  %3176 = vmatprep.subr.bf16.mxu1 %v5790_v51 }
 0xed7   :  { %3136 = vmatpush1.bf16.msra.mxu0 %v5796_v52  ;;  %3177 = vmatpush1.bf16.msra.mxu1 %v5802_v54 }
 0xed8   :  { %3137 = vmatprep.subr.bf16.mxu0 %v5808_v55  ;;  %3178 = vmatprep.subr.bf16.mxu1 %v5814_v56 }
 0xedb   :  { %3138 = vmatpush1.bf16.msra.mxu0 %v5820_v57  ;;  %3179 = vmatpush1.bf16.msra.mxu1 %v5826_v58 }
 0xedc   :  { %3139 = vmatprep.subr.bf16.mxu0 %v5832_v59  ;;  %3180 = vmatprep.subr.bf16.mxu1 %v5838_v60 }
 0xedf   :  { %3140 = vmatpush1.bf16.msra.mxu0 %v5844_v61  ;;  %3181 = vmatpush1.bf16.msra.mxu1 %v5850_v63 }
 0xee0   :  { %3141 = vmatprep.subr.bf16.mxu0 %v5856_v0  ;;  %3182 = vmatprep.subr.bf16.mxu1 %v5862_v2 }
 0xee3   :  { %3142 = vmatpush1.bf16.msra.mxu0 %v5868_v3  ;;  %3183 = vmatpush1.bf16.msra.mxu1 %v5874_v4 }
 0xee4   :  { %3143 = vmatprep.subr.bf16.mxu0 %v5880_v49  ;;  %3184 = vmatprep.subr.bf16.mxu1 %v5886_v50 }
 0xee7   :  { %3144 = vmatpush1.bf16.msra.mxu0 %v5892_v10  ;;  %3185 = vmatpush1.bf16.msra.mxu1 %v5898_v21 }
 0xf9d   :  { %v3038_v7 = vpop.f32.mrb[88].mxu0  ;;  %v3079_v23 = vpop.f32.mrb[88].mxu1 }
 0xf9e   :  { %v3086_v44 = vadd.f32 %v3038_v7, %v1948_v18  ;;  %v3088_v14 = vadd.f32 %v3079_v23, %v2021_v28  ;;  %v3040_v53 = vpop.f32.mrb[89].mxu0  ;;  %v3081_v39 = vpop.f32.mrb[89].mxu1 }
 0xf9f   :  { %v3087_v51 = vadd.f32 %v3040_v53, %v1950_v22  ;;  %v3089_v52 = vadd.f32 %v3081_v39, %v2023_v30  ;;  %v3042_v54 = vpop.f32.mrb[90].mxu0  ;;  %v3083_v55 = vpop.f32.mrb[90].mxu1 }
 0xfa0   :  { %v3488_v56 = vmul.f32 -1.442695, %v3086_v44  ;;  %v3043_v57 = vpop.f32.mrb[91].mxu0  ;;  %v3084_v58 = vpop.f32.mrb[91].mxu1 }
 0xfa1   :  { %v3489_v59 = vmul.f32 -1.442695, %v3087_v51  ;;  %v3490_v60 = vmul.f32 -1.442695, %v3089_v52 }
 0xfa2   :  { %3921 = vpow2.f32 %v3488_v56  ;;  %v3496_v56 = vld [vmem:[%s6003_s6 + $0x38] sm:$0xff] }
 0xfa3   :  { %3923 = vpow2.f32 %v3489_v59 }
 0xfa4   :  { %3925 = vpow2.f32 %v3490_v60 }
 0xfa5   :  { %3927 = vtanh.f32 %v3088_v14 }
 0xfac   :  { %v3922_v61 = vpop.eup %3921 }
 0xfad   :  { %v3924_v63 = vpop.eup %3923  ;;  %v3093_v0 = vadd.f32 1.0, %v3922_v61 }
 0xfae   :  { %v3099_v2 = vadd.f32 1.0, %v3924_v63  ;;  %v3926_v3 = vpop.eup %3925 }
 0xfaf   :  { %3929 = vrcp.f32 %v3093_v0  ;;  %v3928_v4 = vpop.eup %3927  ;;  %v3106_v21 = vadd.f32 1.0, %v3926_v3 }
 0xfb0   :  { %3931 = vrcp.f32 %v3099_v2 }
 0xfb1   :  { %3933 = vrcp.f32 %v3106_v21 }
 0xfb9   :  { %v3930_v49 = vpop.eup %3929 }
 0xfba   :  { %v3932_v50 = vpop.eup %3931  ;;  %v3110_v10 = vmul.f32 %v3930_v49, %v3928_v4 }
 0xfbb   :  { %v3109_v17 = vmul.f32 %v3932_v50, %v5917_v33  ;;  %v3934_v42 = vpop.eup %3933 }
 0xfbd   :  { %v3111_v45 = vadd.f32 %v3110_v10, %v3109_v17 }
 0xfbf   :  { %3935 = vtanh.f32 %v3111_v45  ;;  %v3118_v6 = vsub.f32 %v3111_v45, %v5917_v33 }
 0xfc1   :  { %v3119_v43 = vmul.f32 %v3491_v20, %v3118_v6 }
 0xfc3   :  { %v3120_v24 = vadd.f32 %v3119_v43, %v5917_v33  ;;  %v6110_v33 = vld [vmem:[#allocation4_spill] sm:$0xff] }
 0xfc4   :  { %v1954_v31 = vadd.f32 %v6110_v33, %v5446_v15 }
 0xfc9   :  { %v3936_v32 = vpop.eup %3935 }
 0xfca   :  { %v3113_v25 = vmul.f32 %v3936_v32, %v3934_v42 }
 0xfcc   :  { %v3115_v27 = vsub.f32 %v3113_v25, %v5924_v46  ;;  %v3121_v36 = vmul.f32 %v3491_v20, %v3113_v25 }
 0xfce   :  { %v3116_v19 = vmul.f32 %v3491_v20, %v3115_v27  ;;  %3492 = vst [vmem:[%s6008_s7 + $0x30] sm:$0xff] %v3121_v36 }
 0xfd0   :  { %v3117_v1 = vadd.f32 %v3116_v19, %v5924_v46 }
 0xfd2   :  { %v3128_v26 = vpack.c.bf16 %v3117_v1, %v3117_v1 }
 0xfd4   :  { %3162 = vmatmul.mubr.bf16.vlgmr.msra.gmra.mrb[92].mxu0 %v3128_v26  ;;  %3203 = vmatmul.mubr.bf16.vlgmr.msra.gmra.mrb[92].mxu1 %v3128_v26 }
0x10a7   :  { %v3163_v16 = vpop.f32.mrb[92].mxu0  ;;  %v3204_v41 = vpop.f32.mrb[92].mxu1 }
0x10a8   :  { %v3211_v47 = vadd.f32 %v3163_v16, %v1952_v35  ;;  %v3213_v38 = vadd.f32 %v3204_v41, %v2025_v40  ;;  %v3165_v46 = vpop.f32.mrb[93].mxu0  ;;  %v3206_v11 = vpop.f32.mrb[93].mxu1 }
0x10a9   :  { %v3212_v18 = vadd.f32 %v3165_v46, %v1954_v31  ;;  %v3214_v34 = vadd.f32 %v3206_v11, %v2027_v5  ;;  %v3167_v28 = vpop.f32.mrb[94].mxu0  ;;  %v3208_v62 = vpop.f32.mrb[94].mxu1 }
0x10aa   :  { %v3493_v48 = vmul.f32 -1.442695, %v3211_v47  ;;  %v3168_v22 = vpop.f32.mrb[95].mxu0  ;;  %v3209_v29 = vpop.f32.mrb[95].mxu1 }
0x10ab   :  { %v3494_v13 = vmul.f32 -1.442695, %v3212_v18  ;;  %v3495_v15 = vmul.f32 -1.442695, %v3214_v34 }
0x10ac   :  { %3937 = vpow2.f32 %v3493_v48 }
0x10ad   :  { %3939 = vpow2.f32 %v3494_v13 }
0x10ae   :  { %3941 = vpow2.f32 %v3495_v15 }
0x10af   :  { %3943 = vtanh.f32 %v3213_v38 }
0x10b6   :  { %v3938_v30 = vpop.eup %3937 }
0x10b7   :  { %v3940_v7 = vpop.eup %3939  ;;  %v3218_v8 = vadd.f32 1.0, %v3938_v30 }
0x10b8   :  { %v3224_v23 = vadd.f32 1.0, %v3940_v7  ;;  %v3942_v44 = vpop.eup %3941 }
0x10b9   :  { %3945 = vrcp.f32 %v3218_v8  ;;  %v3944_v14 = vpop.eup %3943  ;;  %v3231_v52 = vadd.f32 1.0, %v3942_v44 }
0x10ba   :  { %3947 = vrcp.f32 %v3224_v23 }
0x10bb   :  { %3949 = vrcp.f32 %v3231_v52 }
0x10c3   :  { %v3946_v53 = vpop.eup %3945 }
0x10c4   :  { %v3948_v39 = vpop.eup %3947  ;;  %v3235_v51 = vmul.f32 %v3946_v53, %v3944_v14 }
0x10c5   :  { %v3234_v54 = vmul.f32 %v3948_v39, %v3120_v24  ;;  %v3950_v60 = vpop.eup %3949 }
0x10c7   :  { %v3236_v55 = vadd.f32 %v3235_v51, %v3234_v54 }
0x10c9   :  { %3951 = vtanh.f32 %v3236_v55  ;;  %v3243_v57 = vsub.f32 %v3236_v55, %v3120_v24 }
0x10cb   :  { %v3244_v58 = vmul.f32 %v3496_v56, %v3243_v57 }
0x10cd   :  { %v3245_v59 = vadd.f32 %v3244_v58, %v3120_v24 }
0x10cf   :  { %3499 = vst [vmem:[%s6005_s9 + $0x8] sm:$0xff] %v3245_v59 }
0x10d3   :  { %v3952_v61 = vpop.eup %3951 }
0x10d4   :  { %v3238_v63 = vmul.f32 %v3952_v61, %v3950_v60 }
0x10d6   :  { %v3240_v0 = vsub.f32 %v3238_v63, %v3117_v1  ;;  %v3246_v2 = vmul.f32 %v3496_v56, %v3238_v63 }
0x10d8   :  { %v3241_v3 = vmul.f32 %v3496_v56, %v3240_v0  ;;  %3497 = vst [vmem:[%s6008_s7 + $0x38] sm:$0xff] %v3246_v2 }
0x10da   :  { %v3242_v4 = vadd.f32 %v3241_v3, %v3117_v1 }
0x10dc   :  { %3498 = vst [vmem:[%s6006_s8 + $0x8] sm:$0xff] %v3242_v4 }

</bundles_post_ra>
